<compile_context>
chip_gen: v7x
topology: tpu7x:2x2x1
jax: 0.10.0
libtpu: 0.0.40
codegen_flags: <defaults>
</compile_context>

<pallas_src>
import functools

import jax
import jax.numpy as jnp
from jax.experimental import pallas as pl
from jax.experimental.pallas import tpu as pltpu


def _round_up(n, m):
    return -(-n // m) * m


# ---------------------------------------------------------------------------
# Fused Pallas kernel: whole ECAPA-TDNN forward for ONE utterance per grid step
# ---------------------------------------------------------------------------

def _ecapa_kernel(*refs, cfg):
    f32 = jnp.float32
    bf16 = jnp.bfloat16
    channels = cfg["channels"]
    ks = cfg["kernel_sizes"]
    dils = cfg["dilations"]
    scale = cfg["res2net_scale"]

    out_ref = refs[-1]
    it = iter(refs[:-1])

    def nxt():
        return next(it)

    def mm(a, b):
        # bf16 MXU matmul, f32 accumulation (matmul weights are pre-cast to bf16 on host).
        return jnp.dot(a.astype(bf16), b.astype(bf16), preferred_element_type=f32)

    def conv1d(h, w_ref, b_ref, K, d, pad, relu):
        """Length-preserving dilated conv1d: 8-row-aligned zero-padded slab + K per-tap
        MXU dots accumulated in f32 (conv bias and eval-mode BN folded into w_ref/b_ref)."""
        Tloc, Cin = h.shape
        Cout = w_ref.shape[-1]
        if K == 1:
            y = mm(h, w_ref[0]) + b_ref[...]
        else:
            pad8 = _round_up(pad, 8)                      # keep the sublane concat aligned
            z = jnp.zeros((pad8, Cin), f32)
            hp = jnp.concatenate([z, h, z], axis=0)       # (T + 2*pad8, Cin)
            acc = jnp.zeros((Tloc, Cout), f32)
            for j in range(K):                            # out row t reads in row t + j*d - pad
                off = pad8 - pad + j * d
                acc = acc + mm(hp[off:off + Tloc, :], w_ref[j])
            y = acc + b_ref[...]
        return jnp.maximum(y, 0.0) if relu else y

    x = nxt()[...]          # (T, input_size) f32 activation slab for this utterance
    mask = nxt()[...]       # (T, 1) f32, 1.0 == valid frame

    # ---- Block 0: Conv1d + BatchNorm (folded) + ReLU (+ Dropout == identity) ----
    h = conv1d(x, nxt(), nxt(), ks[0], dils[0], ks[0] // 2, relu=True)

    # ---- SERes2Net blocks ----
    for blk in range(1, len(channels) - 1):
        k, d = ks[blk], dils[blk]
        ew_ref, eb_ref = nxt(), nxt()                     # 1x1 expand conv, pre-split per branch
        xs = [mm(h, ew_ref[s]) + eb_ref[s] for s in range(scale)]
        residual = jnp.concatenate(xs, axis=-1)           # (T, cout)

        ys = [xs[0]]
        for i in range(1, scale):                         # hierarchical dilated convs (+BN folded)
            cw_ref, cb_ref = nxt(), nxt()
            ys.append(conv1d(xs[i] + ys[-1], cw_ref, cb_ref, k, d,
                             (k - 1) * d // 2, relu=True))
        out = jnp.concatenate(ys, axis=-1)                # (T, cout)

        # Squeeze-Excitation: mean over ALL T frames (== AdaptiveAvgPool1d(1))
        w1, b1 = nxt()[...], nxt()[...]
        w2, b2 = nxt()[...], nxt()[...]
        bn_sc, bn_sh = nxt()[...], nxt()[...]
        avg = jnp.mean(out, axis=0, keepdims=True)        # (1, cout)
        g = jax.nn.sigmoid(mm(jnp.maximum(mm(avg, w1) + b1, 0.0), w2) + b2)
        y = jnp.maximum(out * g * bn_sc + bn_sh, 0.0)     # SE gate, post-SE BN affine, ReLU
        h = y + residual                                  # Dropout == identity in eval

    # ---- Attentive statistics pooling (per utterance, plain axis-0 reductions) ----
    wt_x, wt_mu, wt_sd, bt = nxt()[...], nxt()[...], nxt()[...], nxt()[...]
    wg, bg = nxt()[...], nxt()[...]
    Tloc = h.shape[0]
    logits = mm(h, wt_x) + bt                             # (T, A)
    if cfg["global_context"]:
        # global-context stats over ALL T frames (x.mean / x.std in the reference;
        # torch.std is unbiased -> divide by T-1)
        mu = jnp.mean(h, axis=0, keepdims=True)           # (1, C)
        sd = jnp.sqrt(jnp.sum((h - mu) ** 2, axis=0, keepdims=True) / (Tloc - 1))
        logits = logits + mm(mu, wt_mu) + mm(sd, wt_sd)
    a = mm(jnp.tanh(logits), wg) + bg                     # (T, C)
    a = jnp.where(mask == 0.0, -1000000000.0, a)          # masked_fill(mask == 0, -1e9)
    a = a - jnp.max(a, axis=0, keepdims=True)             # softmax over time
    e = jnp.exp(a)
    attn = e * pl.reciprocal(jnp.sum(e, axis=0, keepdims=True), approx=True)
    m = jnp.sum(attn * h, axis=0, keepdims=True)          # (1, C)
    v = jnp.sum(attn * h * h, axis=0, keepdims=True) - m * m
    s = jnp.sqrt(jnp.maximum(v, 1e-8))
    pooled = jnp.concatenate([m, s], axis=-1)             # (1, 2C)

    # ---- FC: Linear + BatchNorm (folded) + ReLU; lane-dense 128-wide padded output ----
    fw, fb = nxt()[...], nxt()[...]
    out_ref[...] = jnp.maximum(mm(pooled, fw) + fb, 0.0)  # (1, lin_pad)


# ---------------------------------------------------------------------------
# Host-side helpers (parameter folding / flattening, wrapper)
# ---------------------------------------------------------------------------

def _bn_fold(key, C, eps=1e-5):
    """Eval-mode BatchNorm1d folded to y = x*sc + sh (per channel)."""
    k1, k2, k3, k4 = jax.random.split(key, 4)
    gamma = 1.0 + 0.1 * jax.random.normal(k1, (C,), jnp.float32)
    beta = 0.1 * jax.random.normal(k2, (C,), jnp.float32)
    rmean = 0.1 * jax.random.normal(k3, (C,), jnp.float32)
    rvar = 1.0 + 0.1 * jax.random.uniform(k4, (C,), jnp.float32)
    sc = gamma / jnp.sqrt(rvar + eps)
    sh = beta - rmean * sc
    return sc.reshape(1, C), sh.reshape(1, C)


def _conv_init(key, K, cin, cout):
    k1, k2 = jax.random.split(key)
    w = 0.1 * jax.random.normal(k1, (K, cin, cout), jnp.float32)
    b = 0.1 * jax.random.normal(k2, (1, cout), jnp.float32)
    return w, b


def init_flat_params(key, cfg):
    """Synthetic parameters flattened in exactly the order the fused kernel consumes them.
    Conv weights are (K, Cin, Cout) bf16 with bias + eval-mode BN folded in; biases and BN
    affines stay f32; the FC weight is zero-padded to a 128-lane-multiple width."""
    bf16 = jnp.bfloat16
    channels, ks = cfg["channels"], cfg["kernel_sizes"]
    scale, se_ch = cfg["res2net_scale"], cfg["se_channels"]
    att, lin = cfg["attention_channels"], cfg["lin_neurons"]
    keys = iter(jax.random.split(key, 512))
    flat = []

    # Block 0: Conv1d + BN (folded)
    K0, cin0, c0 = ks[0], cfg["input_size"], channels[0]
    w, b = _conv_init(next(keys), K0, cin0, c0)
    sc, sh = _bn_fold(next(keys), c0)
    flat += [(w * sc.reshape(1, 1, c0)).astype(bf16), b * sc + sh]

    # SERes2Net blocks
    for i in range(1, len(channels) - 1):
        cin, cout = channels[i - 1], channels[i]
        width = cout // scale
        ew, eb = _conv_init(next(keys), 1, cin, cout)            # 1x1 expand conv (no BN)
        ew2d = ew.reshape(cin, cout)
        flat += [jnp.stack([ew2d[:, s_ * width:(s_ + 1) * width] for s_ in range(scale)],
                           axis=0).astype(bf16),                 # (scale, cin, width)
                 jnp.stack([eb[:, s_ * width:(s_ + 1) * width] for s_ in range(scale)],
                           axis=0)]                              # (scale, 1, width)
        for _ in range(scale - 1):                               # dilated convs + BN folded
            cw, cb = _conv_init(next(keys), ks[i], width, width)
            csc, csh = _bn_fold(next(keys), width)
            flat += [(cw * csc.reshape(1, 1, width)).astype(bf16), cb * csc + csh]
        w1, b1 = _conv_init(next(keys), 1, cout, se_ch)          # SE 1x1 convs
        w2, b2 = _conv_init(next(keys), 1, se_ch, cout)
        flat += [w1.reshape(cout, se_ch).astype(bf16), b1,
                 w2.reshape(se_ch, cout).astype(bf16), b2]
        flat += list(_bn_fold(next(keys), cout))                 # post-SE BN (eval affine)

    # Attentive statistics pooling (tdnn weight pre-split into x / mu / sd slabs)
    c_last = channels[-2]
    tdnn_in = c_last * 3 if cfg["global_context"] else c_last
    wt, bt = _conv_init(next(keys), 1, tdnn_in, att)
    wt2d = wt.reshape(tdnn_in, att)
    if cfg["global_context"]:
        slabs = [wt2d[:c_last], wt2d[c_last:2 * c_last], wt2d[2 * c_last:]]
    else:
        slabs = [wt2d, jnp.zeros((c_last, att), jnp.float32),
                 jnp.zeros((c_last, att), jnp.float32)]
    flat += [s_.astype(bf16) for s_ in slabs] + [bt]
    wg, bg = _conv_init(next(keys), 1, att, c_last)
    flat += [wg.reshape(att, c_last).astype(bf16), bg]

    # FC: Linear + BN (folded), zero-padded to a lane-dense 128-multiple width
    lin_pad = _round_up(lin, 128)
    wf, bf_ = _conv_init(next(keys), 1, 2 * c_last, lin)
    fsc, fsh = _bn_fold(next(keys), lin)
    wf_f = wf.reshape(2 * c_last, lin) * fsc
    bf_f = bf_ * fsc + fsh
    flat += [jnp.pad(wf_f, ((0, 0), (0, lin_pad - lin))).astype(bf16),
             jnp.pad(bf_f, ((0, 0), (0, lin_pad - lin)))]
    return flat


def advanced_ecapa_tdnn_forward(flat_params, x, lengths, cfg):
    """x: (B, T, input_size) channels-last, lengths: (B,). Returns (B, lin_neurons)."""
    B, T, F = x.shape
    channels, ks, dils = cfg["channels"], cfg["kernel_sizes"], cfg["dilations"]

    # The fused kernel assumes length-preserving convs ('same' padding, odd kernels).
    conv_cfgs = [(ks[0], dils[0], ks[0] // 2)] + [
        (ks[i], dils[i], (ks[i] - 1) * dils[i] // 2) for i in range(1, len(channels) - 1)]
    for K, d, p in conv_cfgs:
        assert 2 * p == d * (K - 1), "fused kernel assumes length-preserving convs"

    # TODO(synk): make_pad_mask is not defined in the reference file; we assume the
    # convention mask == 1 for valid frames (t < length), so masked_fill(mask == 0, -1e9)
    # suppresses padded frames in the attention softmax.
    mask = (jnp.arange(T)[None, :] < lengths[:, None]).astype(jnp.float32)[:, :, None]

    lin = cfg["lin_neurons"]
    lin_pad = _round_up(lin, 128)

    def resident(a):
        # Whole-array block with a constant index_map: fetched once, stays in VMEM
        # across all grid steps (weights are never re-DMA'd).
        nd = a.ndim
        return pl.BlockSpec(a.shape, lambda b: (0,) * nd)

    kern = functools.partial(_ecapa_kernel, cfg=cfg)
    grid_spec = pltpu.PrefetchScalarGridSpec(
        num_scalar_prefetch=0,
        grid=(B,),
        in_specs=[pl.BlockSpec((None, T, F), lambda b: (b, 0, 0)),    # x (double-buffered)
                  pl.BlockSpec((None, T, 1), lambda b: (b, 0, 0))]    # mask
                 + [resident(p) for p in flat_params],
        out_specs=pl.BlockSpec((None, 1, lin_pad), lambda b: (b, 0, 0)),
    )
    out = pl.pallas_call(
        kern,
        grid_spec=grid_spec,
        out_shape=jax.ShapeDtypeStruct((B, 1, lin_pad), jnp.float32),
        compiler_params=pltpu.CompilerParams(
            dimension_semantics=("parallel",),        # both TensorCores on v7x, harmless elsewhere
            vmem_limit_bytes=32 * 1024 * 1024,        # explicit budget, fits v7x's 64 MiB chip
        ),
    )(x, mask, *flat_params)
    return out.reshape(B, lin_pad)[:, :lin]


# ---------------------------------------------------------------------------

if __name__ == "__main__":
    cfg = dict(
        input_size=8,
        channels=[16, 16, 16, 16],
        kernel_sizes=[5, 3, 3, 1],
        dilations=[1, 2, 3, 1],
        attention_channels=16,
        res2net_scale=4,
        se_channels=8,
        global_context=True,
        lin_neurons=32,
        dropout=0.1,   # Dropout is identity at inference.
    )
    B, T = 2, 16

    key = jax.random.PRNGKey(0)
    kx, kp = jax.random.split(key)
    x = jax.random.normal(kx, (B, T, cfg["input_size"]), jnp.float32)
    lengths = jnp.array([T, 11], jnp.int32)

    flat_params = init_flat_params(kp, cfg)
    out = advanced_ecapa_tdnn_forward(flat_params, x, lengths, cfg)
    out = jax.block_until_ready(out)

    assert out.shape == (B, cfg["lin_neurons"]), out.shape
    assert bool(jnp.all(jnp.isfinite(out)))
    print("KERNEL_OK")
</pallas_src>

<mosaic_0001>
module attributes {stable_mosaic.version = 11 : i64} {
  func.func @_ecapa_kernel(%arg0: i32, %arg1: memref<1x16x8xf32, #tpu.memory_space<vmem>>, %arg2: memref<1x16x1xf32, #tpu.memory_space<vmem>>, %arg3: memref<5x8x16xbf16, #tpu.memory_space<vmem>>, %arg4: memref<1x16xf32, #tpu.memory_space<vmem>>, %arg5: memref<4x16x4xbf16, #tpu.memory_space<vmem>>, %arg6: memref<4x1x4xf32, #tpu.memory_space<vmem>>, %arg7: memref<3x4x4xbf16, #tpu.memory_space<vmem>>, %arg8: memref<1x4xf32, #tpu.memory_space<vmem>>, %arg9: memref<3x4x4xbf16, #tpu.memory_space<vmem>>, %arg10: memref<1x4xf32, #tpu.memory_space<vmem>>, %arg11: memref<3x4x4xbf16, #tpu.memory_space<vmem>>, %arg12: memref<1x4xf32, #tpu.memory_space<vmem>>, %arg13: memref<16x8xbf16, #tpu.memory_space<vmem>>, %arg14: memref<1x8xf32, #tpu.memory_space<vmem>>, %arg15: memref<8x16xbf16, #tpu.memory_space<vmem>>, %arg16: memref<1x16xf32, #tpu.memory_space<vmem>>, %arg17: memref<1x16xf32, #tpu.memory_space<vmem>>, %arg18: memref<1x16xf32, #tpu.memory_space<vmem>>, %arg19: memref<4x16x4xbf16, #tpu.memory_space<vmem>>, %arg20: memref<4x1x4xf32, #tpu.memory_space<vmem>>, %arg21: memref<3x4x4xbf16, #tpu.memory_space<vmem>>, %arg22: memref<1x4xf32, #tpu.memory_space<vmem>>, %arg23: memref<3x4x4xbf16, #tpu.memory_space<vmem>>, %arg24: memref<1x4xf32, #tpu.memory_space<vmem>>, %arg25: memref<3x4x4xbf16, #tpu.memory_space<vmem>>, %arg26: memref<1x4xf32, #tpu.memory_space<vmem>>, %arg27: memref<16x8xbf16, #tpu.memory_space<vmem>>, %arg28: memref<1x8xf32, #tpu.memory_space<vmem>>, %arg29: memref<8x16xbf16, #tpu.memory_space<vmem>>, %arg30: memref<1x16xf32, #tpu.memory_space<vmem>>, %arg31: memref<1x16xf32, #tpu.memory_space<vmem>>, %arg32: memref<1x16xf32, #tpu.memory_space<vmem>>, %arg33: memref<16x16xbf16, #tpu.memory_space<vmem>>, %arg34: memref<16x16xbf16, #tpu.memory_space<vmem>>, %arg35: memref<16x16xbf16, #tpu.memory_space<vmem>>, %arg36: memref<1x16xf32, #tpu.memory_space<vmem>>, %arg37: memref<16x16xbf16, #tpu.memory_space<vmem>>, %arg38: memref<1x16xf32, #tpu.memory_space<vmem>>, %arg39: memref<32x128xbf16, #tpu.memory_space<vmem>>, %arg40: memref<1x128xf32, #tpu.memory_space<vmem>>, %arg41: memref<1x1x128xf32, #tpu.memory_space<vmem>>) attributes {dimension_semantics = [#tpu.dimension_semantics<parallel>], iteration_bounds = array<i64: 2>, scalar_prefetch = 0 : i64, scratch_operands = 0 : i64, tpu.core_type = #tpu.core_type<tc>, window_params = [{transform_indices = @transform_0, window_bounds = array<i64: 1, 16, 8>}, {transform_indices = @transform_1, window_bounds = array<i64: 1, 16, 1>}, {pipeline_mode = #tpu.pipeline_mode<synchronous>, transform_indices = @transform_2, window_bounds = array<i64: 5, 8, 16>}, {pipeline_mode = #tpu.pipeline_mode<synchronous>, transform_indices = @transform_3, window_bounds = array<i64: 1, 16>}, {pipeline_mode = #tpu.pipeline_mode<synchronous>, transform_indices = @transform_4, window_bounds = array<i64: 4, 16, 4>}, {pipeline_mode = #tpu.pipeline_mode<synchronous>, transform_indices = @transform_5, window_bounds = array<i64: 4, 1, 4>}, {pipeline_mode = #tpu.pipeline_mode<synchronous>, transform_indices = @transform_6, window_bounds = array<i64: 3, 4, 4>}, {pipeline_mode = #tpu.pipeline_mode<synchronous>, transform_indices = @transform_7, window_bounds = array<i64: 1, 4>}, {pipeline_mode = #tpu.pipeline_mode<synchronous>, transform_indices = @transform_8, window_bounds = array<i64: 3, 4, 4>}, {pipeline_mode = #tpu.pipeline_mode<synchronous>, transform_indices = @transform_9, window_bounds = array<i64: 1, 4>}, {pipeline_mode = #tpu.pipeline_mode<synchronous>, transform_indices = @transform_10, window_bounds = array<i64: 3, 4, 4>}, {pipeline_mode = #tpu.pipeline_mode<synchronous>, transform_indices = @transform_11, window_bounds = array<i64: 1, 4>}, {pipeline_mode = #tpu.pipeline_mode<synchronous>, transform_indices = @transform_12, window_bounds = array<i64: 16, 8>}, {pipeline_mode = #tpu.pipeline_mode<synchronous>, transform_indices = @transform_13, window_bounds = array<i64: 1, 8>}, {pipeline_mode = #tpu.pipeline_mode<synchronous>, transform_indices = @transform_14, window_bounds = array<i64: 8, 16>}, {pipeline_mode = #tpu.pipeline_mode<synchronous>, transform_indices = @transform_15, window_bounds = array<i64: 1, 16>}, {pipeline_mode = #tpu.pipeline_mode<synchronous>, transform_indices = @transform_16, window_bounds = array<i64: 1, 16>}, {pipeline_mode = #tpu.pipeline_mode<synchronous>, transform_indices = @transform_17, window_bounds = array<i64: 1, 16>}, {pipeline_mode = #tpu.pipeline_mode<synchronous>, transform_indices = @transform_18, window_bounds = array<i64: 4, 16, 4>}, {pipeline_mode = #tpu.pipeline_mode<synchronous>, transform_indices = @transform_19, window_bounds = array<i64: 4, 1, 4>}, {pipeline_mode = #tpu.pipeline_mode<synchronous>, transform_indices = @transform_20, window_bounds = array<i64: 3, 4, 4>}, {pipeline_mode = #tpu.pipeline_mode<synchronous>, transform_indices = @transform_21, window_bounds = array<i64: 1, 4>}, {pipeline_mode = #tpu.pipeline_mode<synchronous>, transform_indices = @transform_22, window_bounds = array<i64: 3, 4, 4>}, {pipeline_mode = #tpu.pipeline_mode<synchronous>, transform_indices = @transform_23, window_bounds = array<i64: 1, 4>}, {pipeline_mode = #tpu.pipeline_mode<synchronous>, transform_indices = @transform_24, window_bounds = array<i64: 3, 4, 4>}, {pipeline_mode = #tpu.pipeline_mode<synchronous>, transform_indices = @transform_25, window_bounds = array<i64: 1, 4>}, {pipeline_mode = #tpu.pipeline_mode<synchronous>, transform_indices = @transform_26, window_bounds = array<i64: 16, 8>}, {pipeline_mode = #tpu.pipeline_mode<synchronous>, transform_indices = @transform_27, window_bounds = array<i64: 1, 8>}, {pipeline_mode = #tpu.pipeline_mode<synchronous>, transform_indices = @transform_28, window_bounds = array<i64: 8, 16>}, {pipeline_mode = #tpu.pipeline_mode<synchronous>, transform_indices = @transform_29, window_bounds = array<i64: 1, 16>}, {pipeline_mode = #tpu.pipeline_mode<synchronous>, transform_indices = @transform_30, window_bounds = array<i64: 1, 16>}, {pipeline_mode = #tpu.pipeline_mode<synchronous>, transform_indices = @transform_31, window_bounds = array<i64: 1, 16>}, {pipeline_mode = #tpu.pipeline_mode<synchronous>, transform_indices = @transform_32, window_bounds = array<i64: 16, 16>}, {pipeline_mode = #tpu.pipeline_mode<synchronous>, transform_indices = @transform_33, window_bounds = array<i64: 16, 16>}, {pipeline_mode = #tpu.pipeline_mode<synchronous>, transform_indices = @transform_34, window_bounds = array<i64: 16, 16>}, {pipeline_mode = #tpu.pipeline_mode<synchronous>, transform_indices = @transform_35, window_bounds = array<i64: 1, 16>}, {pipeline_mode = #tpu.pipeline_mode<synchronous>, transform_indices = @transform_36, window_bounds = array<i64: 16, 16>}, {pipeline_mode = #tpu.pipeline_mode<synchronous>, transform_indices = @transform_37, window_bounds = array<i64: 1, 16>}, {pipeline_mode = #tpu.pipeline_mode<synchronous>, transform_indices = @transform_38, window_bounds = array<i64: 32, 128>}, {pipeline_mode = #tpu.pipeline_mode<synchronous>, transform_indices = @transform_39, window_bounds = array<i64: 1, 128>}, {transform_indices = @transform_40, window_bounds = array<i64: 1, 1, 128>}]} {
    %c0 = arith.constant 0 : index
    %c0_0 = arith.constant 0 : index
    %c0_1 = arith.constant 0 : index
    %0 = vector.load %arg1[%c0, %c0_0, %c0_1] : memref<1x16x8xf32, #tpu.memory_space<vmem>>, vector<1x16x8xf32>
    %1 = vector.shape_cast %0 : vector<1x16x8xf32> to vector<16x8xf32>
    %c0_2 = arith.constant 0 : index
    %c0_3 = arith.constant 0 : index
    %c0_4 = arith.constant 0 : index
    %2 = vector.load %arg2[%c0_2, %c0_3, %c0_4] : memref<1x16x1xf32, #tpu.memory_space<vmem>>, vector<1x16x1xf32>
    %3 = vector.shape_cast %2 : vector<1x16x1xf32> to vector<16x1xf32>
    %cst = arith.constant 0.000000e+00 : f32
    %4 = vector.broadcast %cst : f32 to vector<8x8xf32>
    %5 = tpu.concatenate %4, %1, %4 in 0 : vector<8x8xf32>, vector<16x8xf32>, vector<8x8xf32> -> vector<32x8xf32>
    %cst_5 = arith.constant 0.000000e+00 : f32
    %6 = vector.broadcast %cst_5 : f32 to vector<16x16xf32>
    %7 = vector.extract_strided_slice %5 {offsets = [6, 0], sizes = [16, 8], strides = [1, 1]} : vector<32x8xf32> to vector<16x8xf32>
    %c0_6 = arith.constant 0 : index
    %c0_7 = arith.constant 0 : index
    %c0_8 = arith.constant 0 : index
    %8 = vector.load %arg3[%c0_6, %c0_7, %c0_8] : memref<5x8x16xbf16, #tpu.memory_space<vmem>>, vector<1x8x16xbf16>
    %9 = vector.shape_cast %8 : vector<1x8x16xbf16> to vector<8x16xbf16>
    %10 = arith.truncf %7 : vector<16x8xf32> to vector<16x8xbf16>
    %cst_9 = arith.constant dense<0.000000e+00> : vector<16x16xf32>
    %11 = tpu.matmul %10, %9, %cst_9 {dimension_numbers = #tpu.dot_dimension_numbers<[1], [0], [0], [1], [0, 0, 1, 1], [], []>} : vector<16x8xbf16>, vector<8x16xbf16>, vector<16x16xf32> -> vector<16x16xf32>
    %12 = arith.addf %6, %11 : vector<16x16xf32>
    %13 = vector.extract_strided_slice %5 {offsets = [7, 0], sizes = [16, 8], strides = [1, 1]} : vector<32x8xf32> to vector<16x8xf32>
    %c1 = arith.constant 1 : index
    %c0_10 = arith.constant 0 : index
    %c0_11 = arith.constant 0 : index
    %14 = vector.load %arg3[%c1, %c0_10, %c0_11] : memref<5x8x16xbf16, #tpu.memory_space<vmem>>, vector<1x8x16xbf16>
    %15 = vector.shape_cast %14 : vector<1x8x16xbf16> to vector<8x16xbf16>
    %16 = arith.truncf %13 : vector<16x8xf32> to vector<16x8xbf16>
    %cst_12 = arith.constant dense<0.000000e+00> : vector<16x16xf32>
    %17 = tpu.matmul %16, %15, %cst_12 {dimension_numbers = #tpu.dot_dimension_numbers<[1], [0], [0], [1], [0, 0, 1, 1], [], []>} : vector<16x8xbf16>, vector<8x16xbf16>, vector<16x16xf32> -> vector<16x16xf32>
    %18 = arith.addf %12, %17 : vector<16x16xf32>
    %19 = vector.extract_strided_slice %5 {offsets = [8, 0], sizes = [16, 8], strides = [1, 1]} : vector<32x8xf32> to vector<16x8xf32>
    %c2 = arith.constant 2 : index
    %c0_13 = arith.constant 0 : index
    %c0_14 = arith.constant 0 : index
    %20 = vector.load %arg3[%c2, %c0_13, %c0_14] : memref<5x8x16xbf16, #tpu.memory_space<vmem>>, vector<1x8x16xbf16>
    %21 = vector.shape_cast %20 : vector<1x8x16xbf16> to vector<8x16xbf16>
    %22 = arith.truncf %19 : vector<16x8xf32> to vector<16x8xbf16>
    %cst_15 = arith.constant dense<0.000000e+00> : vector<16x16xf32>
    %23 = tpu.matmul %22, %21, %cst_15 {dimension_numbers = #tpu.dot_dimension_numbers<[1], [0], [0], [1], [0, 0, 1, 1], [], []>} : vector<16x8xbf16>, vector<8x16xbf16>, vector<16x16xf32> -> vector<16x16xf32>
    %24 = arith.addf %18, %23 : vector<16x16xf32>
    %25 = vector.extract_strided_slice %5 {offsets = [9, 0], sizes = [16, 8], strides = [1, 1]} : vector<32x8xf32> to vector<16x8xf32>
    %c3 = arith.constant 3 : index
    %c0_16 = arith.constant 0 : index
    %c0_17 = arith.constant 0 : index
    %26 = vector.load %arg3[%c3, %c0_16, %c0_17] : memref<5x8x16xbf16, #tpu.memory_space<vmem>>, vector<1x8x16xbf16>
    %27 = vector.shape_cast %26 : vector<1x8x16xbf16> to vector<8x16xbf16>
    %28 = arith.truncf %25 : vector<16x8xf32> to vector<16x8xbf16>
    %cst_18 = arith.constant dense<0.000000e+00> : vector<16x16xf32>
    %29 = tpu.matmul %28, %27, %cst_18 {dimension_numbers = #tpu.dot_dimension_numbers<[1], [0], [0], [1], [0, 0, 1, 1], [], []>} : vector<16x8xbf16>, vector<8x16xbf16>, vector<16x16xf32> -> vector<16x16xf32>
    %30 = arith.addf %24, %29 : vector<16x16xf32>
    %31 = vector.extract_strided_slice %5 {offsets = [10, 0], sizes = [16, 8], strides = [1, 1]} : vector<32x8xf32> to vector<16x8xf32>
    %c4 = arith.constant 4 : index
    %c0_19 = arith.constant 0 : index
    %c0_20 = arith.constant 0 : index
    %32 = vector.load %arg3[%c4, %c0_19, %c0_20] : memref<5x8x16xbf16, #tpu.memory_space<vmem>>, vector<1x8x16xbf16>
    %33 = vector.shape_cast %32 : vector<1x8x16xbf16> to vector<8x16xbf16>
    %34 = arith.truncf %31 : vector<16x8xf32> to vector<16x8xbf16>
    %cst_21 = arith.constant dense<0.000000e+00> : vector<16x16xf32>
    %35 = tpu.matmul %34, %33, %cst_21 {dimension_numbers = #tpu.dot_dimension_numbers<[1], [0], [0], [1], [0, 0, 1, 1], [], []>} : vector<16x8xbf16>, vector<8x16xbf16>, vector<16x16xf32> -> vector<16x16xf32>
    %36 = arith.addf %30, %35 : vector<16x16xf32>
    %c0_22 = arith.constant 0 : index
    %c0_23 = arith.constant 0 : index
    %37 = vector.load %arg4[%c0_22, %c0_23] : memref<1x16xf32, #tpu.memory_space<vmem>>, vector<1x16xf32>
    %38 = vector.broadcast %37 : vector<1x16xf32> to vector<16x16xf32>
    %39 = arith.addf %36, %38 : vector<16x16xf32>
    %cst_24 = arith.constant 0.000000e+00 : f32
    %40 = vector.broadcast %cst_24 : f32 to vector<16x16xf32>
    %41 = arith.maximumf %39, %40 : vector<16x16xf32>
    %c0_25 = arith.constant 0 : index
    %c0_26 = arith.constant 0 : index
    %c0_27 = arith.constant 0 : index
    %42 = vector.load %arg5[%c0_25, %c0_26, %c0_27] : memref<4x16x4xbf16, #tpu.memory_space<vmem>>, vector<1x16x4xbf16>
    %43 = vector.shape_cast %42 : vector<1x16x4xbf16> to vector<16x4xbf16>
    %44 = arith.truncf %41 : vector<16x16xf32> to vector<16x16xbf16>
    %cst_28 = arith.constant dense<0.000000e+00> : vector<16x4xf32>
    %45 = tpu.matmul %44, %43, %cst_28 {dimension_numbers = #tpu.dot_dimension_numbers<[1], [0], [0], [1], [0, 0, 1, 1], [], []>} : vector<16x16xbf16>, vector<16x4xbf16>, vector<16x4xf32> -> vector<16x4xf32>
    %c0_29 = arith.constant 0 : index
    %c0_30 = arith.constant 0 : index
    %c0_31 = arith.constant 0 : index
    %46 = vector.load %arg6[%c0_29, %c0_30, %c0_31] : memref<4x1x4xf32, #tpu.memory_space<vmem>>, vector<1x1x4xf32>
    %47 = vector.shape_cast %46 : vector<1x1x4xf32> to vector<1x4xf32>
    %48 = vector.broadcast %47 : vector<1x4xf32> to vector<16x4xf32>
    %49 = arith.addf %45, %48 : vector<16x4xf32>
    %c1_32 = arith.constant 1 : index
    %c0_33 = arith.constant 0 : index
    %c0_34 = arith.constant 0 : index
    %50 = vector.load %arg5[%c1_32, %c0_33, %c0_34] : memref<4x16x4xbf16, #tpu.memory_space<vmem>>, vector<1x16x4xbf16>
    %51 = vector.shape_cast %50 : vector<1x16x4xbf16> to vector<16x4xbf16>
    %52 = arith.truncf %41 : vector<16x16xf32> to vector<16x16xbf16>
    %cst_35 = arith.constant dense<0.000000e+00> : vector<16x4xf32>
    %53 = tpu.matmul %52, %51, %cst_35 {dimension_numbers = #tpu.dot_dimension_numbers<[1], [0], [0], [1], [0, 0, 1, 1], [], []>} : vector<16x16xbf16>, vector<16x4xbf16>, vector<16x4xf32> -> vector<16x4xf32>
    %c1_36 = arith.constant 1 : index
    %c0_37 = arith.constant 0 : index
    %c0_38 = arith.constant 0 : index
    %54 = vector.load %arg6[%c1_36, %c0_37, %c0_38] : memref<4x1x4xf32, #tpu.memory_space<vmem>>, vector<1x1x4xf32>
    %55 = vector.shape_cast %54 : vector<1x1x4xf32> to vector<1x4xf32>
    %56 = vector.broadcast %55 : vector<1x4xf32> to vector<16x4xf32>
    %57 = arith.addf %53, %56 : vector<16x4xf32>
    %c2_39 = arith.constant 2 : index
    %c0_40 = arith.constant 0 : index
    %c0_41 = arith.constant 0 : index
    %58 = vector.load %arg5[%c2_39, %c0_40, %c0_41] : memref<4x16x4xbf16, #tpu.memory_space<vmem>>, vector<1x16x4xbf16>
    %59 = vector.shape_cast %58 : vector<1x16x4xbf16> to vector<16x4xbf16>
    %60 = arith.truncf %41 : vector<16x16xf32> to vector<16x16xbf16>
    %cst_42 = arith.constant dense<0.000000e+00> : vector<16x4xf32>
    %61 = tpu.matmul %60, %59, %cst_42 {dimension_numbers = #tpu.dot_dimension_numbers<[1], [0], [0], [1], [0, 0, 1, 1], [], []>} : vector<16x16xbf16>, vector<16x4xbf16>, vector<16x4xf32> -> vector<16x4xf32>
    %c2_43 = arith.constant 2 : index
    %c0_44 = arith.constant 0 : index
    %c0_45 = arith.constant 0 : index
    %62 = vector.load %arg6[%c2_43, %c0_44, %c0_45] : memref<4x1x4xf32, #tpu.memory_space<vmem>>, vector<1x1x4xf32>
    %63 = vector.shape_cast %62 : vector<1x1x4xf32> to vector<1x4xf32>
    %64 = vector.broadcast %63 : vector<1x4xf32> to vector<16x4xf32>
    %65 = arith.addf %61, %64 : vector<16x4xf32>
    %c3_46 = arith.constant 3 : index
    %c0_47 = arith.constant 0 : index
    %c0_48 = arith.constant 0 : index
    %66 = vector.load %arg5[%c3_46, %c0_47, %c0_48] : memref<4x16x4xbf16, #tpu.memory_space<vmem>>, vector<1x16x4xbf16>
    %67 = vector.shape_cast %66 : vector<1x16x4xbf16> to vector<16x4xbf16>
    %68 = arith.truncf %41 : vector<16x16xf32> to vector<16x16xbf16>
    %cst_49 = arith.constant dense<0.000000e+00> : vector<16x4xf32>
    %69 = tpu.matmul %68, %67, %cst_49 {dimension_numbers = #tpu.dot_dimension_numbers<[1], [0], [0], [1], [0, 0, 1, 1], [], []>} : vector<16x16xbf16>, vector<16x4xbf16>, vector<16x4xf32> -> vector<16x4xf32>
    %c3_50 = arith.constant 3 : index
    %c0_51 = arith.constant 0 : index
    %c0_52 = arith.constant 0 : index
    %70 = vector.load %arg6[%c3_50, %c0_51, %c0_52] : memref<4x1x4xf32, #tpu.memory_space<vmem>>, vector<1x1x4xf32>
    %71 = vector.shape_cast %70 : vector<1x1x4xf32> to vector<1x4xf32>
    %72 = vector.broadcast %71 : vector<1x4xf32> to vector<16x4xf32>
    %73 = arith.addf %69, %72 : vector<16x4xf32>
    %74 = tpu.concatenate %49, %57, %65, %73 in 1 : vector<16x4xf32>, vector<16x4xf32>, vector<16x4xf32>, vector<16x4xf32> -> vector<16x16xf32>
    %75 = arith.addf %57, %49 : vector<16x4xf32>
    %cst_53 = arith.constant 0.000000e+00 : f32
    %76 = vector.broadcast %cst_53 : f32 to vector<8x4xf32>
    %77 = tpu.concatenate %76, %75, %76 in 0 : vector<8x4xf32>, vector<16x4xf32>, vector<8x4xf32> -> vector<32x4xf32>
    %cst_54 = arith.constant 0.000000e+00 : f32
    %78 = vector.broadcast %cst_54 : f32 to vector<16x4xf32>
    %79 = vector.extract_strided_slice %77 {offsets = [6, 0], sizes = [16, 4], strides = [1, 1]} : vector<32x4xf32> to vector<16x4xf32>
    %c0_55 = arith.constant 0 : index
    %c0_56 = arith.constant 0 : index
    %c0_57 = arith.constant 0 : index
    %80 = vector.load %arg7[%c0_55, %c0_56, %c0_57] : memref<3x4x4xbf16, #tpu.memory_space<vmem>>, vector<1x4x4xbf16>
    %81 = vector.shape_cast %80 : vector<1x4x4xbf16> to vector<4x4xbf16>
    %82 = arith.truncf %79 : vector<16x4xf32> to vector<16x4xbf16>
    %cst_58 = arith.constant dense<0.000000e+00> : vector<16x4xf32>
    %83 = tpu.matmul %82, %81, %cst_58 {dimension_numbers = #tpu.dot_dimension_numbers<[1], [0], [0], [1], [0, 0, 1, 1], [], []>} : vector<16x4xbf16>, vector<4x4xbf16>, vector<16x4xf32> -> vector<16x4xf32>
    %84 = arith.addf %78, %83 : vector<16x4xf32>
    %85 = vector.extract_strided_slice %77 {offsets = [8, 0], sizes = [16, 4], strides = [1, 1]} : vector<32x4xf32> to vector<16x4xf32>
    %c1_59 = arith.constant 1 : index
    %c0_60 = arith.constant 0 : index
    %c0_61 = arith.constant 0 : index
    %86 = vector.load %arg7[%c1_59, %c0_60, %c0_61] : memref<3x4x4xbf16, #tpu.memory_space<vmem>>, vector<1x4x4xbf16>
    %87 = vector.shape_cast %86 : vector<1x4x4xbf16> to vector<4x4xbf16>
    %88 = arith.truncf %85 : vector<16x4xf32> to vector<16x4xbf16>
    %cst_62 = arith.constant dense<0.000000e+00> : vector<16x4xf32>
    %89 = tpu.matmul %88, %87, %cst_62 {dimension_numbers = #tpu.dot_dimension_numbers<[1], [0], [0], [1], [0, 0, 1, 1], [], []>} : vector<16x4xbf16>, vector<4x4xbf16>, vector<16x4xf32> -> vector<16x4xf32>
    %90 = arith.addf %84, %89 : vector<16x4xf32>
    %91 = vector.extract_strided_slice %77 {offsets = [10, 0], sizes = [16, 4], strides = [1, 1]} : vector<32x4xf32> to vector<16x4xf32>
    %c2_63 = arith.constant 2 : index
    %c0_64 = arith.constant 0 : index
    %c0_65 = arith.constant 0 : index
    %92 = vector.load %arg7[%c2_63, %c0_64, %c0_65] : memref<3x4x4xbf16, #tpu.memory_space<vmem>>, vector<1x4x4xbf16>
    %93 = vector.shape_cast %92 : vector<1x4x4xbf16> to vector<4x4xbf16>
    %94 = arith.truncf %91 : vector<16x4xf32> to vector<16x4xbf16>
    %cst_66 = arith.constant dense<0.000000e+00> : vector<16x4xf32>
    %95 = tpu.matmul %94, %93, %cst_66 {dimension_numbers = #tpu.dot_dimension_numbers<[1], [0], [0], [1], [0, 0, 1, 1], [], []>} : vector<16x4xbf16>, vector<4x4xbf16>, vector<16x4xf32> -> vector<16x4xf32>
    %96 = arith.addf %90, %95 : vector<16x4xf32>
    %c0_67 = arith.constant 0 : index
    %c0_68 = arith.constant 0 : index
    %97 = vector.load %arg8[%c0_67, %c0_68] : memref<1x4xf32, #tpu.memory_space<vmem>>, vector<1x4xf32>
    %98 = vector.broadcast %97 : vector<1x4xf32> to vector<16x4xf32>
    %99 = arith.addf %96, %98 : vector<16x4xf32>
    %cst_69 = arith.constant 0.000000e+00 : f32
    %100 = vector.broadcast %cst_69 : f32 to vector<16x4xf32>
    %101 = arith.maximumf %99, %100 : vector<16x4xf32>
    %102 = arith.addf %65, %101 : vector<16x4xf32>
    %cst_70 = arith.constant 0.000000e+00 : f32
    %103 = vector.broadcast %cst_70 : f32 to vector<8x4xf32>
    %104 = tpu.concatenate %103, %102, %103 in 0 : vector<8x4xf32>, vector<16x4xf32>, vector<8x4xf32> -> vector<32x4xf32>
    %cst_71 = arith.constant 0.000000e+00 : f32
    %105 = vector.broadcast %cst_71 : f32 to vector<16x4xf32>
    %106 = vector.extract_strided_slice %104 {offsets = [6, 0], sizes = [16, 4], strides = [1, 1]} : vector<32x4xf32> to vector<16x4xf32>
    %c0_72 = arith.constant 0 : index
    %c0_73 = arith.constant 0 : index
    %c0_74 = arith.constant 0 : index
    %107 = vector.load %arg9[%c0_72, %c0_73, %c0_74] : memref<3x4x4xbf16, #tpu.memory_space<vmem>>, vector<1x4x4xbf16>
    %108 = vector.shape_cast %107 : vector<1x4x4xbf16> to vector<4x4xbf16>
    %109 = arith.truncf %106 : vector<16x4xf32> to vector<16x4xbf16>
    %cst_75 = arith.constant dense<0.000000e+00> : vector<16x4xf32>
    %110 = tpu.matmul %109, %108, %cst_75 {dimension_numbers = #tpu.dot_dimension_numbers<[1], [0], [0], [1], [0, 0, 1, 1], [], []>} : vector<16x4xbf16>, vector<4x4xbf16>, vector<16x4xf32> -> vector<16x4xf32>
    %111 = arith.addf %105, %110 : vector<16x4xf32>
    %112 = vector.extract_strided_slice %104 {offsets = [8, 0], sizes = [16, 4], strides = [1, 1]} : vector<32x4xf32> to vector<16x4xf32>
    %c1_76 = arith.constant 1 : index
    %c0_77 = arith.constant 0 : index
    %c0_78 = arith.constant 0 : index
    %113 = vector.load %arg9[%c1_76, %c0_77, %c0_78] : memref<3x4x4xbf16, #tpu.memory_space<vmem>>, vector<1x4x4xbf16>
    %114 = vector.shape_cast %113 : vector<1x4x4xbf16> to vector<4x4xbf16>
    %115 = arith.truncf %112 : vector<16x4xf32> to vector<16x4xbf16>
    %cst_79 = arith.constant dense<0.000000e+00> : vector<16x4xf32>
    %116 = tpu.matmul %115, %114, %cst_79 {dimension_numbers = #tpu.dot_dimension_numbers<[1], [0], [0], [1], [0, 0, 1, 1], [], []>} : vector<16x4xbf16>, vector<4x4xbf16>, vector<16x4xf32> -> vector<16x4xf32>
    %117 = arith.addf %111, %116 : vector<16x4xf32>
    %118 = vector.extract_strided_slice %104 {offsets = [10, 0], sizes = [16, 4], strides = [1, 1]} : vector<32x4xf32> to vector<16x4xf32>
    %c2_80 = arith.constant 2 : index
    %c0_81 = arith.constant 0 : index
    %c0_82 = arith.constant 0 : index
    %119 = vector.load %arg9[%c2_80, %c0_81, %c0_82] : memref<3x4x4xbf16, #tpu.memory_space<vmem>>, vector<1x4x4xbf16>
    %120 = vector.shape_cast %119 : vector<1x4x4xbf16> to vector<4x4xbf16>
    %121 = arith.truncf %118 : vector<16x4xf32> to vector<16x4xbf16>
    %cst_83 = arith.constant dense<0.000000e+00> : vector<16x4xf32>
    %122 = tpu.matmul %121, %120, %cst_83 {dimension_numbers = #tpu.dot_dimension_numbers<[1], [0], [0], [1], [0, 0, 1, 1], [], []>} : vector<16x4xbf16>, vector<4x4xbf16>, vector<16x4xf32> -> vector<16x4xf32>
    %123 = arith.addf %117, %122 : vector<16x4xf32>
    %c0_84 = arith.constant 0 : index
    %c0_85 = arith.constant 0 : index
    %124 = vector.load %arg10[%c0_84, %c0_85] : memref<1x4xf32, #tpu.memory_space<vmem>>, vector<1x4xf32>
    %125 = vector.broadcast %124 : vector<1x4xf32> to vector<16x4xf32>
    %126 = arith.addf %123, %125 : vector<16x4xf32>
    %cst_86 = arith.constant 0.000000e+00 : f32
    %127 = vector.broadcast %cst_86 : f32 to vector<16x4xf32>
    %128 = arith.maximumf %126, %127 : vector<16x4xf32>
    %129 = arith.addf %73, %128 : vector<16x4xf32>
    %cst_87 = arith.constant 0.000000e+00 : f32
    %130 = vector.broadcast %cst_87 : f32 to vector<8x4xf32>
    %131 = tpu.concatenate %130, %129, %130 in 0 : vector<8x4xf32>, vector<16x4xf32>, vector<8x4xf32> -> vector<32x4xf32>
    %cst_88 = arith.constant 0.000000e+00 : f32
    %132 = vector.broadcast %cst_88 : f32 to vector<16x4xf32>
    %133 = vector.extract_strided_slice %131 {offsets = [6, 0], sizes = [16, 4], strides = [1, 1]} : vector<32x4xf32> to vector<16x4xf32>
    %c0_89 = arith.constant 0 : index
    %c0_90 = arith.constant 0 : index
    %c0_91 = arith.constant 0 : index
    %134 = vector.load %arg11[%c0_89, %c0_90, %c0_91] : memref<3x4x4xbf16, #tpu.memory_space<vmem>>, vector<1x4x4xbf16>
    %135 = vector.shape_cast %134 : vector<1x4x4xbf16> to vector<4x4xbf16>
    %136 = arith.truncf %133 : vector<16x4xf32> to vector<16x4xbf16>
    %cst_92 = arith.constant dense<0.000000e+00> : vector<16x4xf32>
    %137 = tpu.matmul %136, %135, %cst_92 {dimension_numbers = #tpu.dot_dimension_numbers<[1], [0], [0], [1], [0, 0, 1, 1], [], []>} : vector<16x4xbf16>, vector<4x4xbf16>, vector<16x4xf32> -> vector<16x4xf32>
    %138 = arith.addf %132, %137 : vector<16x4xf32>
    %139 = vector.extract_strided_slice %131 {offsets = [8, 0], sizes = [16, 4], strides = [1, 1]} : vector<32x4xf32> to vector<16x4xf32>
    %c1_93 = arith.constant 1 : index
    %c0_94 = arith.constant 0 : index
    %c0_95 = arith.constant 0 : index
    %140 = vector.load %arg11[%c1_93, %c0_94, %c0_95] : memref<3x4x4xbf16, #tpu.memory_space<vmem>>, vector<1x4x4xbf16>
    %141 = vector.shape_cast %140 : vector<1x4x4xbf16> to vector<4x4xbf16>
    %142 = arith.truncf %139 : vector<16x4xf32> to vector<16x4xbf16>
    %cst_96 = arith.constant dense<0.000000e+00> : vector<16x4xf32>
    %143 = tpu.matmul %142, %141, %cst_96 {dimension_numbers = #tpu.dot_dimension_numbers<[1], [0], [0], [1], [0, 0, 1, 1], [], []>} : vector<16x4xbf16>, vector<4x4xbf16>, vector<16x4xf32> -> vector<16x4xf32>
    %144 = arith.addf %138, %143 : vector<16x4xf32>
    %145 = vector.extract_strided_slice %131 {offsets = [10, 0], sizes = [16, 4], strides = [1, 1]} : vector<32x4xf32> to vector<16x4xf32>
    %c2_97 = arith.constant 2 : index
    %c0_98 = arith.constant 0 : index
    %c0_99 = arith.constant 0 : index
    %146 = vector.load %arg11[%c2_97, %c0_98, %c0_99] : memref<3x4x4xbf16, #tpu.memory_space<vmem>>, vector<1x4x4xbf16>
    %147 = vector.shape_cast %146 : vector<1x4x4xbf16> to vector<4x4xbf16>
    %148 = arith.truncf %145 : vector<16x4xf32> to vector<16x4xbf16>
    %cst_100 = arith.constant dense<0.000000e+00> : vector<16x4xf32>
    %149 = tpu.matmul %148, %147, %cst_100 {dimension_numbers = #tpu.dot_dimension_numbers<[1], [0], [0], [1], [0, 0, 1, 1], [], []>} : vector<16x4xbf16>, vector<4x4xbf16>, vector<16x4xf32> -> vector<16x4xf32>
    %150 = arith.addf %144, %149 : vector<16x4xf32>
    %c0_101 = arith.constant 0 : index
    %c0_102 = arith.constant 0 : index
    %151 = vector.load %arg12[%c0_101, %c0_102] : memref<1x4xf32, #tpu.memory_space<vmem>>, vector<1x4xf32>
    %152 = vector.broadcast %151 : vector<1x4xf32> to vector<16x4xf32>
    %153 = arith.addf %150, %152 : vector<16x4xf32>
    %cst_103 = arith.constant 0.000000e+00 : f32
    %154 = vector.broadcast %cst_103 : f32 to vector<16x4xf32>
    %155 = arith.maximumf %153, %154 : vector<16x4xf32>
    %156 = tpu.concatenate %49, %101, %128, %155 in 1 : vector<16x4xf32>, vector<16x4xf32>, vector<16x4xf32>, vector<16x4xf32> -> vector<16x16xf32>
    %c0_104 = arith.constant 0 : index
    %c0_105 = arith.constant 0 : index
    %157 = vector.load %arg13[%c0_104, %c0_105] : memref<16x8xbf16, #tpu.memory_space<vmem>>, vector<16x8xbf16>
    %c0_106 = arith.constant 0 : index
    %c0_107 = arith.constant 0 : index
    %158 = vector.load %arg14[%c0_106, %c0_107] : memref<1x8xf32, #tpu.memory_space<vmem>>, vector<1x8xf32>
    %c0_108 = arith.constant 0 : index
    %c0_109 = arith.constant 0 : index
    %159 = vector.load %arg15[%c0_108, %c0_109] : memref<8x16xbf16, #tpu.memory_space<vmem>>, vector<8x16xbf16>
    %c0_110 = arith.constant 0 : index
    %c0_111 = arith.constant 0 : index
    %160 = vector.load %arg16[%c0_110, %c0_111] : memref<1x16xf32, #tpu.memory_space<vmem>>, vector<1x16xf32>
    %c0_112 = arith.constant 0 : index
    %c0_113 = arith.constant 0 : index
    %161 = vector.load %arg17[%c0_112, %c0_113] : memref<1x16xf32, #tpu.memory_space<vmem>>, vector<1x16xf32>
    %c0_114 = arith.constant 0 : index
    %c0_115 = arith.constant 0 : index
    %162 = vector.load %arg18[%c0_114, %c0_115] : memref<1x16xf32, #tpu.memory_space<vmem>>, vector<1x16xf32>
    %cst_116 = arith.constant dense<0.000000e+00> : vector<16xf32>
    %163 = vector.multi_reduction <add>, %156, %cst_116 [0] : vector<16x16xf32> to vector<16xf32>
    %164 = vector.shape_cast %163 : vector<16xf32> to vector<1x16xf32>
    %cst_117 = arith.constant 1.600000e+01 : f32
    %165 = vector.broadcast %cst_117 : f32 to vector<1x16xf32>
    %166 = arith.divf %164, %165 : vector<1x16xf32>
    %167 = arith.truncf %166 : vector<1x16xf32> to vector<1x16xbf16>
    %cst_118 = arith.constant dense<0.000000e+00> : vector<1x8xf32>
    %168 = tpu.matmul %167, %157, %cst_118 {dimension_numbers = #tpu.dot_dimension_numbers<[1], [0], [0], [1], [0, 0, 1, 1], [], []>} : vector<1x16xbf16>, vector<16x8xbf16>, vector<1x8xf32> -> vector<1x8xf32>
    %169 = arith.addf %168, %158 : vector<1x8xf32>
    %cst_119 = arith.constant 0.000000e+00 : f32
    %170 = vector.broadcast %cst_119 : f32 to vector<1x8xf32>
    %171 = arith.maximumf %169, %170 : vector<1x8xf32>
    %172 = arith.truncf %171 : vector<1x8xf32> to vector<1x8xbf16>
    %cst_120 = arith.constant dense<0.000000e+00> : vector<1x16xf32>
    %173 = tpu.matmul %172, %159, %cst_120 {dimension_numbers = #tpu.dot_dimension_numbers<[1], [0], [0], [1], [0, 0, 1, 1], [], []>} : vector<1x8xbf16>, vector<8x16xbf16>, vector<1x16xf32> -> vector<1x16xf32>
    %174 = arith.addf %173, %160 : vector<1x16xf32>
    %175 = arith.negf %174 : vector<1x16xf32>
    %176 = math.exp %175 : vector<1x16xf32>
    %cst_121 = arith.constant 1.000000e+00 : f32
    %177 = vector.broadcast %cst_121 : f32 to vector<1x16xf32>
    %178 = arith.addf %177, %176 : vector<1x16xf32>
    %179 = arith.divf %177, %178 : vector<1x16xf32>
    %180 = vector.broadcast %179 : vector<1x16xf32> to vector<16x16xf32>
    %181 = arith.mulf %156, %180 : vector<16x16xf32>
    %182 = vector.broadcast %161 : vector<1x16xf32> to vector<16x16xf32>
    %183 = arith.mulf %181, %182 : vector<16x16xf32>
    %184 = vector.broadcast %162 : vector<1x16xf32> to vector<16x16xf32>
    %185 = arith.addf %183, %184 : vector<16x16xf32>
    %cst_122 = arith.constant 0.000000e+00 : f32
    %186 = vector.broadcast %cst_122 : f32 to vector<16x16xf32>
    %187 = arith.maximumf %185, %186 : vector<16x16xf32>
    %188 = arith.addf %187, %74 : vector<16x16xf32>
    %c0_123 = arith.constant 0 : index
    %c0_124 = arith.constant 0 : index
    %c0_125 = arith.constant 0 : index
    %189 = vector.load %arg19[%c0_123, %c0_124, %c0_125] : memref<4x16x4xbf16, #tpu.memory_space<vmem>>, vector<1x16x4xbf16>
    %190 = vector.shape_cast %189 : vector<1x16x4xbf16> to vector<16x4xbf16>
    %191 = arith.truncf %188 : vector<16x16xf32> to vector<16x16xbf16>
    %cst_126 = arith.constant dense<0.000000e+00> : vector<16x4xf32>
    %192 = tpu.matmul %191, %190, %cst_126 {dimension_numbers = #tpu.dot_dimension_numbers<[1], [0], [0], [1], [0, 0, 1, 1], [], []>} : vector<16x16xbf16>, vector<16x4xbf16>, vector<16x4xf32> -> vector<16x4xf32>
    %c0_127 = arith.constant 0 : index
    %c0_128 = arith.constant 0 : index
    %c0_129 = arith.constant 0 : index
    %193 = vector.load %arg20[%c0_127, %c0_128, %c0_129] : memref<4x1x4xf32, #tpu.memory_space<vmem>>, vector<1x1x4xf32>
    %194 = vector.shape_cast %193 : vector<1x1x4xf32> to vector<1x4xf32>
    %195 = vector.broadcast %194 : vector<1x4xf32> to vector<16x4xf32>
    %196 = arith.addf %192, %195 : vector<16x4xf32>
    %c1_130 = arith.constant 1 : index
    %c0_131 = arith.constant 0 : index
    %c0_132 = arith.constant 0 : index
    %197 = vector.load %arg19[%c1_130, %c0_131, %c0_132] : memref<4x16x4xbf16, #tpu.memory_space<vmem>>, vector<1x16x4xbf16>
    %198 = vector.shape_cast %197 : vector<1x16x4xbf16> to vector<16x4xbf16>
    %199 = arith.truncf %188 : vector<16x16xf32> to vector<16x16xbf16>
    %cst_133 = arith.constant dense<0.000000e+00> : vector<16x4xf32>
    %200 = tpu.matmul %199, %198, %cst_133 {dimension_numbers = #tpu.dot_dimension_numbers<[1], [0], [0], [1], [0, 0, 1, 1], [], []>} : vector<16x16xbf16>, vector<16x4xbf16>, vector<16x4xf32> -> vector<16x4xf32>
    %c1_134 = arith.constant 1 : index
    %c0_135 = arith.constant 0 : index
    %c0_136 = arith.constant 0 : index
    %201 = vector.load %arg20[%c1_134, %c0_135, %c0_136] : memref<4x1x4xf32, #tpu.memory_space<vmem>>, vector<1x1x4xf32>
    %202 = vector.shape_cast %201 : vector<1x1x4xf32> to vector<1x4xf32>
    %203 = vector.broadcast %202 : vector<1x4xf32> to vector<16x4xf32>
    %204 = arith.addf %200, %203 : vector<16x4xf32>
    %c2_137 = arith.constant 2 : index
    %c0_138 = arith.constant 0 : index
    %c0_139 = arith.constant 0 : index
    %205 = vector.load %arg19[%c2_137, %c0_138, %c0_139] : memref<4x16x4xbf16, #tpu.memory_space<vmem>>, vector<1x16x4xbf16>
    %206 = vector.shape_cast %205 : vector<1x16x4xbf16> to vector<16x4xbf16>
    %207 = arith.truncf %188 : vector<16x16xf32> to vector<16x16xbf16>
    %cst_140 = arith.constant dense<0.000000e+00> : vector<16x4xf32>
    %208 = tpu.matmul %207, %206, %cst_140 {dimension_numbers = #tpu.dot_dimension_numbers<[1], [0], [0], [1], [0, 0, 1, 1], [], []>} : vector<16x16xbf16>, vector<16x4xbf16>, vector<16x4xf32> -> vector<16x4xf32>
    %c2_141 = arith.constant 2 : index
    %c0_142 = arith.constant 0 : index
    %c0_143 = arith.constant 0 : index
    %209 = vector.load %arg20[%c2_141, %c0_142, %c0_143] : memref<4x1x4xf32, #tpu.memory_space<vmem>>, vector<1x1x4xf32>
    %210 = vector.shape_cast %209 : vector<1x1x4xf32> to vector<1x4xf32>
    %211 = vector.broadcast %210 : vector<1x4xf32> to vector<16x4xf32>
    %212 = arith.addf %208, %211 : vector<16x4xf32>
    %c3_144 = arith.constant 3 : index
    %c0_145 = arith.constant 0 : index
    %c0_146 = arith.constant 0 : index
    %213 = vector.load %arg19[%c3_144, %c0_145, %c0_146] : memref<4x16x4xbf16, #tpu.memory_space<vmem>>, vector<1x16x4xbf16>
    %214 = vector.shape_cast %213 : vector<1x16x4xbf16> to vector<16x4xbf16>
    %215 = arith.truncf %188 : vector<16x16xf32> to vector<16x16xbf16>
    %cst_147 = arith.constant dense<0.000000e+00> : vector<16x4xf32>
    %216 = tpu.matmul %215, %214, %cst_147 {dimension_numbers = #tpu.dot_dimension_numbers<[1], [0], [0], [1], [0, 0, 1, 1], [], []>} : vector<16x16xbf16>, vector<16x4xbf16>, vector<16x4xf32> -> vector<16x4xf32>
    %c3_148 = arith.constant 3 : index
    %c0_149 = arith.constant 0 : index
    %c0_150 = arith.constant 0 : index
    %217 = vector.load %arg20[%c3_148, %c0_149, %c0_150] : memref<4x1x4xf32, #tpu.memory_space<vmem>>, vector<1x1x4xf32>
    %218 = vector.shape_cast %217 : vector<1x1x4xf32> to vector<1x4xf32>
    %219 = vector.broadcast %218 : vector<1x4xf32> to vector<16x4xf32>
    %220 = arith.addf %216, %219 : vector<16x4xf32>
    %221 = tpu.concatenate %196, %204, %212, %220 in 1 : vector<16x4xf32>, vector<16x4xf32>, vector<16x4xf32>, vector<16x4xf32> -> vector<16x16xf32>
    %222 = arith.addf %204, %196 : vector<16x4xf32>
    %cst_151 = arith.constant 0.000000e+00 : f32
    %223 = vector.broadcast %cst_151 : f32 to vector<8x4xf32>
    %224 = tpu.concatenate %223, %222, %223 in 0 : vector<8x4xf32>, vector<16x4xf32>, vector<8x4xf32> -> vector<32x4xf32>
    %cst_152 = arith.constant 0.000000e+00 : f32
    %225 = vector.broadcast %cst_152 : f32 to vector<16x4xf32>
    %226 = vector.extract_strided_slice %224 {offsets = [5, 0], sizes = [16, 4], strides = [1, 1]} : vector<32x4xf32> to vector<16x4xf32>
    %c0_153 = arith.constant 0 : index
    %c0_154 = arith.constant 0 : index
    %c0_155 = arith.constant 0 : index
    %227 = vector.load %arg21[%c0_153, %c0_154, %c0_155] : memref<3x4x4xbf16, #tpu.memory_space<vmem>>, vector<1x4x4xbf16>
    %228 = vector.shape_cast %227 : vector<1x4x4xbf16> to vector<4x4xbf16>
    %229 = arith.truncf %226 : vector<16x4xf32> to vector<16x4xbf16>
    %cst_156 = arith.constant dense<0.000000e+00> : vector<16x4xf32>
    %230 = tpu.matmul %229, %228, %cst_156 {dimension_numbers = #tpu.dot_dimension_numbers<[1], [0], [0], [1], [0, 0, 1, 1], [], []>} : vector<16x4xbf16>, vector<4x4xbf16>, vector<16x4xf32> -> vector<16x4xf32>
    %231 = arith.addf %225, %230 : vector<16x4xf32>
    %232 = vector.extract_strided_slice %224 {offsets = [8, 0], sizes = [16, 4], strides = [1, 1]} : vector<32x4xf32> to vector<16x4xf32>
    %c1_157 = arith.constant 1 : index
    %c0_158 = arith.constant 0 : index
    %c0_159 = arith.constant 0 : index
    %233 = vector.load %arg21[%c1_157, %c0_158, %c0_159] : memref<3x4x4xbf16, #tpu.memory_space<vmem>>, vector<1x4x4xbf16>
    %234 = vector.shape_cast %233 : vector<1x4x4xbf16> to vector<4x4xbf16>
    %235 = arith.truncf %232 : vector<16x4xf32> to vector<16x4xbf16>
    %cst_160 = arith.constant dense<0.000000e+00> : vector<16x4xf32>
    %236 = tpu.matmul %235, %234, %cst_160 {dimension_numbers = #tpu.dot_dimension_numbers<[1], [0], [0], [1], [0, 0, 1, 1], [], []>} : vector<16x4xbf16>, vector<4x4xbf16>, vector<16x4xf32> -> vector<16x4xf32>
    %237 = arith.addf %231, %236 : vector<16x4xf32>
    %238 = vector.extract_strided_slice %224 {offsets = [11, 0], sizes = [16, 4], strides = [1, 1]} : vector<32x4xf32> to vector<16x4xf32>
    %c2_161 = arith.constant 2 : index
    %c0_162 = arith.constant 0 : index
    %c0_163 = arith.constant 0 : index
    %239 = vector.load %arg21[%c2_161, %c0_162, %c0_163] : memref<3x4x4xbf16, #tpu.memory_space<vmem>>, vector<1x4x4xbf16>
    %240 = vector.shape_cast %239 : vector<1x4x4xbf16> to vector<4x4xbf16>
    %241 = arith.truncf %238 : vector<16x4xf32> to vector<16x4xbf16>
    %cst_164 = arith.constant dense<0.000000e+00> : vector<16x4xf32>
    %242 = tpu.matmul %241, %240, %cst_164 {dimension_numbers = #tpu.dot_dimension_numbers<[1], [0], [0], [1], [0, 0, 1, 1], [], []>} : vector<16x4xbf16>, vector<4x4xbf16>, vector<16x4xf32> -> vector<16x4xf32>
    %243 = arith.addf %237, %242 : vector<16x4xf32>
    %c0_165 = arith.constant 0 : index
    %c0_166 = arith.constant 0 : index
    %244 = vector.load %arg22[%c0_165, %c0_166] : memref<1x4xf32, #tpu.memory_space<vmem>>, vector<1x4xf32>
    %245 = vector.broadcast %244 : vector<1x4xf32> to vector<16x4xf32>
    %246 = arith.addf %243, %245 : vector<16x4xf32>
    %cst_167 = arith.constant 0.000000e+00 : f32
    %247 = vector.broadcast %cst_167 : f32 to vector<16x4xf32>
    %248 = arith.maximumf %246, %247 : vector<16x4xf32>
    %249 = arith.addf %212, %248 : vector<16x4xf32>
    %cst_168 = arith.constant 0.000000e+00 : f32
    %250 = vector.broadcast %cst_168 : f32 to vector<8x4xf32>
    %251 = tpu.concatenate %250, %249, %250 in 0 : vector<8x4xf32>, vector<16x4xf32>, vector<8x4xf32> -> vector<32x4xf32>
    %cst_169 = arith.constant 0.000000e+00 : f32
    %252 = vector.broadcast %cst_169 : f32 to vector<16x4xf32>
    %253 = vector.extract_strided_slice %251 {offsets = [5, 0], sizes = [16, 4], strides = [1, 1]} : vector<32x4xf32> to vector<16x4xf32>
    %c0_170 = arith.constant 0 : index
    %c0_171 = arith.constant 0 : index
    %c0_172 = arith.constant 0 : index
    %254 = vector.load %arg23[%c0_170, %c0_171, %c0_172] : memref<3x4x4xbf16, #tpu.memory_space<vmem>>, vector<1x4x4xbf16>
    %255 = vector.shape_cast %254 : vector<1x4x4xbf16> to vector<4x4xbf16>
    %256 = arith.truncf %253 : vector<16x4xf32> to vector<16x4xbf16>
    %cst_173 = arith.constant dense<0.000000e+00> : vector<16x4xf32>
    %257 = tpu.matmul %256, %255, %cst_173 {dimension_numbers = #tpu.dot_dimension_numbers<[1], [0], [0], [1], [0, 0, 1, 1], [], []>} : vector<16x4xbf16>, vector<4x4xbf16>, vector<16x4xf32> -> vector<16x4xf32>
    %258 = arith.addf %252, %257 : vector<16x4xf32>
    %259 = vector.extract_strided_slice %251 {offsets = [8, 0], sizes = [16, 4], strides = [1, 1]} : vector<32x4xf32> to vector<16x4xf32>
    %c1_174 = arith.constant 1 : index
    %c0_175 = arith.constant 0 : index
    %c0_176 = arith.constant 0 : index
    %260 = vector.load %arg23[%c1_174, %c0_175, %c0_176] : memref<3x4x4xbf16, #tpu.memory_space<vmem>>, vector<1x4x4xbf16>
    %261 = vector.shape_cast %260 : vector<1x4x4xbf16> to vector<4x4xbf16>
    %262 = arith.truncf %259 : vector<16x4xf32> to vector<16x4xbf16>
    %cst_177 = arith.constant dense<0.000000e+00> : vector<16x4xf32>
    %263 = tpu.matmul %262, %261, %cst_177 {dimension_numbers = #tpu.dot_dimension_numbers<[1], [0], [0], [1], [0, 0, 1, 1], [], []>} : vector<16x4xbf16>, vector<4x4xbf16>, vector<16x4xf32> -> vector<16x4xf32>
    %264 = arith.addf %258, %263 : vector<16x4xf32>
    %265 = vector.extract_strided_slice %251 {offsets = [11, 0], sizes = [16, 4], strides = [1, 1]} : vector<32x4xf32> to vector<16x4xf32>
    %c2_178 = arith.constant 2 : index
    %c0_179 = arith.constant 0 : index
    %c0_180 = arith.constant 0 : index
    %266 = vector.load %arg23[%c2_178, %c0_179, %c0_180] : memref<3x4x4xbf16, #tpu.memory_space<vmem>>, vector<1x4x4xbf16>
    %267 = vector.shape_cast %266 : vector<1x4x4xbf16> to vector<4x4xbf16>
    %268 = arith.truncf %265 : vector<16x4xf32> to vector<16x4xbf16>
    %cst_181 = arith.constant dense<0.000000e+00> : vector<16x4xf32>
    %269 = tpu.matmul %268, %267, %cst_181 {dimension_numbers = #tpu.dot_dimension_numbers<[1], [0], [0], [1], [0, 0, 1, 1], [], []>} : vector<16x4xbf16>, vector<4x4xbf16>, vector<16x4xf32> -> vector<16x4xf32>
    %270 = arith.addf %264, %269 : vector<16x4xf32>
    %c0_182 = arith.constant 0 : index
    %c0_183 = arith.constant 0 : index
    %271 = vector.load %arg24[%c0_182, %c0_183] : memref<1x4xf32, #tpu.memory_space<vmem>>, vector<1x4xf32>
    %272 = vector.broadcast %271 : vector<1x4xf32> to vector<16x4xf32>
    %273 = arith.addf %270, %272 : vector<16x4xf32>
    %cst_184 = arith.constant 0.000000e+00 : f32
    %274 = vector.broadcast %cst_184 : f32 to vector<16x4xf32>
    %275 = arith.maximumf %273, %274 : vector<16x4xf32>
    %276 = arith.addf %220, %275 : vector<16x4xf32>
    %cst_185 = arith.constant 0.000000e+00 : f32
    %277 = vector.broadcast %cst_185 : f32 to vector<8x4xf32>
    %278 = tpu.concatenate %277, %276, %277 in 0 : vector<8x4xf32>, vector<16x4xf32>, vector<8x4xf32> -> vector<32x4xf32>
    %cst_186 = arith.constant 0.000000e+00 : f32
    %279 = vector.broadcast %cst_186 : f32 to vector<16x4xf32>
    %280 = vector.extract_strided_slice %278 {offsets = [5, 0], sizes = [16, 4], strides = [1, 1]} : vector<32x4xf32> to vector<16x4xf32>
    %c0_187 = arith.constant 0 : index
    %c0_188 = arith.constant 0 : index
    %c0_189 = arith.constant 0 : index
    %281 = vector.load %arg25[%c0_187, %c0_188, %c0_189] : memref<3x4x4xbf16, #tpu.memory_space<vmem>>, vector<1x4x4xbf16>
    %282 = vector.shape_cast %281 : vector<1x4x4xbf16> to vector<4x4xbf16>
    %283 = arith.truncf %280 : vector<16x4xf32> to vector<16x4xbf16>
    %cst_190 = arith.constant dense<0.000000e+00> : vector<16x4xf32>
    %284 = tpu.matmul %283, %282, %cst_190 {dimension_numbers = #tpu.dot_dimension_numbers<[1], [0], [0], [1], [0, 0, 1, 1], [], []>} : vector<16x4xbf16>, vector<4x4xbf16>, vector<16x4xf32> -> vector<16x4xf32>
    %285 = arith.addf %279, %284 : vector<16x4xf32>
    %286 = vector.extract_strided_slice %278 {offsets = [8, 0], sizes = [16, 4], strides = [1, 1]} : vector<32x4xf32> to vector<16x4xf32>
    %c1_191 = arith.constant 1 : index
    %c0_192 = arith.constant 0 : index
    %c0_193 = arith.constant 0 : index
    %287 = vector.load %arg25[%c1_191, %c0_192, %c0_193] : memref<3x4x4xbf16, #tpu.memory_space<vmem>>, vector<1x4x4xbf16>
    %288 = vector.shape_cast %287 : vector<1x4x4xbf16> to vector<4x4xbf16>
    %289 = arith.truncf %286 : vector<16x4xf32> to vector<16x4xbf16>
    %cst_194 = arith.constant dense<0.000000e+00> : vector<16x4xf32>
    %290 = tpu.matmul %289, %288, %cst_194 {dimension_numbers = #tpu.dot_dimension_numbers<[1], [0], [0], [1], [0, 0, 1, 1], [], []>} : vector<16x4xbf16>, vector<4x4xbf16>, vector<16x4xf32> -> vector<16x4xf32>
    %291 = arith.addf %285, %290 : vector<16x4xf32>
    %292 = vector.extract_strided_slice %278 {offsets = [11, 0], sizes = [16, 4], strides = [1, 1]} : vector<32x4xf32> to vector<16x4xf32>
    %c2_195 = arith.constant 2 : index
    %c0_196 = arith.constant 0 : index
    %c0_197 = arith.constant 0 : index
    %293 = vector.load %arg25[%c2_195, %c0_196, %c0_197] : memref<3x4x4xbf16, #tpu.memory_space<vmem>>, vector<1x4x4xbf16>
    %294 = vector.shape_cast %293 : vector<1x4x4xbf16> to vector<4x4xbf16>
    %295 = arith.truncf %292 : vector<16x4xf32> to vector<16x4xbf16>
    %cst_198 = arith.constant dense<0.000000e+00> : vector<16x4xf32>
    %296 = tpu.matmul %295, %294, %cst_198 {dimension_numbers = #tpu.dot_dimension_numbers<[1], [0], [0], [1], [0, 0, 1, 1], [], []>} : vector<16x4xbf16>, vector<4x4xbf16>, vector<16x4xf32> -> vector<16x4xf32>
    %297 = arith.addf %291, %296 : vector<16x4xf32>
    %c0_199 = arith.constant 0 : index
    %c0_200 = arith.constant 0 : index
    %298 = vector.load %arg26[%c0_199, %c0_200] : memref<1x4xf32, #tpu.memory_space<vmem>>, vector<1x4xf32>
    %299 = vector.broadcast %298 : vector<1x4xf32> to vector<16x4xf32>
    %300 = arith.addf %297, %299 : vector<16x4xf32>
    %cst_201 = arith.constant 0.000000e+00 : f32
    %301 = vector.broadcast %cst_201 : f32 to vector<16x4xf32>
    %302 = arith.maximumf %300, %301 : vector<16x4xf32>
    %303 = tpu.concatenate %196, %248, %275, %302 in 1 : vector<16x4xf32>, vector<16x4xf32>, vector<16x4xf32>, vector<16x4xf32> -> vector<16x16xf32>
    %c0_202 = arith.constant 0 : index
    %c0_203 = arith.constant 0 : index
    %304 = vector.load %arg27[%c0_202, %c0_203] : memref<16x8xbf16, #tpu.memory_space<vmem>>, vector<16x8xbf16>
    %c0_204 = arith.constant 0 : index
    %c0_205 = arith.constant 0 : index
    %305 = vector.load %arg28[%c0_204, %c0_205] : memref<1x8xf32, #tpu.memory_space<vmem>>, vector<1x8xf32>
    %c0_206 = arith.constant 0 : index
    %c0_207 = arith.constant 0 : index
    %306 = vector.load %arg29[%c0_206, %c0_207] : memref<8x16xbf16, #tpu.memory_space<vmem>>, vector<8x16xbf16>
    %c0_208 = arith.constant 0 : index
    %c0_209 = arith.constant 0 : index
    %307 = vector.load %arg30[%c0_208, %c0_209] : memref<1x16xf32, #tpu.memory_space<vmem>>, vector<1x16xf32>
    %c0_210 = arith.constant 0 : index
    %c0_211 = arith.constant 0 : index
    %308 = vector.load %arg31[%c0_210, %c0_211] : memref<1x16xf32, #tpu.memory_space<vmem>>, vector<1x16xf32>
    %c0_212 = arith.constant 0 : index
    %c0_213 = arith.constant 0 : index
    %309 = vector.load %arg32[%c0_212, %c0_213] : memref<1x16xf32, #tpu.memory_space<vmem>>, vector<1x16xf32>
    %cst_214 = arith.constant dense<0.000000e+00> : vector<16xf32>
    %310 = vector.multi_reduction <add>, %303, %cst_214 [0] : vector<16x16xf32> to vector<16xf32>
    %311 = vector.shape_cast %310 : vector<16xf32> to vector<1x16xf32>
    %cst_215 = arith.constant 1.600000e+01 : f32
    %312 = vector.broadcast %cst_215 : f32 to vector<1x16xf32>
    %313 = arith.divf %311, %312 : vector<1x16xf32>
    %314 = arith.truncf %313 : vector<1x16xf32> to vector<1x16xbf16>
    %cst_216 = arith.constant dense<0.000000e+00> : vector<1x8xf32>
    %315 = tpu.matmul %314, %304, %cst_216 {dimension_numbers = #tpu.dot_dimension_numbers<[1], [0], [0], [1], [0, 0, 1, 1], [], []>} : vector<1x16xbf16>, vector<16x8xbf16>, vector<1x8xf32> -> vector<1x8xf32>
    %316 = arith.addf %315, %305 : vector<1x8xf32>
    %cst_217 = arith.constant 0.000000e+00 : f32
    %317 = vector.broadcast %cst_217 : f32 to vector<1x8xf32>
    %318 = arith.maximumf %316, %317 : vector<1x8xf32>
    %319 = arith.truncf %318 : vector<1x8xf32> to vector<1x8xbf16>
    %cst_218 = arith.constant dense<0.000000e+00> : vector<1x16xf32>
    %320 = tpu.matmul %319, %306, %cst_218 {dimension_numbers = #tpu.dot_dimension_numbers<[1], [0], [0], [1], [0, 0, 1, 1], [], []>} : vector<1x8xbf16>, vector<8x16xbf16>, vector<1x16xf32> -> vector<1x16xf32>
    %321 = arith.addf %320, %307 : vector<1x16xf32>
    %322 = arith.negf %321 : vector<1x16xf32>
    %323 = math.exp %322 : vector<1x16xf32>
    %cst_219 = arith.constant 1.000000e+00 : f32
    %324 = vector.broadcast %cst_219 : f32 to vector<1x16xf32>
    %325 = arith.addf %324, %323 : vector<1x16xf32>
    %326 = arith.divf %324, %325 : vector<1x16xf32>
    %327 = vector.broadcast %326 : vector<1x16xf32> to vector<16x16xf32>
    %328 = arith.mulf %303, %327 : vector<16x16xf32>
    %329 = vector.broadcast %308 : vector<1x16xf32> to vector<16x16xf32>
    %330 = arith.mulf %328, %329 : vector<16x16xf32>
    %331 = vector.broadcast %309 : vector<1x16xf32> to vector<16x16xf32>
    %332 = arith.addf %330, %331 : vector<16x16xf32>
    %cst_220 = arith.constant 0.000000e+00 : f32
    %333 = vector.broadcast %cst_220 : f32 to vector<16x16xf32>
    %334 = arith.maximumf %332, %333 : vector<16x16xf32>
    %335 = arith.addf %334, %221 : vector<16x16xf32>
    %c0_221 = arith.constant 0 : index
    %c0_222 = arith.constant 0 : index
    %336 = vector.load %arg33[%c0_221, %c0_222] : memref<16x16xbf16, #tpu.memory_space<vmem>>, vector<16x16xbf16>
    %c0_223 = arith.constant 0 : index
    %c0_224 = arith.constant 0 : index
    %337 = vector.load %arg34[%c0_223, %c0_224] : memref<16x16xbf16, #tpu.memory_space<vmem>>, vector<16x16xbf16>
    %c0_225 = arith.constant 0 : index
    %c0_226 = arith.constant 0 : index
    %338 = vector.load %arg35[%c0_225, %c0_226] : memref<16x16xbf16, #tpu.memory_space<vmem>>, vector<16x16xbf16>
    %c0_227 = arith.constant 0 : index
    %c0_228 = arith.constant 0 : index
    %339 = vector.load %arg36[%c0_227, %c0_228] : memref<1x16xf32, #tpu.memory_space<vmem>>, vector<1x16xf32>
    %c0_229 = arith.constant 0 : index
    %c0_230 = arith.constant 0 : index
    %340 = vector.load %arg37[%c0_229, %c0_230] : memref<16x16xbf16, #tpu.memory_space<vmem>>, vector<16x16xbf16>
    %c0_231 = arith.constant 0 : index
    %c0_232 = arith.constant 0 : index
    %341 = vector.load %arg38[%c0_231, %c0_232] : memref<1x16xf32, #tpu.memory_space<vmem>>, vector<1x16xf32>
    %342 = arith.truncf %335 : vector<16x16xf32> to vector<16x16xbf16>
    %cst_233 = arith.constant dense<0.000000e+00> : vector<16x16xf32>
    %343 = tpu.matmul %342, %336, %cst_233 {dimension_numbers = #tpu.dot_dimension_numbers<[1], [0], [0], [1], [0, 0, 1, 1], [], []>} : vector<16x16xbf16>, vector<16x16xbf16>, vector<16x16xf32> -> vector<16x16xf32>
    %344 = vector.broadcast %339 : vector<1x16xf32> to vector<16x16xf32>
    %345 = arith.addf %343, %344 : vector<16x16xf32>
    %cst_234 = arith.constant dense<0.000000e+00> : vector<16xf32>
    %346 = vector.multi_reduction <add>, %335, %cst_234 [0] : vector<16x16xf32> to vector<16xf32>
    %347 = vector.shape_cast %346 : vector<16xf32> to vector<1x16xf32>
    %cst_235 = arith.constant 1.600000e+01 : f32
    %348 = vector.broadcast %cst_235 : f32 to vector<1x16xf32>
    %349 = arith.divf %347, %348 : vector<1x16xf32>
    %350 = vector.broadcast %349 : vector<1x16xf32> to vector<16x16xf32>
    %351 = arith.subf %335, %350 : vector<16x16xf32>
    %352 = arith.mulf %351, %351 : vector<16x16xf32>
    %cst_236 = arith.constant dense<0.000000e+00> : vector<16xf32>
    %353 = vector.multi_reduction <add>, %352, %cst_236 [0] : vector<16x16xf32> to vector<16xf32>
    %354 = vector.shape_cast %353 : vector<16xf32> to vector<1x16xf32>
    %cst_237 = arith.constant 1.500000e+01 : f32
    %355 = vector.broadcast %cst_237 : f32 to vector<1x16xf32>
    %356 = arith.divf %354, %355 : vector<1x16xf32>
    %357 = math.sqrt %356 : vector<1x16xf32>
    %358 = arith.truncf %349 : vector<1x16xf32> to vector<1x16xbf16>
    %cst_238 = arith.constant dense<0.000000e+00> : vector<1x16xf32>
    %359 = tpu.matmul %358, %337, %cst_238 {dimension_numbers = #tpu.dot_dimension_numbers<[1], [0], [0], [1], [0, 0, 1, 1], [], []>} : vector<1x16xbf16>, vector<16x16xbf16>, vector<1x16xf32> -> vector<1x16xf32>
    %360 = vector.broadcast %359 : vector<1x16xf32> to vector<16x16xf32>
    %361 = arith.addf %345, %360 : vector<16x16xf32>
    %362 = arith.truncf %357 : vector<1x16xf32> to vector<1x16xbf16>
    %cst_239 = arith.constant dense<0.000000e+00> : vector<1x16xf32>
    %363 = tpu.matmul %362, %338, %cst_239 {dimension_numbers = #tpu.dot_dimension_numbers<[1], [0], [0], [1], [0, 0, 1, 1], [], []>} : vector<1x16xbf16>, vector<16x16xbf16>, vector<1x16xf32> -> vector<1x16xf32>
    %364 = vector.broadcast %363 : vector<1x16xf32> to vector<16x16xf32>
    %365 = arith.addf %361, %364 : vector<16x16xf32>
    %366 = math.tanh %365 : vector<16x16xf32>
    %367 = arith.truncf %366 : vector<16x16xf32> to vector<16x16xbf16>
    %cst_240 = arith.constant dense<0.000000e+00> : vector<16x16xf32>
    %368 = tpu.matmul %367, %340, %cst_240 {dimension_numbers = #tpu.dot_dimension_numbers<[1], [0], [0], [1], [0, 0, 1, 1], [], []>} : vector<16x16xbf16>, vector<16x16xbf16>, vector<16x16xf32> -> vector<16x16xf32>
    %369 = vector.broadcast %341 : vector<1x16xf32> to vector<16x16xf32>
    %370 = arith.addf %368, %369 : vector<16x16xf32>
    %cst_241 = arith.constant 0.000000e+00 : f32
    %371 = vector.broadcast %cst_241 : f32 to vector<16x1xf32>
    %372 = arith.cmpf oeq, %3, %371 : vector<16x1xf32>
    %cst_242 = arith.constant -1.000000e+09 : f32
    %373 = vector.shape_cast %372 : vector<16x1xi1> to vector<16x1xi1>
    %374 = vector.broadcast %373 : vector<16x1xi1> to vector<16x16xi1>
    %375 = vector.broadcast %cst_242 : f32 to vector<16x16xf32>
    %376 = arith.select %374, %375, %370 : vector<16x16xi1>, vector<16x16xf32>
    %cst_243 = arith.constant dense<0xFF800000> : vector<16xf32>
    %377 = vector.multi_reduction <maximumf>, %376, %cst_243 [0] : vector<16x16xf32> to vector<16xf32>
    %378 = vector.shape_cast %377 : vector<16xf32> to vector<1x16xf32>
    %379 = vector.broadcast %378 : vector<1x16xf32> to vector<16x16xf32>
    %380 = arith.subf %376, %379 : vector<16x16xf32>
    %381 = math.exp %380 : vector<16x16xf32>
    %cst_244 = arith.constant dense<0.000000e+00> : vector<16xf32>
    %382 = vector.multi_reduction <add>, %381, %cst_244 [0] : vector<16x16xf32> to vector<16xf32>
    %383 = vector.shape_cast %382 : vector<16xf32> to vector<1x16xf32>
    %384 = tpu.reciprocal %383 {approx = true} : vector<1x16xf32> -> vector<1x16xf32>
    %385 = vector.broadcast %384 : vector<1x16xf32> to vector<16x16xf32>
    %386 = arith.mulf %381, %385 : vector<16x16xf32>
    %387 = arith.mulf %386, %335 : vector<16x16xf32>
    %cst_245 = arith.constant dense<0.000000e+00> : vector<16xf32>
    %388 = vector.multi_reduction <add>, %387, %cst_245 [0] : vector<16x16xf32> to vector<16xf32>
    %389 = vector.shape_cast %388 : vector<16xf32> to vector<1x16xf32>
    %390 = arith.mulf %386, %335 : vector<16x16xf32>
    %391 = arith.mulf %390, %335 : vector<16x16xf32>
    %cst_246 = arith.constant dense<0.000000e+00> : vector<16xf32>
    %392 = vector.multi_reduction <add>, %391, %cst_246 [0] : vector<16x16xf32> to vector<16xf32>
    %393 = vector.shape_cast %392 : vector<16xf32> to vector<1x16xf32>
    %394 = arith.mulf %389, %389 : vector<1x16xf32>
    %395 = arith.subf %393, %394 : vector<1x16xf32>
    %cst_247 = arith.constant 9.99999993E-9 : f32
    %396 = vector.broadcast %cst_247 : f32 to vector<1x16xf32>
    %397 = arith.maximumf %395, %396 : vector<1x16xf32>
    %398 = math.sqrt %397 : vector<1x16xf32>
    %399 = tpu.concatenate %389, %398 in 1 : vector<1x16xf32>, vector<1x16xf32> -> vector<1x32xf32>
    %c0_248 = arith.constant 0 : index
    %c0_249 = arith.constant 0 : index
    %400 = vector.load %arg39[%c0_248, %c0_249] : memref<32x128xbf16, #tpu.memory_space<vmem>>, vector<32x128xbf16>
    %c0_250 = arith.constant 0 : index
    %c0_251 = arith.constant 0 : index
    %401 = vector.load %arg40[%c0_250, %c0_251] : memref<1x128xf32, #tpu.memory_space<vmem>>, vector<1x128xf32>
    %402 = arith.truncf %399 : vector<1x32xf32> to vector<1x32xbf16>
    %cst_252 = arith.constant dense<0.000000e+00> : vector<1x128xf32>
    %403 = tpu.matmul %402, %400, %cst_252 {dimension_numbers = #tpu.dot_dimension_numbers<[1], [0], [0], [1], [0, 0, 1, 1], [], []>} : vector<1x32xbf16>, vector<32x128xbf16>, vector<1x128xf32> -> vector<1x128xf32>
    %404 = arith.addf %403, %401 : vector<1x128xf32>
    %cst_253 = arith.constant 0.000000e+00 : f32
    %405 = vector.broadcast %cst_253 : f32 to vector<1x128xf32>
    %406 = arith.maximumf %404, %405 : vector<1x128xf32>
    %c0_254 = arith.constant 0 : index
    %c0_255 = arith.constant 0 : index
    %c0_256 = arith.constant 0 : index
    %407 = vector.load %arg41[%c0_254, %c0_255, %c0_256] : memref<1x1x128xf32, #tpu.memory_space<vmem>>, vector<1x1x128xf32>
    %408 = vector.shape_cast %407 : vector<1x1x128xf32> to vector<1x128xf32>
    %409 = vector.shape_cast %406 : vector<1x128xf32> to vector<1x1x128xf32>
    tpu.vector_store %arg41[%c0_254, %c0_255, %c0_256], %409 {strides = array<i32>} : memref<1x1x128xf32, #tpu.memory_space<vmem>>, vector<1x1x128xf32>,
    return
  }
  func.func @transform_0(%arg0: i32) -> (i32, i32, i32) {
    %c0_i32 = arith.constant 0 : i32
    %c0_i32_0 = arith.constant 0 : i32
    %c0_i32_1 = arith.constant 0 : i32
    return %arg0, %c0_i32, %c0_i32_0 : i32, i32, i32
  }
  func.func @transform_1(%arg0: i32) -> (i32, i32, i32) {
    %c0_i32 = arith.constant 0 : i32
    %c0_i32_0 = arith.constant 0 : i32
    %c0_i32_1 = arith.constant 0 : i32
    return %arg0, %c0_i32, %c0_i32_0 : i32, i32, i32
  }
  func.func @transform_2(%arg0: i32) -> (i32, i32, i32) {
    %c0_i32 = arith.constant 0 : i32
    %c0_i32_0 = arith.constant 0 : i32
    %c0_i32_1 = arith.constant 0 : i32
    %c0_i32_2 = arith.constant 0 : i32
    return %c0_i32, %c0_i32_0, %c0_i32_1 : i32, i32, i32
  }
  func.func @transform_3(%arg0: i32) -> (i32, i32) {
    %c0_i32 = arith.constant 0 : i32
    %c0_i32_0 = arith.constant 0 : i32
    %c0_i32_1 = arith.constant 0 : i32
    return %c0_i32, %c0_i32_0 : i32, i32
  }
  func.func @transform_4(%arg0: i32) -> (i32, i32, i32) {
    %c0_i32 = arith.constant 0 : i32
    %c0_i32_0 = arith.constant 0 : i32
    %c0_i32_1 = arith.constant 0 : i32
    %c0_i32_2 = arith.constant 0 : i32
    return %c0_i32, %c0_i32_0, %c0_i32_1 : i32, i32, i32
  }
  func.func @transform_5(%arg0: i32) -> (i32, i32, i32) {
    %c0_i32 = arith.constant 0 : i32
    %c0_i32_0 = arith.constant 0 : i32
    %c0_i32_1 = arith.constant 0 : i32
    %c0_i32_2 = arith.constant 0 : i32
    return %c0_i32, %c0_i32_0, %c0_i32_1 : i32, i32, i32
  }
  func.func @transform_6(%arg0: i32) -> (i32, i32, i32) {
    %c0_i32 = arith.constant 0 : i32
    %c0_i32_0 = arith.constant 0 : i32
    %c0_i32_1 = arith.constant 0 : i32
    %c0_i32_2 = arith.constant 0 : i32
    return %c0_i32, %c0_i32_0, %c0_i32_1 : i32, i32, i32
  }
  func.func @transform_7(%arg0: i32) -> (i32, i32) {
    %c0_i32 = arith.constant 0 : i32
    %c0_i32_0 = arith.constant 0 : i32
    %c0_i32_1 = arith.constant 0 : i32
    return %c0_i32, %c0_i32_0 : i32, i32
  }
  func.func @transform_8(%arg0: i32) -> (i32, i32, i32) {
    %c0_i32 = arith.constant 0 : i32
    %c0_i32_0 = arith.constant 0 : i32
    %c0_i32_1 = arith.constant 0 : i32
    %c0_i32_2 = arith.constant 0 : i32
    return %c0_i32, %c0_i32_0, %c0_i32_1 : i32, i32, i32
  }
  func.func @transform_9(%arg0: i32) -> (i32, i32) {
    %c0_i32 = arith.constant 0 : i32
    %c0_i32_0 = arith.constant 0 : i32
    %c0_i32_1 = arith.constant 0 : i32
    return %c0_i32, %c0_i32_0 : i32, i32
  }
  func.func @transform_10(%arg0: i32) -> (i32, i32, i32) {
    %c0_i32 = arith.constant 0 : i32
    %c0_i32_0 = arith.constant 0 : i32
    %c0_i32_1 = arith.constant 0 : i32
    %c0_i32_2 = arith.constant 0 : i32
    return %c0_i32, %c0_i32_0, %c0_i32_1 : i32, i32, i32
  }
  func.func @transform_11(%arg0: i32) -> (i32, i32) {
    %c0_i32 = arith.constant 0 : i32
    %c0_i32_0 = arith.constant 0 : i32
    %c0_i32_1 = arith.constant 0 : i32
    return %c0_i32, %c0_i32_0 : i32, i32
  }
  func.func @transform_12(%arg0: i32) -> (i32, i32) {
    %c0_i32 = arith.constant 0 : i32
    %c0_i32_0 = arith.constant 0 : i32
    %c0_i32_1 = arith.constant 0 : i32
    return %c0_i32, %c0_i32_0 : i32, i32
  }
  func.func @transform_13(%arg0: i32) -> (i32, i32) {
    %c0_i32 = arith.constant 0 : i32
    %c0_i32_0 = arith.constant 0 : i32
    %c0_i32_1 = arith.constant 0 : i32
    return %c0_i32, %c0_i32_0 : i32, i32
  }
  func.func @transform_14(%arg0: i32) -> (i32, i32) {
    %c0_i32 = arith.constant 0 : i32
    %c0_i32_0 = arith.constant 0 : i32
    %c0_i32_1 = arith.constant 0 : i32
    return %c0_i32, %c0_i32_0 : i32, i32
  }
  func.func @transform_15(%arg0: i32) -> (i32, i32) {
    %c0_i32 = arith.constant 0 : i32
    %c0_i32_0 = arith.constant 0 : i32
    %c0_i32_1 = arith.constant 0 : i32
    return %c0_i32, %c0_i32_0 : i32, i32
  }
  func.func @transform_16(%arg0: i32) -> (i32, i32) {
    %c0_i32 = arith.constant 0 : i32
    %c0_i32_0 = arith.constant 0 : i32
    %c0_i32_1 = arith.constant 0 : i32
    return %c0_i32, %c0_i32_0 : i32, i32
  }
  func.func @transform_17(%arg0: i32) -> (i32, i32) {
    %c0_i32 = arith.constant 0 : i32
    %c0_i32_0 = arith.constant 0 : i32
    %c0_i32_1 = arith.constant 0 : i32
    return %c0_i32, %c0_i32_0 : i32, i32
  }
  func.func @transform_18(%arg0: i32) -> (i32, i32, i32) {
    %c0_i32 = arith.constant 0 : i32
    %c0_i32_0 = arith.constant 0 : i32
    %c0_i32_1 = arith.constant 0 : i32
    %c0_i32_2 = arith.constant 0 : i32
    return %c0_i32, %c0_i32_0, %c0_i32_1 : i32, i32, i32
  }
  func.func @transform_19(%arg0: i32) -> (i32, i32, i32) {
    %c0_i32 = arith.constant 0 : i32
    %c0_i32_0 = arith.constant 0 : i32
    %c0_i32_1 = arith.constant 0 : i32
    %c0_i32_2 = arith.constant 0 : i32
    return %c0_i32, %c0_i32_0, %c0_i32_1 : i32, i32, i32
  }
  func.func @transform_20(%arg0: i32) -> (i32, i32, i32) {
    %c0_i32 = arith.constant 0 : i32
    %c0_i32_0 = arith.constant 0 : i32
    %c0_i32_1 = arith.constant 0 : i32
    %c0_i32_2 = arith.constant 0 : i32
    return %c0_i32, %c0_i32_0, %c0_i32_1 : i32, i32, i32
  }
  func.func @transform_21(%arg0: i32) -> (i32, i32) {
    %c0_i32 = arith.constant 0 : i32
    %c0_i32_0 = arith.constant 0 : i32
    %c0_i32_1 = arith.constant 0 : i32
    return %c0_i32, %c0_i32_0 : i32, i32
  }
  func.func @transform_22(%arg0: i32) -> (i32, i32, i32) {
    %c0_i32 = arith.constant 0 : i32
    %c0_i32_0 = arith.constant 0 : i32
    %c0_i32_1 = arith.constant 0 : i32
    %c0_i32_2 = arith.constant 0 : i32
    return %c0_i32, %c0_i32_0, %c0_i32_1 : i32, i32, i32
  }
  func.func @transform_23(%arg0: i32) -> (i32, i32) {
    %c0_i32 = arith.constant 0 : i32
    %c0_i32_0 = arith.constant 0 : i32
    %c0_i32_1 = arith.constant 0 : i32
    return %c0_i32, %c0_i32_0 : i32, i32
  }
  func.func @transform_24(%arg0: i32) -> (i32, i32, i32) {
    %c0_i32 = arith.constant 0 : i32
    %c0_i32_0 = arith.constant 0 : i32
    %c0_i32_1 = arith.constant 0 : i32
    %c0_i32_2 = arith.constant 0 : i32
    return %c0_i32, %c0_i32_0, %c0_i32_1 : i32, i32, i32
  }
  func.func @transform_25(%arg0: i32) -> (i32, i32) {
    %c0_i32 = arith.constant 0 : i32
    %c0_i32_0 = arith.constant 0 : i32
    %c0_i32_1 = arith.constant 0 : i32
    return %c0_i32, %c0_i32_0 : i32, i32
  }
  func.func @transform_26(%arg0: i32) -> (i32, i32) {
    %c0_i32 = arith.constant 0 : i32
    %c0_i32_0 = arith.constant 0 : i32
    %c0_i32_1 = arith.constant 0 : i32
    return %c0_i32, %c0_i32_0 : i32, i32
  }
  func.func @transform_27(%arg0: i32) -> (i32, i32) {
    %c0_i32 = arith.constant 0 : i32
    %c0_i32_0 = arith.constant 0 : i32
    %c0_i32_1 = arith.constant 0 : i32
    return %c0_i32, %c0_i32_0 : i32, i32
  }
  func.func @transform_28(%arg0: i32) -> (i32, i32) {
    %c0_i32 = arith.constant 0 : i32
    %c0_i32_0 = arith.constant 0 : i32
    %c0_i32_1 = arith.constant 0 : i32
    return %c0_i32, %c0_i32_0 : i32, i32
  }
  func.func @transform_29(%arg0: i32) -> (i32, i32) {
    %c0_i32 = arith.constant 0 : i32
    %c0_i32_0 = arith.constant 0 : i32
    %c0_i32_1 = arith.constant 0 : i32
    return %c0_i32, %c0_i32_0 : i32, i32
  }
  func.func @transform_30(%arg0: i32) -> (i32, i32) {
    %c0_i32 = arith.constant 0 : i32
    %c0_i32_0 = arith.constant 0 : i32
    %c0_i32_1 = arith.constant 0 : i32
    return %c0_i32, %c0_i32_0 : i32, i32
  }
  func.func @transform_31(%arg0: i32) -> (i32, i32) {
    %c0_i32 = arith.constant 0 : i32
    %c0_i32_0 = arith.constant 0 : i32
    %c0_i32_1 = arith.constant 0 : i32
    return %c0_i32, %c0_i32_0 : i32, i32
  }
  func.func @transform_32(%arg0: i32) -> (i32, i32) {
    %c0_i32 = arith.constant 0 : i32
    %c0_i32_0 = arith.constant 0 : i32
    %c0_i32_1 = arith.constant 0 : i32
    return %c0_i32, %c0_i32_0 : i32, i32
  }
  func.func @transform_33(%arg0: i32) -> (i32, i32) {
    %c0_i32 = arith.constant 0 : i32
    %c0_i32_0 = arith.constant 0 : i32
    %c0_i32_1 = arith.constant 0 : i32
    return %c0_i32, %c0_i32_0 : i32, i32
  }
  func.func @transform_34(%arg0: i32) -> (i32, i32) {
    %c0_i32 = arith.constant 0 : i32
    %c0_i32_0 = arith.constant 0 : i32
    %c0_i32_1 = arith.constant 0 : i32
    return %c0_i32, %c0_i32_0 : i32, i32
  }
  func.func @transform_35(%arg0: i32) -> (i32, i32) {
    %c0_i32 = arith.constant 0 : i32
    %c0_i32_0 = arith.constant 0 : i32
    %c0_i32_1 = arith.constant 0 : i32
    return %c0_i32, %c0_i32_0 : i32, i32
  }
  func.func @transform_36(%arg0: i32) -> (i32, i32) {
    %c0_i32 = arith.constant 0 : i32
    %c0_i32_0 = arith.constant 0 : i32
    %c0_i32_1 = arith.constant 0 : i32
    return %c0_i32, %c0_i32_0 : i32, i32
  }
  func.func @transform_37(%arg0: i32) -> (i32, i32) {
    %c0_i32 = arith.constant 0 : i32
    %c0_i32_0 = arith.constant 0 : i32
    %c0_i32_1 = arith.constant 0 : i32
    return %c0_i32, %c0_i32_0 : i32, i32
  }
  func.func @transform_38(%arg0: i32) -> (i32, i32) {
    %c0_i32 = arith.constant 0 : i32
    %c0_i32_0 = arith.constant 0 : i32
    %c0_i32_1 = arith.constant 0 : i32
    return %c0_i32, %c0_i32_0 : i32, i32
  }
  func.func @transform_39(%arg0: i32) -> (i32, i32) {
    %c0_i32 = arith.constant 0 : i32
    %c0_i32_0 = arith.constant 0 : i32
    %c0_i32_1 = arith.constant 0 : i32
    return %c0_i32, %c0_i32_0 : i32, i32
  }
  func.func @transform_40(%arg0: i32) -> (i32, i32, i32) {
    %c0_i32 = arith.constant 0 : i32
    %c0_i32_0 = arith.constant 0 : i32
    %c0_i32_1 = arith.constant 0 : i32
    return %arg0, %c0_i32, %c0_i32_0 : i32, i32, i32
  }
}

</mosaic_0001>

<bundles_post_ra>
// kernel: tpu_custom_call.1
= control target key start
LH: loop header
LB: loop body
LE: loop exit
PB: predicated region body
PF: predicated region fallthrough
CT: control target
= control target key end

     0   :  { %s4691_s6 = smov 1   ;;  %s4692_s10 = smov 2   ;;  %s5503_s0 = inlined_call_operand.smem [shape: u32[41], index: -1, kind: input, shape index: {}] }
   0x1   :  { %s4748_s5 = sld [smem:[%s5503_s0]]   ;;  %s4693_s14 = smov 3  }
   0x2   :  { %s4753_s9 = sld [smem:[%s5503_s0 + %s4691_s6]]   ;;  %s4694_s18 = smov 4  }
   0x3   :  { %s4758_s13 = sld [smem:[%s5503_s0 + %s4692_s10]]   ;;  %s4695_s22 = smov 5  }
   0x4   :  { %s4763_s17 = sld [smem:[%s5503_s0 + %s4693_s14]]   ;;  %s4696_s26 = smov 6  }
   0x5   :  { %s4768_s21 = sld [smem:[%s5503_s0 + %s4694_s18]]   ;;  %s4697_s30 = smov 7  }
   0x6   :  { %s4773_s25 = sld [smem:[%s5503_s0 + %s4695_s22]]   ;;  %s4698_s4 = smov 8  }
   0x7   :  { %5521 = sst [smem:[#allocation5_spill]] %s4748_s5  ;;  %s4699_s10 = smov 9  }
   0x8   :  { %5522 = sst [smem:[#allocation6_spill]] %s4753_s9  ;;  %s4700_s15 = smov 10  }
   0x9   :  { %s4778_s29 = sld [smem:[%s5503_s0 + %s4696_s26]]   ;;  %s4701_s20 = smov 11  }
   0xa   :  { %s4783_s3 = sld [smem:[%s5503_s0 + %s4697_s30]]   ;;  %s4702_s26 = smov 12  }
   0xb   :  { %s4788_s8 = sld [smem:[%s5503_s0 + %s4698_s4]]   ;;  %s4703_s1 = smov 13  }
   0xc   :  { %s4793_s14 = sld [smem:[%s5503_s0 + %s4699_s10]]   ;;  %s4704_s7 = smov 14  }
   0xd   :  { %s4798_s19 = sld [smem:[%s5503_s0 + %s4700_s15]]   ;;  %s4705_s15 = smov 15  }
   0xe   :  { %s4803_s24 = sld [smem:[%s5503_s0 + %s4701_s20]]   ;;  %s4706_s22 = smov 16  }
   0xf   :  { %s4808_s30 = sld [smem:[%s5503_s0 + %s4702_s26]]   ;;  %s4707_s28 = smov 17  }
  0x10   :  { %5523 = sst [smem:[#allocation7_spill]] %s4783_s3 }
  0x11   :  { %5524 = sst [smem:[#allocation8_spill]] %s4788_s8 }
  0x12   :  { %s4813_s6 = sld [smem:[%s5503_s0 + %s4703_s1]]  }
  0x13   :  { %s4818_s12 = sld [smem:[%s5503_s0 + %s4704_s7]]   ;;  %s4708_s7 = smov 18  }
  0x14   :  { %s4823_s20 = sld [smem:[%s5503_s0 + %s4705_s15]]   ;;  %s4709_s15 = smov 19  }
  0x15   :  { %s4828_s27 = sld [smem:[%s5503_s0 + %s4706_s22]]   ;;  %s4710_s22 = smov 20  }
  0x16   :  { %s4833_s4 = sld [smem:[%s5503_s0 + %s4707_s28]]   ;;  %s4711_s28 = smov 21  }
  0x17   :  { %s4838_s9 = sld [smem:[%s5503_s0 + %s4708_s7]]   ;;  %s4712_s7 = smov 22  }
  0x18   :  { %5525 = sst [smem:[#allocation9_spill]] %s4813_s6 }
  0x19   :  { %5526 = sst [smem:[#allocation10_spill]] %s4818_s12 }
  0x1a   :  { %5527 = sst [smem:[#allocation11_spill]] %s4823_s20 }
  0x1b   :  { %5528 = sst [smem:[#allocation12_spill]] %s4828_s27 }
  0x1c   :  { %5529 = sst [smem:[#allocation13_spill]] %s4833_s4 }
  0x1d   :  { %5530 = sst [smem:[#allocation14_spill]] %s4838_s9 }
  0x1e   :  { %s4843_s20 = sld [smem:[%s5503_s0 + %s4709_s15]]   ;;  %s4713_s15 = smov 23  }
  0x1f   :  { %s4848_s27 = sld [smem:[%s5503_s0 + %s4710_s22]]   ;;  %s4714_s22 = smov 24  }
  0x20   :  { %s4853_s4 = sld [smem:[%s5503_s0 + %s4711_s28]]   ;;  %s4715_s28 = smov 25  }
  0x21   :  { %s4858_s9 = sld [smem:[%s5503_s0 + %s4712_s7]]   ;;  %s4716_s7 = smov 26  }
  0x24   :  { %5531 = sst [smem:[#allocation15_spill]] %s4843_s20 }
  0x25   :  { %5532 = sst [smem:[#allocation16_spill]] %s4848_s27 }
  0x26   :  { %5533 = sst [smem:[#allocation17_spill]] %s4853_s4 }
  0x27   :  { %5534 = sst [smem:[#allocation18_spill]] %s4858_s9 }
  0x28   :  { %s4863_s20 = sld [smem:[%s5503_s0 + %s4713_s15]]   ;;  %s4717_s15 = smov 27  }
  0x29   :  { %s4868_s27 = sld [smem:[%s5503_s0 + %s4714_s22]]   ;;  %s4718_s22 = smov 28  }
  0x2a   :  { %s4873_s4 = sld [smem:[%s5503_s0 + %s4715_s28]]   ;;  %s4719_s28 = smov 29  }
  0x2b   :  { %s4878_s9 = sld [smem:[%s5503_s0 + %s4716_s7]]   ;;  %s4720_s7 = smov 30  }
  0x2e   :  { %5535 = sst [smem:[#allocation19_spill]] %s4863_s20 }
  0x2f   :  { %5536 = sst [smem:[#allocation20_spill]] %s4868_s27 }
  0x30   :  { %5537 = sst [smem:[#allocation21_spill]] %s4873_s4 }
  0x31   :  { %5538 = sst [smem:[#allocation22_spill]] %s4878_s9 }
  0x32   :  { %s4883_s20 = sld [smem:[%s5503_s0 + %s4717_s15]]   ;;  %s4721_s15 = smov 31  }
  0x33   :  { %s4888_s27 = sld [smem:[%s5503_s0 + %s4718_s22]]   ;;  %s4722_s22 = smov 32  }
  0x34   :  { %s4893_s4 = sld [smem:[%s5503_s0 + %s4719_s28]]   ;;  %s4723_s28 = smov 33  }
  0x35   :  { %s4898_s9 = sld [smem:[%s5503_s0 + %s4720_s7]]   ;;  %s4724_s7 = smov 34  }
  0x38   :  { %5539 = sst [smem:[#allocation23_spill]] %s4883_s20 }
  0x39   :  { %5540 = sst [smem:[#allocation24_spill]] %s4888_s27 }
  0x3a   :  { %5541 = sst [smem:[#allocation25_spill]] %s4893_s4 }
  0x3b   :  { %5542 = sst [smem:[#allocation26_spill]] %s4898_s9 }
  0x3c   :  { %s4903_s20 = sld [smem:[%s5503_s0 + %s4721_s15]]   ;;  %s4725_s15 = smov 35  }
  0x3d   :  { %s4908_s27 = sld [smem:[%s5503_s0 + %s4722_s22]]   ;;  %s4726_s22 = smov 36  }
  0x3e   :  { %s4913_s4 = sld [smem:[%s5503_s0 + %s4723_s28]]   ;;  %s4727_s28 = smov 37  }
  0x3f   :  { %s4918_s9 = sld [smem:[%s5503_s0 + %s4724_s7]]   ;;  %s4728_s7 = smov 38  }
  0x42   :  { %5543 = sst [smem:[#allocation27_spill]] %s4903_s20 }
  0x43   :  { %5544 = sst [smem:[#allocation28_spill]] %s4908_s27 }
  0x44   :  { %5545 = sst [smem:[#allocation29_spill]] %s4913_s4 }
  0x45   :  { %5546 = sst [smem:[#allocation30_spill]] %s4918_s9 }
  0x46   :  { %s4923_s20 = sld [smem:[%s5503_s0 + %s4725_s15]]   ;;  %s4729_s15 = smov 39  }
  0x47   :  { %s4928_s27 = sld [smem:[%s5503_s0 + %s4726_s22]]   ;;  %s4730_s22 = smov 40  }
  0x48   :  { %s4933_s4 = sld [smem:[%s5503_s0 + %s4727_s28]]  }
  0x49   :  { %s4938_s9 = sld [smem:[%s5503_s0 + %s4728_s7]]  }
  0x4c   :  { %5547 = sst [smem:[#allocation31_spill]] %s4923_s20 }
  0x4d   :  { %5548 = sst [smem:[#allocation32_spill]] %s4928_s27 }
  0x4e   :  { %5549 = sst [smem:[#allocation33_spill]] %s4933_s4 }
  0x4f   :  { %5550 = sst [smem:[#allocation34_spill]] %s4938_s9 }
  0x50   :  { %s4943_s20 = sld [smem:[%s5503_s0 + %s4729_s15]]  }
  0x51   :  { %s4948_s27 = sld [smem:[%s5503_s0 + %s4730_s22]]  }
  0x52   :  { %86 = vsyncpa [#allocation3], 0 }
  0x53   :  { %88 = vsyncpa [#allocation3 + $0x1], 0  ;;  %s4950_s28 = smov 0   ;;  %s4952_s1 = smov 0  }
  0x54   :  { %s4954_s2 = smov 0   ;;  %s4956_s7 = smov 0  }
  0x55 LB: > { %s5551_s9 = sld [smem:[#allocation34_spill]]  ;;  %s5552_s8 = sld [smem:[#allocation8_spill]]  ;;  %s4681_s1 = sphi %s4952_s1, %s5588_s1   ;;  %s4677_s28 = sphi %s4950_s28, %s5587_s28   ;;  %s4689_s7 = sphi %s4956_s7, %s5590_s7   ;;  %s4685_s2 = sphi %s4954_s2, %s5589_s2  }
  0x56   : > { %s4971_s0 = sadd.s32 4294967295, %s4689_s7   ;;  %s4051_s10 = sadd.s32 4294967294, %s4689_s7  }
  0x57   : > { %s4975_s11 = sadd.s32 1, %s4689_s7   ;;  %s951_s15 = sadd.s32 1, %s4685_s2 }
  0x58   : > { %s948_s16 = ssub.s32 %s4689_s7, %s4975_s11  ;;  %p961_p0 = scmp.ne.s32.totalorder %s4685_s2, %s4681_s1 }
  0x59   : > { %p949_p1 = scmp.eq.s32.totalorder %s948_s16, 0  ;;  %p962_p2 = scmp.eq.s32.totalorder %s4971_s0, 1 }
  0x5a   : > { %p967_p3 = scmp.ne.s32.totalorder %s4681_s1, %s4677_s28  ;;  %p968_p4 = scmp.eq.s32.totalorder %s4051_s10, 1 }
  0x5b   : > { %s4986_s18 = scalar_select %p949_p1, %s4685_s2, %s951_s15  }
  0x5c   : > { %p4988_p5 = por %p962_p2, %p961_p0  ;;  %p4992_p6 = por %p968_p4, %p967_p3 }
  0x5d   : > { %p4054_p7 = scmp.ge.s32.totalorder %s4689_s7, 1  ;;  %p1116_p8 = scmp.lt.s32.totalorder %s4689_s7, 3 }
  0x5f   : > { %p1117_p9 = pnand %p4054_p7, %p1116_p8 }
  0x60   : > { %v4059_v0 = vld [vmem:[%s4758_s13 + $0x4] sm:$0xf] (!%p1117_p9)  ;;  %vm1260_vm0 = vcmask (!%p1117_p9), 1043456   ;;  %v1233_v1 = vld [vmem:[%s4758_s13] sm:$0xf] (!%p1117_p9)  ;;  %v4731_v2 = vmov (!%p1117_p9), 0.0  }
  0x61   : > { %1120 = sbr.rel (%p1117_p9) target bundleno = 4342 (0x10f6), region = 180  ;;  %4258 = vmatprep.subr.bf16.mxu0 (!%p1117_p9), %v4731_v2  ;;  %v1262_v3 = vsel (!%p1117_p9), %vm1260_vm0, %v4059_v0, 0  ;;  %4264 = vmatprep.subr.bf16.mxu1 (!%p1117_p9), %v4731_v2  ;;  %v1315_v4 = vsel (!%p1117_p9), %vm1260_vm0, %v1233_v1, 0  ;;  %p1218_p10 = scmp.lt.s32.totalorder (!%p1117_p9), %s4971_s0, 1  ;;  %vm4732_vm1 = vmmov (!%p1117_p9), 0   ;;  %v4733_v7 = vmov (!%p1117_p9), 0  }
  0x62   : > { %s5555_s5 = sld [smem:[#allocation5_spill]] (!%p1117_p9)  ;;  %4259 = vmatpush3.bf16.msra.mxu0 (!%p1117_p9), %v1262_v3  ;;  %4265 = vmatpush3.bf16.msra.mxu1 (!%p1117_p9), %v1315_v4  ;;  %v4062_v5 = vld [vmem:[%s4758_s13 + $0x8] sm:$0xf] (!%p1117_p9)  ;;  %v4064_v6 = vld [vmem:[%s4758_s13 + $0xc] sm:$0xf] (!%p1117_p9)  ;;  %vm1256_vm3 = vcmask (!%p1117_p9), 64512  }
  0x63   : > { %4260 = vmatprep.mubr.msk.bf16.mxu0 (!%p1117_p9), %vm4732_vm1, %v4731_v2  ;;  %4266 = vmatprep.mubr.msk.bf16.mxu1 (!%p1117_p9), %vm4732_vm1, %v4731_v2  ;;  %vm1238_vm2 = vsmask.f32 (!%p1117_p9), 4352  ;;  %vm1307_vm4 = vcmask (!%p1117_p9), 1044480   ;;  %v1365_v10 = vsel (!%p1117_p9), %vm1260_vm0, %v4062_v5, 0  ;;  %v1429_v11 = vsel (!%p1117_p9), %vm1260_vm0, %v4064_v6, 0  ;;  %v4589_v41 = vld [vmem:[%s4768_s21] sm:$0xff] (!%p1117_p9)  }
  0x64   : > { %4270 = vmatprep.subr.bf16.mxu0 (!%p1117_p9), %v4731_v2  ;;  %4276 = vmatprep.subr.bf16.mxu1 (!%p1117_p9), %v4731_v2  ;;  %vm1413_vm5 = vsmask.f32 (!%p1117_p9), 7424  ;;  %v5027_v29 = vrot.slane (!%p1117_p9), %v4733_v7, 1  ;;  %v4066_v35 = vld [vmem:[%s4758_s13 + $0x10] sm:$0xf] (!%p1117_p9)  ;;  %v4734_v38 = vmov (!%p1117_p9), 0.0|0.0  }
  0x65   : > { %4587 = vset.pattern.permute.xlu0 (!%p1117_p9), %v4733_v7  ;;  %4588 = vset.pattern.permute.xlu1 (!%p1117_p9), %v4733_v7  ;;  %v1486_v36 = vsel (!%p1117_p9), %vm1260_vm0, %v4066_v35, 0  ;;  %v5048_v39 = vrot.slane (!%p1117_p9), %v4734_v38, 1  ;;  %vm1478_vm6 = vcmask (!%p1117_p9), 1046528   ;;  %v4590_v42 = vld [vmem:[%s4768_s21 + $0x8] sm:$0xff] (!%p1117_p9)   ;;  %v4068_v3 = vld [vmem:[%s4763_s17] ss:$0 sm:$0xff] (!%p1117_p9) }
  0x66   : > { %vm1558_vm7 = vcmask (!%p1117_p9), 130048   ;;  %vm1820_vm8 = vcmask (!%p1117_p9), 1041408   ;;  %vm1801_vm9 = vcmask (!%p1117_p9), 31744   ;;  %s5556_s3 = sld [smem:[#allocation7_spill]] (!%p1117_p9)  ;;  %s5514_s16 = smov (!%p1117_p9), 4   ;;  %vm1806_vm10 = vcmask (!%p1117_p9), 97280  }
  0x67   : > { %s5557_s12 = sld [smem:[#allocation10_spill]] (!%p1117_p9)  ;;  %s5558_s6 = sld [smem:[#allocation9_spill]] (!%p1117_p9)  ;;  %vm2823_vm11 = vsmask.f32 (!%p1117_p9), 5376  ;;  %vm2890_vm12 = vsmask.f32 (!%p1117_p9), 6400 }
  0x68   : > { %s5010_s26 = scalar_select %p1218_p10, %s4971_s0, 1 }
  0x69   : > { %s5586_s4 = sld [smem:[#allocation33_spill]] }
  0x6a   : > { %s5509_s10 = sshll.u32 %s5010_s26, 4 }
  0x6b   : > { %s1222_s15 = scalar_lea.vmem %s5555_s5, %s5509_s10  ;;  %s5510_s10 = smov 12  }
  0x6c   : > { %v1229_v8 = vld [vmem:[%s1222_s15] sm:$0xff]  ;;  %v1230_v9 = vld [vmem:[%s1222_s15 + $0x8] sm:$0xff]  ;;  %s5512_s15 = smov 8   ;;  %s5568_s5 = sld [smem:[#allocation20_spill]] }
  0x6d   : > { %v1234_v12 = vpack.c.bf16 %v1229_v8, %v4731_v2  ;;  %v1235_v13 = vpack.c.bf16 %v1230_v9, %v1230_v9  ;;  %v1360_v14 = vpack.c.bf16 %v1230_v9, %v1229_v8 }
  0x6f   : > { %v1240_v15 = vshrl.u32 %v1234_v12, 16  ;;  %v1243_v16 = vshll.u32 %v1234_v12, 16  ;;  %v1248_v17 = vshrl.u32 %v1235_v13, 16  ;;  %v1251_v18 = vshll.u32 %v1235_v13, 16 }
  0x70   : > { %v1308_v19 = vrot.slane %v1234_v12, 3  ;;  %v1309_v20 = vrot.slane %v1235_v13, 3  ;;  %v1414_v21 = vshrl.u32 %v1360_v14, 16  ;;  %v1416_v22 = vshll.u32 %v1360_v14, 16 }
  0x71   : > { %v1242_v23 = vrot.slane %v1240_v15, 3  ;;  %v1245_v24 = vrot.slane %v1243_v16, 4  ;;  %v1250_v25 = vrot.slane %v1248_v17, 3  ;;  %v1253_v26 = vrot.slane %v1251_v18, 4  ;;  %v4592_v15 = vld [vmem:[%s4768_s21 + $0x18] sm:$0xff]  }
  0x72   : > { %v1310_v27 = vsel %vm1307_vm4, %v1308_v19, %v1309_v20  ;;  %v1418_v28 = vrot.slane %v1416_v22, 1  ;;  %v1479_v37 = vrot.slane %v1360_v14, 1  ;;  %v4090_v17 = vld [vmem:[%s4778_s29 + $0x2] sm:$0x3]  ;;  %v1811_v19 = vld [vmem:[%s4778_s29] sm:$0x3] }
  0x73   : > { %v1246_v30 = vor.u32 %v1245_v24, %v1242_v23  ;;  %v1254_v31 = vor.u32 %v1253_v26, %v1250_v25  ;;  %4267 = vmatmul.mubr.msk.bf16.vlgmr.msra.gmra.mrb[0].mxu1 %vm1256_vm3, %v1310_v27  ;;  %v1822_v18 = vsel %vm1820_vm8, %v4090_v17, 0  ;;  %v1874_v20 = vsel %vm1820_vm8, %v1811_v19, 0  ;;  %v4075_v22 = vld [vmem:[%s4773_s25 + $0x1] ss:$0 sm:$0xff] }
  0x74   : > { %4277 = vmatpush3.bf16.msra.mxu1 %v1429_v11  ;;  %4278 = vmatprep.mubr.msk.bf16.mxu1 %vm4732_vm1, %v4731_v2  ;;  %v1419_v32 = vor.u32 %v1418_v28, %v1414_v21  ;;  %v1481_v40 = vsel %vm1478_vm6, %v1479_v37, %v5048_v39  ;;  %v4069_v21 = vld [vmem:[%s4773_s25] ss:$0 sm:$0xff]  ;;  %v4093_v37 = vld [vmem:[%s4778_s29 + $0x4] sm:$0x3] }
  0x75   : > { %v1255_v33 = vsel %vm1238_vm2, %v1246_v30, %v1254_v31  ;;  %4288 = vmatprep.subr.bf16.mxu1 %v4731_v2 }
  0x76   : > { %4261 = vmatmul.mubr.msk.bf16.vlgmr.msra.gmra.mrb[0].mxu0 %vm1256_vm3, %v1255_v33  ;;  %v1424_v34 = vsel %vm1413_vm5, %v1419_v32, %v5027_v29  ;;  %vm3885_vm5 = vcmask 261120  }
  0x77   : > { %4271 = vmatpush3.bf16.msra.mxu0 %v1365_v10  ;;  %4272 = vmatprep.mubr.msk.bf16.mxu0 %vm4732_vm1, %v4731_v2 }
  0x78   : > { %4282 = vmatprep.subr.bf16.mxu0 %v4731_v2 }
  0x7b   : > { %4279 = vmatmul.mubr.msk.bf16.vlgmr.msra.gmra.mrb[4].mxu1 %vm1256_vm3, %v1424_v34 }
  0x7c   : > { %4290 = vmatprep.mubr.msk.bf16.mxu1 %vm4732_vm1, %v4731_v2  ;;  %4289 = vmatpush3.bf16.msra.mxu1 %v4589_v41 }
  0x7d   : > { %4300 = vmatprep.subr.bf16.mxu1 %v4731_v2 }
  0x7e   : > { %4273 = vmatmul.mubr.msk.bf16.vlgmr.msra.gmra.mrb[4].mxu0 %vm1256_vm3, %v1360_v14  ;;  %v4591_v14 = vld [vmem:[%s4768_s21 + $0x10] sm:$0xff]  }
  0x7f   : > { %4283 = vmatpush3.bf16.msra.mxu0 %v1486_v36  ;;  %4284 = vmatprep.mubr.msk.bf16.mxu0 %vm4732_vm1, %v4731_v2 }
  0x80   : > { %4294 = vmatprep.subr.bf16.mxu0 %v4731_v2 }
  0x86   : > { %4285 = vmatmul.mubr.msk.bf16.vlgmr.msra.gmra.mrb[8].mxu0 %vm1256_vm3, %v1481_v40 }
  0x87   : > { %4296 = vmatprep.mubr.msk.bf16.mxu0 %vm4732_vm1, %v4731_v2  ;;  %4295 = vmatpush3.bf16.msra.mxu0 %v4590_v42 }
  0x88   : > { %4306 = vmatprep.subr.bf16.mxu0 %v4731_v2 }
 0x146   : > { %v1351_v43 = vpop.f32.mrb[0].mxu1 }
 0x147   : > { %v4268_v44 = vpop.f32.mrb[1].mxu1 }
 0x148   : > { %v1354_v45 = vpop.f32.mrb[2].mxu1 }
 0x149   : > { %v1298_v46 = vpop.f32.mrb[0].mxu0  ;;  %v4269_v47 = vpop.f32.mrb[3].mxu1 }
 0x14a   : > { %v1352_v48 = vadd.f32 %v1351_v43, %v1298_v46  ;;  %v4262_v49 = vpop.f32.mrb[1].mxu0  ;;  %v1926_v43 = vsel %vm1820_vm8, %v4093_v37, 0 }
 0x14b   : > { %v1301_v50 = vpop.f32.mrb[2].mxu0 }
 0x14c   : > { %v1355_v51 = vadd.f32 %v1354_v45, %v1301_v50  ;;  %v4263_v52 = vpop.f32.mrb[3].mxu0 }
 0x14e   : > { %v1465_v53 = vpop.f32.mrb[4].mxu1 }
 0x14f   : > { %v4280_v54 = vpop.f32.mrb[5].mxu1 }
 0x150   : > { %v1468_v55 = vpop.f32.mrb[6].mxu1 }
 0x151   : > { %v1401_v56 = vpop.f32.mrb[4].mxu0  ;;  %v4281_v57 = vpop.f32.mrb[7].mxu1 }
 0x152   : > { %v1408_v58 = vadd.f32 %v1401_v56, %v1352_v48  ;;  %v4274_v59 = vpop.f32.mrb[5].mxu0  ;;  %v4096_v57 = vld [vmem:[%s5552_s8 + $0x2] sm:$0x3] }
 0x153   : > { %v1404_v60 = vpop.f32.mrb[6].mxu0  ;;  %v1984_v59 = vld [vmem:[%s5552_s8] sm:$0x3] }
 0x154   : > { %v1409_v61 = vadd.f32 %v1404_v60, %v1355_v51  ;;  %v1472_v62 = vadd.f32 %v1465_v53, %v1408_v58  ;;  %v4275_v63 = vpop.f32.mrb[7].mxu0  ;;  %v1994_v58 = vsel %vm1820_vm8, %v4096_v57, 0  ;;  %v2046_v60 = vsel %vm1820_vm8, %v1984_v59, 0 }
 0x156   : > { %v1473_v0 = vadd.f32 %v1468_v55, %v1409_v61 }
 0x159   : > { %v1522_v1 = vpop.f32.mrb[8].mxu0 }
 0x15a   : > { %v1529_v4 = vadd.f32 %v1522_v1, %v1472_v62  ;;  %v4286_v5 = vpop.f32.mrb[9].mxu0 }
 0x15b   : > { %v1525_v6 = vpop.f32.mrb[10].mxu0 }
 0x15c   : > { %v1538_v8 = vadd.f32 %v4068_v3, %v1529_v4  ;;  %v1530_v9 = vadd.f32 %v1525_v6, %v1473_v0  ;;  %v4287_v10 = vpop.f32.mrb[11].mxu0 }
 0x15d   : > { %v4095_v10 = vld [vmem:[%s5556_s3] ss:$0 sm:$0xff]  ;;  %s5562_s3 = sld [smem:[#allocation13_spill]] }
 0x15e   : > { %v1539_v11 = vadd.f32 %v4068_v3, %v1530_v9  ;;  %v1540_v12 = vmax.f32 %v1538_v8, 0.0 }
 0x160   : > { %v1541_v13 = vmax.f32 %v1539_v11, 0.0 }
 0x162   : > { %v1544_v16 = vpack.c.bf16 %v1541_v13, %v1540_v12  ;;  %v4081_v13 = vld [vmem:[%s4773_s25 + $0x2] ss:$0 sm:$0xff] }
 0x164   : > { %4291 = vmatmul.mubr.msk.bf16.vlgmr.msra.gmra.mrb[8].mxu1 %vm1558_vm7, %v1544_v16  ;;  %4297 = vmatmul.mubr.msk.bf16.vlgmr.msra.gmra.mrb[12].mxu0 %vm1558_vm7, %v1544_v16 }
 0x165   : > { %4301 = vmatpush3.bf16.msra.mxu1 %v4591_v14  ;;  %4307 = vmatpush3.bf16.msra.mxu0 %v4592_v15 }
 0x166   : > { %4302 = vmatprep.mubr.msk.bf16.mxu1 %vm4732_vm1, %v4731_v2  ;;  %4308 = vmatprep.mubr.msk.bf16.mxu0 %vm4732_vm1, %v4731_v2 }
 0x167   : > { %4312 = vmatprep.subr.bf16.mxu1 %v4731_v2  ;;  %4318 = vmatprep.subr.bf16.mxu0 %v4731_v2 }
 0x16c   : > { %4303 = vmatmul.mubr.msk.bf16.vlgmr.msra.gmra.mrb[12].mxu1 %vm1558_vm7, %v1544_v16  ;;  %4309 = vmatmul.mubr.msk.bf16.vlgmr.msra.gmra.mrb[16].mxu0 %vm1558_vm7, %v1544_v16 }
 0x16d   : > { %4314 = vmatprep.mubr.msk.bf16.mxu1 %vm4732_vm1, %v4731_v2  ;;  %4320 = vmatprep.mubr.msk.bf16.mxu0 %vm4732_vm1, %v4731_v2 }
 0x16e   : > { %4313 = vmatpush3.bf16.msra.mxu1 %v1822_v18  ;;  %4319 = vmatpush3.bf16.msra.mxu0 %v1874_v20 }
 0x16f   : > { %4324 = vmatprep.subr.bf16.mxu1 %v4731_v2  ;;  %4330 = vmatprep.subr.bf16.mxu0 %v4731_v2 }
 0x237   : > { %v1596_v23 = vpop.f32.mrb[8].mxu1  ;;  %v1654_v24 = vpop.f32.mrb[12].mxu0 }
 0x238   : > { %v5085_v25 = vadd.f32 %v4069_v21, %v1596_v23  ;;  %v5087_v26 = vadd.f32 %v4075_v22, %v1654_v24  ;;  %v4292_v27 = vpop.f32.mrb[9].mxu1  ;;  %v4298_v28 = vpop.f32.mrb[13].mxu0  ;;  %v4099_v24 = vld [vmem:[%s5552_s8 + $0x4] sm:$0x3]  ;;  %s5572_s8 = sld [smem:[#allocation22_spill]] }
 0x239   : > { %v1599_v30 = vpop.f32.mrb[10].mxu1  ;;  %v1657_v31 = vpop.f32.mrb[14].mxu0 }
 0x23a   : > { %v1809_v32 = vadd.f32 %v5087_v26, %v5085_v25  ;;  %v5091_v33 = vadd.f32 %v4069_v21, %v1599_v30  ;;  %v5093_v34 = vadd.f32 %v4075_v22, %v1657_v31  ;;  %v4293_v35 = vpop.f32.mrb[11].mxu1  ;;  %v4299_v36 = vpop.f32.mrb[15].mxu0 }
 0x23c   : > { %v1812_v38 = vpack.c.bf16 %v1809_v32, %v4731_v2  ;;  %v1810_v40 = vadd.f32 %v5093_v34, %v5091_v33 }
 0x23e   : > { %v1813_v41 = vpack.c.bf16 %v1810_v40, %v1810_v40  ;;  %v1816_v42 = vpack.c.bf16 %v1810_v40, %v1809_v32  ;;  %v1867_v46 = vrot.slane %v1812_v38, 3  ;;  %v2098_v32 = vsel %vm1820_vm8, %v4099_v24, 0 }
 0x23f   : > { %v1712_v44 = vpop.f32.mrb[12].mxu1  ;;  %v5100_v45 = vpop.f32.mrb[16].mxu0 }
 0x240   : > { %v1868_v47 = vrot.slane %v1813_v41, 3  ;;  %v4304_v48 = vpop.f32.mrb[13].mxu1  ;;  %v4310_v49 = vpop.f32.mrb[17].mxu0  ;;  %4315 = vmatmul.mubr.msk.bf16.vlgmr.msra.gmra.mrb[16].mxu1 %vm1801_vm9, %v1816_v42  ;;  %v1920_v55 = vrot.slane %v1816_v42, 1  ;;  %v5125_v18 = vadd.f32 %v4081_v13, %v1712_v44  ;;  %v4102_v41 = vld [vmem:[%s4798_s19 + $0x2] sm:$0x3] }
 0x241   : > { %4325 = vmatpush3.bf16.msra.mxu1 %v1926_v43  ;;  %v1715_v50 = vpop.f32.mrb[14].mxu1  ;;  %v5103_v51 = vpop.f32.mrb[18].mxu0  ;;  %4326 = vmatprep.mubr.msk.bf16.mxu1 %vm4732_vm1, %v4731_v2  ;;  %v2166_v42 = vsel %vm1820_vm8, %v4102_v41, 0  ;;  %v2156_v43 = vld [vmem:[%s4798_s19] sm:$0x3] }
 0x242   : > { %v4305_v52 = vpop.f32.mrb[15].mxu1  ;;  %v4311_v53 = vpop.f32.mrb[19].mxu0  ;;  %v1869_v54 = vsel %vm1307_vm4, %v1867_v46, %v1868_v47  ;;  %4336 = vmatprep.subr.bf16.mxu1 %v4731_v2  ;;  %v1921_v56 = vsel %vm1478_vm6, %v1920_v55, %v5048_v39  ;;  %v5127_v21 = vadd.f32 %v4081_v13, %v1715_v50  ;;  %v2218_v44 = vsel %vm1820_vm8, %v2156_v43, 0 }
 0x243   : > { %4321 = vmatmul.mubr.msk.bf16.vlgmr.msra.gmra.mrb[20].mxu0 %vm1801_vm9, %v1869_v54 }
 0x244   : > { %4332 = vmatprep.mubr.msk.bf16.mxu0 %vm4732_vm1, %v4731_v2  ;;  %4331 = vmatpush3.bf16.msra.mxu0 %v1994_v58  ;;  %v4101_v58 = vld [vmem:[%s4793_s14] ss:$0 sm:$0xff] }
 0x245   : > { %4342 = vmatprep.subr.bf16.mxu0 %v4731_v2 }
 0x248   : > { %4327 = vmatmul.mubr.msk.bf16.vlgmr.msra.gmra.mrb[20].mxu1 %vm1801_vm9, %v1921_v56 }
 0x249   : > { %4338 = vmatprep.mubr.msk.bf16.mxu1 %vm4732_vm1, %v4731_v2  ;;  %4337 = vmatpush3.bf16.msra.mxu1 %v2046_v60 }
 0x24a   : > { %4348 = vmatprep.subr.bf16.mxu1 %v4731_v2 }
 0x313   : > { %v1858_v61 = vpop.f32.mrb[16].mxu1 }
 0x314   : > { %v4316_v62 = vpop.f32.mrb[17].mxu1 }
 0x315   : > { %v1861_v63 = vpop.f32.mrb[18].mxu1 }
 0x316   : > { %v4317_v0 = vpop.f32.mrb[19].mxu1  ;;  %v1910_v1 = vpop.f32.mrb[20].mxu0 }
 0x317   : > { %v1911_v3 = vadd.f32 %v1910_v1, %v1858_v61  ;;  %v4322_v4 = vpop.f32.mrb[21].mxu0  ;;  %v4087_v61 = vld [vmem:[%s4773_s25 + $0x3] ss:$0 sm:$0xff] }
 0x318   : > { %v1913_v5 = vpop.f32.mrb[22].mxu0 }
 0x319   : > { %v1914_v6 = vadd.f32 %v1913_v5, %v1861_v63  ;;  %v4323_v8 = vpop.f32.mrb[23].mxu0 }
 0x31b   : > { %v1962_v9 = vpop.f32.mrb[20].mxu1 }
 0x31c   : > { %v1969_v11 = vadd.f32 %v1962_v9, %v1911_v3  ;;  %v4328_v12 = vpop.f32.mrb[21].mxu1  ;;  %v1771_v3 = vadd.f32 %v4087_v61, %v5100_v45 }
 0x31d   : > { %v1965_v14 = vpop.f32.mrb[22].mxu1 }
 0x31e   : > { %v1970_v15 = vadd.f32 %v1965_v14, %v1914_v6  ;;  %v4329_v16 = vpop.f32.mrb[23].mxu1  ;;  %v1978_v17 = vadd.f32 %v4095_v10, %v1969_v11  ;;  %v1774_v6 = vadd.f32 %v4087_v61, %v5103_v51 }
 0x320   : > { %v1979_v19 = vadd.f32 %v4095_v10, %v1970_v15  ;;  %v1980_v20 = vmax.f32 %v1978_v17, 0.0  ;;  %v4105_v10 = vld [vmem:[%s4798_s19 + $0x4] sm:$0x3] }
 0x321   : > { %v2270_v15 = vsel %vm1820_vm8, %v4105_v10, 0 }
 0x322   : > { %v1981_v22 = vmax.f32 %v1979_v19, 0.0  ;;  %2328 = vrot.lane.b32.xlu0 %v1980_v20, %s5514_s16  ;;  %v1982_v23 = vadd.f32 %v1980_v20, %v5125_v18 }
 0x324   : > { %v1983_v27 = vadd.f32 %v1981_v22, %v5127_v21  ;;  %v1985_v28 = vpack.c.bf16 %v1982_v23, %v4731_v2 }
 0x326   : > { %v1986_v30 = vpack.c.bf16 %v1983_v27, %v1983_v27  ;;  %v1989_v31 = vpack.c.bf16 %v1983_v27, %v1982_v23  ;;  %2330 = vrot.lane.b32.xlu0 %v1981_v22, %s5514_s16  ;;  %v2039_v36 = vrot.slane %v1985_v28, 3 }
 0x328   : > { %v2040_v35 = vrot.slane %v1986_v30, 3  ;;  %4333 = vmatmul.mubr.msk.bf16.vlgmr.msra.gmra.mrb[24].mxu0 %vm1801_vm9, %v1989_v31  ;;  %v2092_v38 = vrot.slane %v1989_v31, 1 }
 0x329   : > { %4343 = vmatpush3.bf16.msra.mxu0 %v2098_v32  ;;  %4344 = vmatprep.mubr.msk.bf16.mxu0 %vm4732_vm1, %v4731_v2 }
 0x32a   : > { %v2041_v37 = vsel %vm1307_vm4, %v2039_v36, %v2040_v35  ;;  %4354 = vmatprep.subr.bf16.mxu0 %v4731_v2  ;;  %v2093_v40 = vsel %vm1478_vm6, %v2092_v38, %v5048_v39 }
 0x32b   : > { %4339 = vmatmul.mubr.msk.bf16.vlgmr.msra.gmra.mrb[24].mxu1 %vm1801_vm9, %v2041_v37  ;;  %v4107_v37 = vld [vmem:[%s4803_s24] ss:$0 sm:$0xff] }
 0x32c   : > { %4350 = vmatprep.mubr.msk.bf16.mxu1 %vm4732_vm1, %v4731_v2  ;;  %4349 = vmatpush3.bf16.msra.mxu1 %v2166_v42 }
 0x32d   : > { %4360 = vmatprep.subr.bf16.mxu1 %v4731_v2 }
 0x330   : > { %4345 = vmatmul.mubr.msk.bf16.vlgmr.msra.gmra.mrb[28].mxu0 %vm1801_vm9, %v2093_v40 }
 0x331   : > { %4356 = vmatprep.mubr.msk.bf16.mxu0 %vm4732_vm1, %v4731_v2  ;;  %4355 = vmatpush3.bf16.msra.mxu0 %v2218_v44 }
 0x332   : > { %4366 = vmatprep.subr.bf16.mxu0 %v4731_v2 }
 0x3fb   : > { %v2030_v46 = vpop.f32.mrb[24].mxu0 }
 0x3fc   : > { %v4334_v47 = vpop.f32.mrb[25].mxu0 }
 0x3fd   : > { %v2033_v48 = vpop.f32.mrb[26].mxu0 }
 0x3fe   : > { %v4335_v49 = vpop.f32.mrb[27].mxu0  ;;  %v2082_v50 = vpop.f32.mrb[24].mxu1 }
 0x3ff   : > { %v2083_v52 = vadd.f32 %v2082_v50, %v2030_v46  ;;  %v4340_v53 = vpop.f32.mrb[25].mxu1  ;;  %v2359_v49 = vld [vmem:[%s5557_s12] sm:$0xf]  ;;  %s5574_s12 = smov 12  }
 0x400   : > { %v2085_v54 = vpop.f32.mrb[26].mxu1  ;;  %v2430_v50 = vsel %vm1260_vm0, %v2359_v49, 0 }
 0x401   : > { %v2086_v55 = vadd.f32 %v2085_v54, %v2033_v48  ;;  %v4341_v56 = vpop.f32.mrb[27].mxu1  ;;  %v4593_v48 = vld [vmem:[%s4808_s30] sm:$0xff]  }
 0x403   : > { %v2134_v57 = vpop.f32.mrb[28].mxu0 }
 0x404   : > { %v2141_v59 = vadd.f32 %v2134_v57, %v2083_v52  ;;  %v4346_v60 = vpop.f32.mrb[29].mxu0 }
 0x405   : > { %v2137_v62 = vpop.f32.mrb[30].mxu0 }
 0x406   : > { %v2142_v63 = vadd.f32 %v2137_v62, %v2086_v55  ;;  %v4347_v0 = vpop.f32.mrb[31].mxu0  ;;  %v2150_v1 = vadd.f32 %v4101_v58, %v2141_v59 }
 0x408   : > { %v2151_v4 = vadd.f32 %v4101_v58, %v2142_v63  ;;  %v2152_v5 = vmax.f32 %v2150_v1, 0.0 }
 0x40a   : > { %v2153_v8 = vmax.f32 %v2151_v4, 0.0  ;;  %2336 = vrot.lane.b32.xlu1 %v2152_v5, %s5512_s15  ;;  %v2154_v9 = vadd.f32 %v2152_v5, %v1771_v3 }
 0x40c   : > { %v2155_v11 = vadd.f32 %v2153_v8, %v1774_v6  ;;  %v2157_v12 = vpack.c.bf16 %v2154_v9, %v4731_v2 }
 0x40e   : > { %v2158_v13 = vpack.c.bf16 %v2155_v11, %v2155_v11  ;;  %v2161_v14 = vpack.c.bf16 %v2155_v11, %v2154_v9  ;;  %2338 = vrot.lane.b32.xlu1 %v2153_v8, %s5512_s15  ;;  %v2211_v16 = vrot.slane %v2157_v12, 3  ;;  %v2358_v9 = vld [vmem:[%s5558_s6] sm:$0x1]  ;;  %s5569_s6 = sld [smem:[#allocation19_spill]] }
 0x410   : > { %v2212_v45 = vrot.slane %v2158_v13, 3  ;;  %4351 = vmatmul.mubr.msk.bf16.vlgmr.msra.gmra.mrb[28].mxu1 %vm1801_vm9, %v2161_v14  ;;  %v2264_v17 = vrot.slane %v2161_v14, 1 }
 0x411   : > { %4361 = vmatpush3.bf16.msra.mxu1 %v2270_v15  ;;  %4362 = vmatprep.mubr.msk.bf16.mxu1 %vm4732_vm1, %v4731_v2 }
 0x412   : > { %v2213_v51 = vsel %vm1307_vm4, %v2211_v16, %v2212_v45  ;;  %4372 = vmatprep.subr.bf16.mxu1 %v4731_v2  ;;  %v2265_v19 = vsel %vm1478_vm6, %v2264_v17, %v5048_v39 }
 0x413   : > { %4357 = vmatmul.mubr.msk.bf16.vlgmr.msra.gmra.mrb[32].mxu0 %vm1801_vm9, %v2213_v51 }
 0x414   : > { %4368 = vmatprep.mubr.msk.bf16.mxu0 %vm4732_vm1, %v4731_v2  ;;  %4367 = vmatpush3.bf16.msra.mxu0 %v4593_v48 }
 0x415   : > { %4378 = vmatprep.subr.bf16.mxu0 %v4731_v2 }
 0x418   : > { %4363 = vmatmul.mubr.msk.bf16.vlgmr.msra.gmra.mrb[32].mxu1 %vm1801_vm9, %v2265_v19 }
 0x419   : > { %4374 = vmatprep.mubr.msk.bf16.mxu1 %vm4732_vm1, %v4731_v2  ;;  %4373 = vmatpush3.bf16.msra.mxu1 %v2430_v50 }
 0x41a   : > { %4384 = vmatprep.subr.bf16.mxu1 %v4731_v2 }
 0x4e3   : > { %v2202_v20 = vpop.f32.mrb[28].mxu1 }
 0x4e4   : > { %v4352_v22 = vpop.f32.mrb[29].mxu1 }
 0x4e5   : > { %v2205_v23 = vpop.f32.mrb[30].mxu1 }
 0x4e6   : > { %v4353_v24 = vpop.f32.mrb[31].mxu1  ;;  %v2254_v27 = vpop.f32.mrb[32].mxu0 }
 0x4e7   : > { %v2255_v28 = vadd.f32 %v2254_v27, %v2202_v20  ;;  %v4358_v30 = vpop.f32.mrb[33].mxu0 }
 0x4e8   : > { %v2257_v31 = vpop.f32.mrb[34].mxu0 }
 0x4e9   : > { %v2258_v32 = vadd.f32 %v2257_v31, %v2205_v23  ;;  %v4359_v35 = vpop.f32.mrb[35].mxu0  ;;  %v2478_v31 = vlaneseq }
 0x4eb   : > { %v2306_v36 = vpop.f32.mrb[32].mxu1 }
 0x4ec   : > { %v2313_v38 = vadd.f32 %v2306_v36, %v2255_v28  ;;  %v4364_v39 = vpop.f32.mrb[33].mxu1 }
 0x4ed   : > { %v2309_v40 = vpop.f32.mrb[34].mxu1 }
 0x4ee   : > { %v2322_v41 = vadd.f32 %v4107_v37, %v2313_v38  ;;  %v2314_v42 = vadd.f32 %v2309_v40, %v2258_v32  ;;  %v4365_v43 = vpop.f32.mrb[35].mxu1  ;;  %v2479_v32 = vshrl.u32 %v2478_v31, 7  ;;  %v2901_v31 = vrot.slane %v4733_v7, 2 }
 0x4f0   : > { %v2324_v44 = vmax.f32 %v2322_v41, 0.0  ;;  %v2323_v46 = vadd.f32 %v4107_v37, %v2314_v42  ;;  %v5217_v37 = vsub.s32 0, %v2479_v32 }
 0x4f2   : > { %v2325_v47 = vmax.f32 %v2323_v46, 0.0  ;;  %2344 = vrot.lane.b32.xlu0 %v2324_v44, %s5510_s10  ;;  %v4113_v46 = vld [vmem:[%s5562_s3] ss:$0 sm:$0xff]  ;;  %s5563_s3 = sld [smem:[#allocation16_spill]] }
 0x4f4   : > { %2346 = vrot.lane.b32.xlu1 %v2325_v47, %s5510_s10 }
 0x4f6   : > { %1779 = vrot.lane.b32.xlu0 %v5087_v26, %s5514_s16  ;;  %v2329_v26 = vpop.permute.xlu0 %2328 }
 0x4f8   : > { %1781 = vrot.lane.b32.xlu1 %v5093_v34, %s5514_s16  ;;  %v2337_v34 = vpop.permute.xlu1 %2336  ;;  %s5561_s16 = sld [smem:[#allocation12_spill]] }
 0x4fa   : > { %1787 = vrot.lane.b32.xlu0 %v5125_v18, %s5512_s15  ;;  %v2331_v52 = vpop.permute.xlu0 %2330  ;;  %v2350_v18 = vsel %vm1801_vm9, %v5085_v25, %v2329_v26 }
 0x4fb   : > { %v2352_v54 = vsel %vm1256_vm3, %v2350_v18, %v2337_v34  ;;  %v2351_v55 = vsel %vm1801_vm9, %v5091_v33, %v2331_v52 }
 0x4fc   : > { %1789 = vrot.lane.b32.xlu1 %v5127_v21, %s5512_s15  ;;  %v2339_v53 = vpop.permute.xlu1 %2338  ;;  %s5560_s15 = sld [smem:[#allocation11_spill]] }
 0x4fd   : > { %v2353_v57 = vsel %vm1256_vm3, %v2351_v55, %v2339_v53 }
 0x4fe   : > { %1795 = vrot.lane.b32.xlu0 %v1771_v3, %s5510_s10  ;;  %v4112_v42 = vld [vmem:[%s5561_s16] ss:$0 sm:$0xff]  ;;  %s5564_s16 = sld [smem:[#allocation15_spill]] }
 0x500   : > { %1797 = vrot.lane.b32.xlu1 %v1774_v6, %s5510_s10  ;;  %s5559_s10 = sld [smem:[#allocation14_spill]] }
 0x502   : > { %v2360_v17 = vld [vmem:[%s5560_s15] sm:$0x1]  ;;  %s5565_s15 = sld [smem:[#allocation18_spill]] }
 0x506   : > { %v4594_v16 = vld [vmem:[%s5559_s10] sm:$0xff]   ;;  %v4595_v51 = vld [vmem:[%s5559_s10 + $0x8] sm:$0xff]  }
 0x564   : > { %v2345_v21 = vpop.permute.xlu0 %2344 }
 0x565   : > { %v2354_v56 = vsel %vm1806_vm10, %v2352_v54, %v2345_v21 }
 0x566   : > { %v2347_v58 = vpop.permute.xlu1 %2346  ;;  %v2363_v60 = vsel %vm1558_vm7, %v2354_v56, 0.0 }
 0x567   : > { %v2355_v59 = vsel %vm1806_vm10, %v2353_v57, %v2347_v58 }
 0x568   : > { %v2364_v61 = vsel %vm1558_vm7, %v2355_v59, 0.0  ;;  %v1780_v35 = vpop.permute.xlu0 %1779 }
 0x569   : > { %v2365_v62 = vadd.f32 %v2364_v61, %v2363_v60  ;;  %v1802_v52 = vsel %vm1801_vm9, %v5085_v25, %v1780_v35  ;;  %v4596_v60 = vld [vmem:[%s5559_s10 + $0x10] sm:$0xff]   ;;  %v4597_v61 = vld [vmem:[%s5559_s10 + $0x18] sm:$0xff]   ;;  %v4135_v25 = vld [vmem:[%s5563_s3 + $0x2] sm:$0x3]  ;;  %s5573_s10 = sld [smem:[#allocation24_spill]] }
 0x56a   : > { %v1782_v36 = vpop.permute.xlu1 %1781 }
 0x56b   : > { %v2366_v63 = vrot.slane %v2365_v62, 4  ;;  %v1803_v53 = vsel %vm1801_vm9, %v5091_v33, %v1782_v36  ;;  %v2780_v33 = vsel %vm1820_vm8, %v4135_v25, 0 }
 0x56c   : > { %v1788_v39 = vpop.permute.xlu0 %1787 }
 0x56d   : > { %v2367_v0 = vadd.f32 %v2366_v63, %v2365_v62  ;;  %v1804_v18 = vsel %vm1256_vm3, %v1802_v52, %v1788_v39  ;;  %v2770_v63 = vld [vmem:[%s5563_s3] sm:$0x3] }
 0x56e   : > { %v1790_v40 = vpop.permute.xlu1 %1789 }
 0x56f   : > { %v2368_v1 = vrot.slane %v2367_v0, 2  ;;  %v1805_v54 = vsel %vm1256_vm3, %v1803_v53, %v1790_v40 }
 0x570   : > { %v1796_v49 = vpop.permute.xlu0 %1795 }
 0x571   : > { %v2369_v3 = vadd.f32 %v2368_v1, %v2367_v0  ;;  %v2845_v0 = vsel %vm1820_vm8, %v2770_v63, 0  ;;  %v4114_v1 = vld [vmem:[%s5564_s16] ss:$0 sm:$0xff] }
 0x572   : > { %v1798_v50 = vpop.permute.xlu1 %1797 }
 0x573   : > { %v2370_v4 = vrot.slane %v2369_v3, 1  ;;  %v1808_v57 = vsel %vm1806_vm10, %v1805_v54, %v1798_v50 }
 0x575   : > { %v2371_v5 = vadd.f32 %v2370_v4, %v2369_v3  ;;  %v4120_v3 = vld [vmem:[%s5564_s16 + $0x1] ss:$0 sm:$0xff] }
 0x577   : > { %v2373_v6 = vmul.f32 0.0625, %v2371_v5 }
 0x579   : > { %v2374_v8 = vpack.c.bf16 %v2373_v6, %v2373_v6 }
 0x57b   : > { %4369 = vmatmul.mubr.msk.bf16.vlgmr.msra.gmra.mrb[36].mxu0 %vm1558_vm7, %v2374_v8 }
 0x57c   : > { %4380 = vmatprep.mubr.msk.bf16.mxu0 %vm4732_vm1, %v4731_v2  ;;  %4379 = vmatpush3.bf16.msra.mxu0 %v4594_v16 }
 0x57d   : > { %4390 = vmatprep.subr.bf16.mxu0 %v4731_v2 }
 0x64e   : > { %v2418_v10 = vpop.f32.mrb[36].mxu0 }
 0x64f   : > { %v2419_v11 = vadd.f32 %v2418_v10, %v2358_v9  ;;  %v4370_v12 = vpop.f32.mrb[37].mxu0 }
 0x650   : > { %v2421_v13 = vpop.f32.mrb[38].mxu0 }
 0x651   : > { %v2424_v14 = vmax.f32 %v2419_v11, 0.0  ;;  %v4371_v15 = vpop.f32.mrb[39].mxu0 }
 0x653   : > { %v2425_v45 = vpack.c.bf16 %v2424_v14, %v2424_v14 }
 0x655   : > { %4375 = vmatmul.mubr.msk.bf16.vlgmr.msra.gmra.mrb[36].mxu1 %vm1256_vm3, %v2425_v45 }
 0x656   : > { %4386 = vmatprep.mubr.msk.bf16.mxu1 %vm4732_vm1, %v4731_v2  ;;  %4385 = vmatpush3.bf16.msra.mxu1 %v4595_v51  ;;  %v4138_v51 = vld [vmem:[%s5563_s3 + $0x4] sm:$0x3]  ;;  %s5566_s3 = sld [smem:[#allocation17_spill]] }
 0x657   : > { %4396 = vmatprep.subr.bf16.mxu1 %v4731_v2 }
 0x728   : > { %v2466_v19 = vpop.f32.mrb[36].mxu1 }
 0x729   : > { %v2467_v20 = vadd.f32 %v2466_v19, %v2360_v17  ;;  %v4376_v22 = vpop.f32.mrb[37].mxu1 }
 0x72a   : > { %v2469_v23 = vpop.f32.mrb[38].mxu1 }
 0x72b   : > { %v4111_v24 = vmul.f32 -1.442695, %v2467_v20  ;;  %v4377_v27 = vpop.f32.mrb[39].mxu1  ;;  %v2908_v20 = vsel %vm1820_vm8, %v4138_v51, 0 }
 0x72d   : > { %4605 = vpow2.f32 %v4111_v24 }
 0x737   : > { %v4606_v28 = vpop.eup %4605 }
 0x738   : > { %v2475_v30 = vadd.f32 1.0, %v4606_v28 }
 0x73a   : > { %4607 = vrcp.f32 %v2475_v30 }
 0x744   : > { %v4608_v38 = vpop.eup %4607 }
 0x745   : > { %v2481_v41 = vrot.slane %v4608_v38, %v5217_v37 }
 0x747   : > { %v2482_v43 = vmul.f32 %v2481_v41, %v2354_v56  ;;  %v2483_v44 = vmul.f32 %v2481_v41, %v2355_v59  ;;  %v1807_v56 = vsel %vm1806_vm10, %v1804_v18, %v1796_v49 }
 0x749   : > { %v2490_v47 = vmul.f32 %v4112_v42, %v2482_v43  ;;  %v2491_v48 = vmul.f32 %v4112_v42, %v2483_v44 }
 0x74b   : > { %v2498_v26 = vadd.f32 %v4113_v46, %v2490_v47  ;;  %v2499_v34 = vadd.f32 %v4113_v46, %v2491_v48 }
 0x74d   : > { %v2500_v21 = vmax.f32 %v2498_v26, 0.0  ;;  %v2501_v55 = vmax.f32 %v2499_v34, 0.0  ;;  %v5279_v34 = vor.u32 %v2901_v31, %v5027_v29  ;;  %v4141_v29 = vld [vmem:[%s5565_s15 + $0x2] sm:$0x3] }
 0x74f   : > { %v2502_v58 = vadd.f32 %v2500_v21, %v1807_v56  ;;  %v2503_v59 = vadd.f32 %v2501_v55, %v1808_v57  ;;  %v2976_v55 = vsel %vm1820_vm8, %v4141_v29, 0  ;;  %v2966_v56 = vld [vmem:[%s5565_s15] sm:$0x3] }
 0x750   : > { %v3040_v57 = vsel %vm1820_vm8, %v2966_v56, 0  ;;  %v3155_v29 = vld [vmem:[%s5568_s5] sm:$0x3] }
 0x751   : > { %v2506_v62 = vpack.c.bf16 %v2503_v59, %v2502_v58 }
 0x753   : > { %4381 = vmatmul.mubr.msk.bf16.vlgmr.msra.gmra.mrb[40].mxu0 %vm1558_vm7, %v2506_v62  ;;  %4387 = vmatmul.mubr.msk.bf16.vlgmr.msra.gmra.mrb[40].mxu1 %vm1558_vm7, %v2506_v62 }
 0x754   : > { %4391 = vmatpush3.bf16.msra.mxu0 %v4596_v60  ;;  %4397 = vmatpush3.bf16.msra.mxu1 %v4597_v61 }
 0x755   : > { %4392 = vmatprep.mubr.msk.bf16.mxu0 %vm4732_vm1, %v4731_v2  ;;  %4398 = vmatprep.mubr.msk.bf16.mxu1 %vm4732_vm1, %v4731_v2 }
 0x756   : > { %4402 = vmatprep.subr.bf16.mxu0 %v4731_v2  ;;  %4408 = vmatprep.subr.bf16.mxu1 %v4731_v2 }
 0x75b   : > { %4393 = vmatmul.mubr.msk.bf16.vlgmr.msra.gmra.mrb[44].mxu0 %vm1558_vm7, %v2506_v62  ;;  %4399 = vmatmul.mubr.msk.bf16.vlgmr.msra.gmra.mrb[44].mxu1 %vm1558_vm7, %v2506_v62 }
 0x75c   : > { %4404 = vmatprep.mubr.msk.bf16.mxu0 %vm4732_vm1, %v4731_v2  ;;  %4410 = vmatprep.mubr.msk.bf16.mxu1 %vm4732_vm1, %v4731_v2 }
 0x75d   : > { %4403 = vmatpush3.bf16.msra.mxu0 %v2780_v33  ;;  %4409 = vmatpush3.bf16.msra.mxu1 %v2845_v0  ;;  %v4140_v0 = vld [vmem:[%s5566_s3] ss:$0 sm:$0xff]  ;;  %s5567_s3 = smov 4  }
 0x75e   : > { %4414 = vmatprep.subr.bf16.mxu0 %v4731_v2  ;;  %4420 = vmatprep.subr.bf16.mxu1 %v4731_v2 }
 0x826   : > { %v2557_v4 = vpop.f32.mrb[40].mxu0  ;;  %v2615_v5 = vpop.f32.mrb[40].mxu1 }
 0x827   : > { %v5254_v6 = vadd.f32 %v4114_v1, %v2557_v4  ;;  %v5256_v8 = vadd.f32 %v4120_v3, %v2615_v5  ;;  %v4382_v9 = vpop.f32.mrb[41].mxu0  ;;  %v4388_v10 = vpop.f32.mrb[41].mxu1 }
 0x828   : > { %v2560_v11 = vpop.f32.mrb[42].mxu0  ;;  %v2618_v12 = vpop.f32.mrb[42].mxu1 }
 0x829   : > { %v2768_v13 = vadd.f32 %v5256_v8, %v5254_v6  ;;  %v5260_v14 = vadd.f32 %v4114_v1, %v2560_v11  ;;  %v5262_v15 = vadd.f32 %v4120_v3, %v2618_v12  ;;  %v4383_v45 = vpop.f32.mrb[43].mxu0  ;;  %v4389_v16 = vpop.f32.mrb[43].mxu1  ;;  %v4126_v11 = vld [vmem:[%s5564_s16 + $0x2] ss:$0 sm:$0xff] }
 0x82b   : > { %v2771_v17 = vpack.c.bf16 %v2768_v13, %v4731_v2  ;;  %v2769_v19 = vadd.f32 %v5262_v15, %v5260_v14 }
 0x82d   : > { %v2825_v22 = vshrl.u32 %v2771_v17, 16  ;;  %v2828_v23 = vshll.u32 %v2771_v17, 16  ;;  %v2772_v24 = vpack.c.bf16 %v2769_v19, %v2769_v19  ;;  %v2775_v27 = vpack.c.bf16 %v2769_v19, %v2768_v13 }
 0x82e   : > { %v2673_v28 = vpop.f32.mrb[44].mxu0  ;;  %v5269_v30 = vpop.f32.mrb[44].mxu1 }
 0x82f   : > { %v2827_v32 = vrot.slane %v2825_v22, 2  ;;  %v2830_v35 = vrot.slane %v2828_v23, 3  ;;  %v2833_v36 = vshrl.u32 %v2772_v24, 16  ;;  %v2836_v38 = vshll.u32 %v2772_v24, 16  ;;  %v4394_v39 = vpop.f32.mrb[45].mxu0  ;;  %v4400_v40 = vpop.f32.mrb[45].mxu1  ;;  %4405 = vmatmul.mubr.msk.bf16.vlgmr.msra.gmra.mrb[48].mxu0 %vm1801_vm9, %v2775_v27 }
 0x830   : > { %v2891_v41 = vshrl.u32 %v2775_v27, 16  ;;  %v2894_v42 = vshll.u32 %v2775_v27, 16  ;;  %v2676_v43 = vpop.f32.mrb[46].mxu0  ;;  %v5273_v44 = vpop.f32.mrb[46].mxu1  ;;  %4415 = vmatpush3.bf16.msra.mxu0 %v2908_v20  ;;  %4416 = vmatprep.mubr.msk.bf16.mxu0 %vm4732_vm1, %v4731_v2  ;;  %v5298_v16 = vadd.f32 %v4126_v11, %v2673_v28  ;;  %v4144_v23 = vld [vmem:[%s5565_s15 + $0x4] sm:$0x3] }
 0x831   : > { %v2835_v46 = vrot.slane %v2833_v36, 2  ;;  %v2838_v47 = vrot.slane %v2836_v38, 3  ;;  %v4395_v48 = vpop.f32.mrb[47].mxu0  ;;  %v4401_v49 = vpop.f32.mrb[47].mxu1  ;;  %4426 = vmatprep.subr.bf16.mxu0 %v4731_v2  ;;  %v2831_v52 = vor.u32 %v2830_v35, %v2827_v32  ;;  %v5300_v19 = vadd.f32 %v4126_v11, %v2676_v43 }
 0x832   : > { %v2893_v50 = vrot.slane %v2891_v41, 1  ;;  %v2896_v26 = vrot.slane %v2894_v42, 2  ;;  %v3097_v31 = vsel %vm1820_vm8, %v4144_v23, 0  ;;  %v4150_v23 = vld [vmem:[%s5568_s5 + $0x4] sm:$0x3] }
 0x833   : > { %v2839_v53 = vor.u32 %v2838_v47, %v2835_v46 }
 0x834   : > { %v2897_v18 = vor.u32 %v2896_v26, %v2893_v50 }
 0x835   : > { %v2840_v54 = vsel %vm2823_vm11, %v2831_v52, %v2839_v53 }
 0x836   : > { %4411 = vmatmul.mubr.msk.bf16.vlgmr.msra.gmra.mrb[48].mxu1 %vm1801_vm9, %v2840_v54  ;;  %v2903_v21 = vsel %vm2890_vm12, %v2897_v18, %v5279_v34  ;;  %v4147_v54 = vld [vmem:[%s5568_s5 + $0x2] sm:$0x3]  ;;  %s5571_s5 = sld [smem:[#allocation21_spill]] }
 0x837   : > { %4417 = vmatmul.mubr.msk.bf16.vlgmr.msra.gmra.mrb[52].mxu0 %vm1801_vm9, %v2903_v21  ;;  %4422 = vmatprep.mubr.msk.bf16.mxu1 %vm4732_vm1, %v4731_v2  ;;  %v3165_v21 = vsel %vm1820_vm8, %v4147_v54, 0 }
 0x838   : > { %4428 = vmatprep.mubr.msk.bf16.mxu0 %vm4732_vm1, %v4731_v2  ;;  %4421 = vmatpush3.bf16.msra.mxu1 %v2976_v55  ;;  %v3229_v55 = vsel %vm1820_vm8, %v3155_v29, 0 }
 0x839   : > { %4432 = vmatprep.subr.bf16.mxu1 %v4731_v2  ;;  %4427 = vmatpush3.bf16.msra.mxu0 %v3040_v57 }
 0x83a   : > { %4438 = vmatprep.subr.bf16.mxu0 %v4731_v2 }
 0x902   : > { %v2816_v58 = vpop.f32.mrb[48].mxu0 }
 0x903   : > { %v4406_v59 = vpop.f32.mrb[49].mxu0 }
 0x904   : > { %v2819_v60 = vpop.f32.mrb[50].mxu0 }
 0x905   : > { %v4407_v61 = vpop.f32.mrb[51].mxu0 }
 0x909   : > { %v2881_v62 = vpop.f32.mrb[48].mxu1 }
 0x90a   : > { %v2882_v25 = vadd.f32 %v2881_v62, %v2816_v58  ;;  %v4412_v33 = vpop.f32.mrb[49].mxu1  ;;  %v2944_v63 = vpop.f32.mrb[52].mxu0 }
 0x90b   : > { %v2884_v1 = vpop.f32.mrb[50].mxu1  ;;  %v4418_v3 = vpop.f32.mrb[53].mxu0  ;;  %v4146_v33 = vld [vmem:[%s5569_s6] ss:$0 sm:$0xff]  ;;  %s5570_s6 = smov 8  }
 0x90c   : > { %v2951_v4 = vadd.f32 %v2944_v63, %v2882_v25  ;;  %v2885_v5 = vadd.f32 %v2884_v1, %v2819_v60  ;;  %v4413_v9 = vpop.f32.mrb[51].mxu1  ;;  %v2947_v10 = vpop.f32.mrb[54].mxu0 }
 0x90d   : > { %v4419_v12 = vpop.f32.mrb[55].mxu0  ;;  %v4132_v9 = vld [vmem:[%s5564_s16 + $0x3] ss:$0 sm:$0xff] }
 0x90e   : > { %v2960_v13 = vadd.f32 %v4140_v0, %v2951_v4  ;;  %v2952_v45 = vadd.f32 %v2947_v10, %v2885_v5 }
 0x910   : > { %v2962_v51 = vmax.f32 %v2960_v13, 0.0  ;;  %v2961_v17 = vadd.f32 %v4140_v0, %v2952_v45  ;;  %v5331_v13 = vadd.f32 %v4132_v9, %v5269_v30  ;;  %v3286_v30 = vsel %vm1820_vm8, %v4150_v23, 0 }
 0x912   : > { %v2964_v20 = vadd.f32 %v2962_v51, %v5298_v16  ;;  %v2963_v22 = vmax.f32 %v2961_v17, 0.0  ;;  %3344 = vrot.lane.b32.xlu0 %v2962_v51, %s5567_s3  ;;  %v5334_v17 = vadd.f32 %v4132_v9, %v5273_v44  ;;  %v3375_v9 = vld [vmem:[%s5573_s10] sm:$0xf]  ;;  %s5578_s10 = sld [smem:[#allocation25_spill]] }
 0x914   : > { %v2967_v24 = vpack.c.bf16 %v2964_v20, %v4731_v2  ;;  %v2965_v27 = vadd.f32 %v2963_v22, %v5300_v19  ;;  %3346 = vrot.lane.b32.xlu1 %v2963_v22, %s5567_s3 }
 0x916   : > { %v3020_v28 = vshrl.u32 %v2967_v24, 16  ;;  %v3023_v32 = vshll.u32 %v2967_v24, 16  ;;  %v2968_v35 = vpack.c.bf16 %v2965_v27, %v2965_v27  ;;  %v2971_v36 = vpack.c.bf16 %v2965_v27, %v2964_v20 }
 0x918   : > { %v3022_v38 = vrot.slane %v3020_v28, 2  ;;  %v3025_v39 = vrot.slane %v3023_v32, 3  ;;  %v3028_v40 = vshrl.u32 %v2968_v35, 16  ;;  %v3031_v41 = vshll.u32 %v2968_v35, 16  ;;  %4423 = vmatmul.mubr.msk.bf16.vlgmr.msra.gmra.mrb[52].mxu1 %vm1801_vm9, %v2971_v36 }
 0x919   : > { %v3085_v42 = vshrl.u32 %v2971_v36, 16  ;;  %v3088_v43 = vshll.u32 %v2971_v36, 16  ;;  %4433 = vmatpush3.bf16.msra.mxu1 %v3097_v31  ;;  %4434 = vmatprep.mubr.msk.bf16.mxu1 %vm4732_vm1, %v4731_v2 }
 0x91a   : > { %v3030_v46 = vrot.slane %v3028_v40, 2  ;;  %v3033_v47 = vrot.slane %v3031_v41, 3  ;;  %4444 = vmatprep.subr.bf16.mxu1 %v4731_v2  ;;  %v3026_v50 = vor.u32 %v3025_v39, %v3022_v38 }
 0x91b   : > { %v3087_v48 = vrot.slane %v3085_v42, 1  ;;  %v3090_v49 = vrot.slane %v3088_v43, 2 }
 0x91c   : > { %v3034_v26 = vor.u32 %v3033_v47, %v3030_v46 }
 0x91d   : > { %v3091_v52 = vor.u32 %v3090_v49, %v3087_v48 }
 0x91e   : > { %v3035_v53 = vsel %vm2823_vm11, %v3026_v50, %v3034_v26 }
 0x91f   : > { %4429 = vmatmul.mubr.msk.bf16.vlgmr.msra.gmra.mrb[56].mxu0 %vm1801_vm9, %v3035_v53  ;;  %v3092_v18 = vsel %vm2890_vm12, %v3091_v52, %v5279_v34 }
 0x920   : > { %4435 = vmatmul.mubr.msk.bf16.vlgmr.msra.gmra.mrb[56].mxu1 %vm1801_vm9, %v3092_v18  ;;  %4440 = vmatprep.mubr.msk.bf16.mxu0 %vm4732_vm1, %v4731_v2 }
 0x921   : > { %4446 = vmatprep.mubr.msk.bf16.mxu1 %vm4732_vm1, %v4731_v2  ;;  %4439 = vmatpush3.bf16.msra.mxu0 %v3165_v21 }
 0x922   : > { %4450 = vmatprep.subr.bf16.mxu0 %v4731_v2  ;;  %4445 = vmatpush3.bf16.msra.mxu1 %v3229_v55 }
 0x923   : > { %4456 = vmatprep.subr.bf16.mxu1 %v4731_v2 }
 0x9eb   : > { %v3012_v56 = vpop.f32.mrb[52].mxu1 }
 0x9ec   : > { %v4424_v57 = vpop.f32.mrb[53].mxu1 }
 0x9ed   : > { %v3015_v58 = vpop.f32.mrb[54].mxu1 }
 0x9ee   : > { %v4425_v59 = vpop.f32.mrb[55].mxu1 }
 0x9f2   : > { %v3076_v60 = vpop.f32.mrb[56].mxu0 }
 0x9f3   : > { %v3077_v61 = vadd.f32 %v3076_v60, %v3012_v56  ;;  %v4430_v62 = vpop.f32.mrb[57].mxu0  ;;  %v3133_v25 = vpop.f32.mrb[56].mxu1 }
 0x9f4   : > { %v3079_v63 = vpop.f32.mrb[58].mxu0  ;;  %v4436_v0 = vpop.f32.mrb[57].mxu1 }
 0x9f5   : > { %v3140_v1 = vadd.f32 %v3133_v25, %v3077_v61  ;;  %v3080_v3 = vadd.f32 %v3079_v63, %v3015_v58  ;;  %v4431_v4 = vpop.f32.mrb[59].mxu0  ;;  %v3136_v5 = vpop.f32.mrb[58].mxu1  ;;  %v4152_v58 = vld [vmem:[%s5571_s5] ss:$0 sm:$0xff]  ;;  %s5575_s5 = sld [smem:[#allocation23_spill]] }
 0x9f6   : > { %v4437_v10 = vpop.f32.mrb[59].mxu1 }
 0x9f7   : > { %v3149_v11 = vadd.f32 %v4146_v33, %v3140_v1  ;;  %v3141_v12 = vadd.f32 %v3136_v5, %v3080_v3  ;;  %v4598_v5 = vld [vmem:[%s5572_s8] sm:$0xff]   ;;  %v3445_v10 = vsel %vm1260_vm0, %v3375_v9, 0  ;;  %s5576_s8 = sld [smem:[#allocation28_spill]] }
 0x9f9   : > { %v3151_v45 = vmax.f32 %v3149_v11, 0.0  ;;  %v3150_v51 = vadd.f32 %v4146_v33, %v3141_v12 }
 0x9fb   : > { %v3153_v20 = vadd.f32 %v3151_v45, %v5331_v13  ;;  %v3152_v22 = vmax.f32 %v3150_v51, 0.0  ;;  %3352 = vrot.lane.b32.xlu0 %v3151_v45, %s5570_s6 }
 0x9fd   : > { %v3156_v24 = vpack.c.bf16 %v3153_v20, %v4731_v2  ;;  %v3154_v27 = vadd.f32 %v3152_v22, %v5334_v17  ;;  %3354 = vrot.lane.b32.xlu1 %v3152_v22, %s5570_s6 }
 0x9ff   : > { %v3209_v31 = vshrl.u32 %v3156_v24, 16  ;;  %v3212_v28 = vshll.u32 %v3156_v24, 16  ;;  %v3157_v32 = vpack.c.bf16 %v3154_v27, %v3154_v27  ;;  %v3160_v35 = vpack.c.bf16 %v3154_v27, %v3153_v20 }
 0xa01   : > { %v3211_v44 = vrot.slane %v3209_v31, 2  ;;  %v3214_v36 = vrot.slane %v3212_v28, 3  ;;  %v3217_v38 = vshrl.u32 %v3157_v32, 16  ;;  %v3220_v39 = vshll.u32 %v3157_v32, 16  ;;  %4441 = vmatmul.mubr.msk.bf16.vlgmr.msra.gmra.mrb[60].mxu0 %vm1801_vm9, %v3160_v35 }
 0xa02   : > { %v3274_v40 = vshrl.u32 %v3160_v35, 16  ;;  %v3277_v41 = vshll.u32 %v3160_v35, 16  ;;  %4451 = vmatpush3.bf16.msra.mxu0 %v3286_v30  ;;  %4452 = vmatprep.mubr.msk.bf16.mxu0 %vm4732_vm1, %v4731_v2 }
 0xa03   : > { %v3219_v42 = vrot.slane %v3217_v38, 2  ;;  %v3222_v43 = vrot.slane %v3220_v39, 3  ;;  %4462 = vmatprep.subr.bf16.mxu0 %v4731_v2  ;;  %v3215_v48 = vor.u32 %v3214_v36, %v3211_v44  ;;  %v3374_v39 = vld [vmem:[%s5575_s5] sm:$0x1]  ;;  %s5581_s5 = sld [smem:[#allocation30_spill]] }
 0xa04   : > { %v3276_v46 = vrot.slane %v3274_v40, 1  ;;  %v3279_v47 = vrot.slane %v3277_v41, 2 }
 0xa05   : > { %v3223_v49 = vor.u32 %v3222_v43, %v3219_v42 }
 0xa06   : > { %v3280_v50 = vor.u32 %v3279_v47, %v3276_v46 }
 0xa07   : > { %v3224_v26 = vsel %vm2823_vm11, %v3215_v48, %v3223_v49  ;;  %v4599_v49 = vld [vmem:[%s5576_s8] sm:$0xff]   ;;  %s5582_s8 = sld [smem:[#allocation32_spill]] }
 0xa08   : > { %4447 = vmatmul.mubr.msk.bf16.vlgmr.msra.gmra.mrb[60].mxu1 %vm1801_vm9, %v3224_v26  ;;  %v3281_v52 = vsel %vm2890_vm12, %v3280_v50, %v5279_v34  ;;  %v3376_v26 = vld [vmem:[%s5578_s10] sm:$0x1]  ;;  %s5584_s10 = sld [smem:[#allocation31_spill]] }
 0xa09   : > { %4453 = vmatmul.mubr.msk.bf16.vlgmr.msra.gmra.mrb[64].mxu0 %vm1801_vm9, %v3281_v52  ;;  %4458 = vmatprep.mubr.msk.bf16.mxu1 %vm4732_vm1, %v4731_v2 }
 0xa0a   : > { %4464 = vmatprep.mubr.msk.bf16.mxu0 %vm4732_vm1, %v4731_v2  ;;  %4457 = vmatpush3.bf16.msra.mxu1 %v4598_v5 }
 0xa0b   : > { %4468 = vmatprep.subr.bf16.mxu1 %v4731_v2  ;;  %4463 = vmatpush3.bf16.msra.mxu0 %v3445_v10 }
 0xa0c   : > { %4474 = vmatprep.subr.bf16.mxu0 %v4731_v2 }
 0xad4   : > { %v3201_v53 = vpop.f32.mrb[60].mxu0 }
 0xad5   : > { %v4442_v18 = vpop.f32.mrb[61].mxu0 }
 0xad6   : > { %v3204_v54 = vpop.f32.mrb[62].mxu0 }
 0xad7   : > { %v4443_v21 = vpop.f32.mrb[63].mxu0 }
 0xadb   : > { %v3265_v29 = vpop.f32.mrb[60].mxu1 }
 0xadc   : > { %v3266_v55 = vadd.f32 %v3265_v29, %v3201_v53  ;;  %v4448_v56 = vpop.f32.mrb[61].mxu1  ;;  %v3322_v57 = vpop.f32.mrb[64].mxu0 }
 0xadd   : > { %v3268_v59 = vpop.f32.mrb[62].mxu1  ;;  %v4454_v34 = vpop.f32.mrb[65].mxu0 }
 0xade   : > { %v3329_v60 = vadd.f32 %v3322_v57, %v3266_v55  ;;  %v3269_v61 = vadd.f32 %v3268_v59, %v3204_v54  ;;  %v4449_v62 = vpop.f32.mrb[63].mxu1  ;;  %v3325_v25 = vpop.f32.mrb[66].mxu0 }
 0xadf   : > { %v4455_v33 = vpop.f32.mrb[67].mxu0 }
 0xae0   : > { %v3338_v63 = vadd.f32 %v4152_v58, %v3329_v60  ;;  %v3330_v0 = vadd.f32 %v3325_v25, %v3269_v61 }
 0xae2   : > { %v3340_v1 = vmax.f32 %v3338_v63, 0.0  ;;  %v3339_v3 = vadd.f32 %v4152_v58, %v3330_v0 }
 0xae4   : > { %v3341_v4 = vmax.f32 %v3339_v3, 0.0  ;;  %3360 = vrot.lane.b32.xlu0 %v3340_v1, %s5574_s12 }
 0xae6   : > { %3362 = vrot.lane.b32.xlu1 %v3341_v4, %s5574_s12 }
 0xae8   : > { %2740 = vrot.lane.b32.xlu0 %v5256_v8, %s5567_s3  ;;  %v3345_v8 = vpop.permute.xlu0 %3344 }
 0xae9   : > { %v3366_v12 = vsel %vm1801_vm9, %v5254_v6, %v3345_v8 }
 0xaea   : > { %2742 = vrot.lane.b32.xlu1 %v5262_v15, %s5567_s3  ;;  %v3347_v15 = vpop.permute.xlu1 %3346  ;;  %s5579_s3 = sld [smem:[#allocation26_spill]] }
 0xaeb   : > { %v3367_v51 = vsel %vm1801_vm9, %v5260_v14, %v3347_v15 }
 0xaec   : > { %2748 = vrot.lane.b32.xlu0 %v5298_v16, %s5570_s6  ;;  %v3353_v16 = vpop.permute.xlu0 %3352 }
 0xaee   : > { %2750 = vrot.lane.b32.xlu1 %v5300_v19, %s5570_s6  ;;  %v3355_v11 = vpop.permute.xlu1 %3354  ;;  %v3368_v19 = vsel %vm1256_vm3, %v3366_v12, %v3353_v16  ;;  %s5580_s6 = sld [smem:[#allocation27_spill]] }
 0xaef   : > { %v3369_v20 = vsel %vm1256_vm3, %v3367_v51, %v3355_v11 }
 0xaf0   : > { %2756 = vrot.lane.b32.xlu0 %v5331_v13, %s5574_s12  ;;  %v4157_v62 = vld [vmem:[%s5579_s3] ss:$0 sm:$0xff]  ;;  %s5585_s3 = sshll.u32 %s5010_s26, 4  ;;  %s4738_s26 = smov 16  }
 0xaf2   : > { %2758 = vrot.lane.b32.xlu1 %v5334_v17, %s5574_s12  ;;  %s5577_s12 = sld [smem:[#allocation29_spill]] }
 0xaf4   : > { %v4158_v63 = vld [vmem:[%s5580_s6] ss:$0 sm:$0xff] }
 0xaf8   : > { %v4600_v50 = vld [vmem:[%s5577_s12] sm:$0xff]   ;;  %s5583_s12 = sld [smem:[#allocation6_spill]] }
 0xafe   : > { %s1227_s6 = scalar_lea.vmem %s5583_s12, %s5585_s3 }
 0xb56   : > { %v3361_v45 = vpop.permute.xlu0 %3360 }
 0xb57   : > { %v3370_v13 = vsel %vm1806_vm10, %v3368_v19, %v3361_v45 }
 0xb58   : > { %v3363_v22 = vpop.permute.xlu1 %3362  ;;  %v3379_v23 = vsel %vm1558_vm7, %v3370_v13, 0.0 }
 0xb59   : > { %v3371_v17 = vsel %vm1806_vm10, %v3369_v20, %v3363_v22  ;;  %v4601_v20 = vld [vmem:[%s5581_s5] sm:$0xff]   ;;  %s1216_s5 = sand.u32 1, %s4681_s1  }
 0xb5a   : > { %v3380_v24 = vsel %vm1558_vm7, %v3371_v17, 0.0  ;;  %v2741_v57 = vpop.permute.xlu0 %2740  ;;  %s1217_s12 = scalar_lea.vmem [#allocation2], %s1216_s5 }
 0xb5b   : > { %v3381_v27 = vadd.f32 %v3380_v24, %v3379_v23  ;;  %v2762_v10 = vsel %vm1801_vm9, %v5254_v6, %v2741_v57  ;;  %v1232_v57 = vld [vmem:[%s1227_s6 + $0x8] sm:$0xff] }
 0xb5c   : > { %v2743_v58 = vpop.permute.xlu1 %2742  ;;  %vm3790_vm0 = vcmp.eq.f32.partialorder %v1232_v57, 0.0 }
 0xb5d   : > { %v3382_v30 = vrot.slane %v3381_v27, 4  ;;  %v2763_v8 = vsel %vm1801_vm9, %v5260_v14, %v2743_v58 }
 0xb5e   : > { %v2749_v34 = vpop.permute.xlu0 %2748 }
 0xb5f   : > { %v3383_v31 = vadd.f32 %v3382_v30, %v3381_v27  ;;  %v2764_v15 = vsel %vm1256_vm3, %v2762_v10, %v2749_v34 }
 0xb60   : > { %v2751_v60 = vpop.permute.xlu1 %2750 }
 0xb61   : > { %v3384_v28 = vrot.slane %v3383_v31, 2  ;;  %v2765_v16 = vsel %vm1256_vm3, %v2763_v8, %v2751_v60 }
 0xb62   : > { %v2757_v3 = vpop.permute.xlu0 %2756 }
 0xb63   : > { %v3385_v32 = vadd.f32 %v3384_v28, %v3383_v31  ;;  %v2766_v19 = vsel %vm1806_vm10, %v2764_v15, %v2757_v3 }
 0xb64   : > { %v2759_v4 = vpop.permute.xlu1 %2758 }
 0xb65   : > { %v3386_v35 = vrot.slane %v3385_v32, 1  ;;  %v2767_v45 = vsel %vm1806_vm10, %v2765_v16, %v2759_v4 }
 0xb67   : > { %v3387_v44 = vadd.f32 %v3386_v35, %v3385_v32 }
 0xb69   : > { %v3388_v36 = vmul.f32 0.0625, %v3387_v44 }
 0xb6b   : > { %v3389_v38 = vpack.c.bf16 %v3388_v36, %v3388_v36 }
 0xb6d   : > { %4459 = vmatmul.mubr.msk.bf16.vlgmr.msra.gmra.mrb[64].mxu1 %vm1558_vm7, %v3389_v38 }
 0xb6e   : > { %4470 = vmatprep.mubr.msk.bf16.mxu1 %vm4732_vm1, %v4731_v2  ;;  %4469 = vmatpush3.bf16.msra.mxu1 %v4599_v49 }
 0xb6f   : > { %4480 = vmatprep.subr.bf16.mxu1 %v4731_v2 }
 0xc40   : > { %v3433_v40 = vpop.f32.mrb[64].mxu1 }
 0xc41   : > { %v3434_v41 = vadd.f32 %v3433_v40, %v3374_v39  ;;  %v4460_v42 = vpop.f32.mrb[65].mxu1 }
 0xc42   : > { %v3436_v43 = vpop.f32.mrb[66].mxu1 }
 0xc43   : > { %v3439_v46 = vmax.f32 %v3434_v41, 0.0  ;;  %v4461_v47 = vpop.f32.mrb[67].mxu1 }
 0xc45   : > { %v3440_v48 = vpack.c.bf16 %v3439_v46, %v3439_v46 }
 0xc47   : > { %4465 = vmatmul.mubr.msk.bf16.vlgmr.msra.gmra.mrb[68].mxu0 %vm1256_vm3, %v3440_v48 }
 0xc48   : > { %4476 = vmatprep.mubr.msk.bf16.mxu0 %vm4732_vm1, %v4731_v2  ;;  %4475 = vmatpush3.bf16.msra.mxu0 %v4600_v50 }
 0xc49   : > { %4486 = vmatprep.subr.bf16.mxu0 %v4731_v2 }
 0xd1a   : > { %v3481_v52 = vpop.f32.mrb[68].mxu0 }
 0xd1b   : > { %v3482_v53 = vadd.f32 %v3481_v52, %v3376_v26  ;;  %v4466_v18 = vpop.f32.mrb[69].mxu0 }
 0xd1c   : > { %v3484_v54 = vpop.f32.mrb[70].mxu0 }
 0xd1d   : > { %v4156_v21 = vmul.f32 -1.442695, %v3482_v53  ;;  %v4467_v29 = vpop.f32.mrb[71].mxu0 }
 0xd1f   : > { %4609 = vpow2.f32 %v4156_v21 }
 0xd29   : > { %v4610_v55 = vpop.eup %4609 }
 0xd2a   : > { %v3490_v56 = vadd.f32 1.0, %v4610_v55  ;;  %v4602_v55 = vld [vmem:[%s5582_s8] sm:$0xff]   ;;  %s4172_s8 = sshll.u32 %s4971_s0, 4  ;;  %s4739_s0 = smov [#allocation2]  }
 0xd2b   : > { %s5465_s3 = scalar_lea.hbm %s4948_s27, %s4172_s8 }
 0xd2c   : > { %4611 = vrcp.f32 %v3490_v56  ;;  %v1231_v56 = vld [vmem:[%s1227_s6] sm:$0xff]  ;;  %s3932_s6 = scalar_lea.sflag [#allocation3], %s1216_s5 }
 0xd2d   : > { %vm3789_vm15 = vcmp.eq.f32.partialorder %v1231_v56, 0.0 }
 0xd2e   : > { %v3791_v58 = vsel %vm3789_vm15, 1, %v4733_v7 }
 0xd2f   : > { %3794 = vperm.xlu0 %4587, %v3791_v58  }
 0xd36   : > { %v4612_v59 = vpop.eup %4611 }
 0xd37   : > { %v3496_v61 = vrot.slane %v4612_v59, %v5217_v37  ;;  %v3792_v59 = vsel %vm3790_vm0, 1, %v4733_v7 }
 0xd38   : > { %3797 = vperm.xlu1 %4588, %v3792_v59  }
 0xd39   : > { %v3497_v25 = vmul.f32 %v3496_v61, %v3370_v13  ;;  %v3498_v33 = vmul.f32 %v3496_v61, %v3371_v17 }
 0xd3b   : > { %v3505_v0 = vmul.f32 %v4157_v62, %v3497_v25  ;;  %v3506_v1 = vmul.f32 %v4157_v62, %v3498_v33  ;;  %v4159_v25 = vld [vmem:[%s5584_s10] ss:$0 sm:$0xff]  ;;  %s3944_s10 = sshll.u32 %s1217_s12, 4  ;;  %s5467_s10 = int_to_ptr.vmem [resolvable:$true] %s3944_s10 }
 0xd3d   : > { %v3513_v5 = vadd.f32 %v4158_v63, %v3505_v0  ;;  %v3514_v9 = vadd.f32 %v4158_v63, %v3506_v1 }
 0xd3f   : > { %v3515_v11 = vmax.f32 %v3513_v5, 0.0  ;;  %v3516_v12 = vmax.f32 %v3514_v9, 0.0 }
 0xd41   : > { %v5409_v51 = vadd.f32 %v3515_v11, %v2766_v19  ;;  %v5411_v13 = vadd.f32 %v3516_v12, %v2767_v45 }
 0xd43   : > { %v3529_v6 = vpack.c.bf16 %v5411_v13, %v5409_v51  ;;  %v3586_v14 = vsel %vm1558_vm7, %v5409_v51, 0.0  ;;  %v3587_v22 = vsel %vm1558_vm7, %v5411_v13, 0.0 }
 0xd44   : > { %v3588_v17 = vadd.f32 %v3587_v22, %v3586_v14  ;;  %v4603_v14 = vld [vmem:[%s5551_s9] sm:$0xff]   ;;  %v4604_v22 = vld [vmem:[%s5551_s9 + $0x8] sm:$0xff]  }
 0xd45   : > { %4471 = vmatmul.mubr.msk.bf16.vlgmr.msra.gmra.mrb[68].mxu1 %vm1558_vm7, %v3529_v6 }
 0xd46   : > { %v3589_v23 = vrot.slane %v3588_v17, 4  ;;  %4481 = vmatpush3.bf16.msra.mxu1 %v4601_v20  ;;  %4482 = vmatprep.mubr.msk.bf16.mxu1 %vm4732_vm1, %v4731_v2 }
 0xd47   : > { %4492 = vmatprep.subr.bf16.mxu1 %v4731_v2 }
 0xd48   : > { %v3590_v24 = vadd.f32 %v3589_v23, %v3588_v17  ;;  %v4166_v17 = vld [vmem:[%s5586_s4] ss:$0 sm:$0xff]  ;;  %s4631_s4 = sshll.u32 %s4739_s0, 4  ;;  %s4632_s4 = int_to_ptr.vmem [resolvable:$false] %s4631_s4 }
 0xd49   : > { %s4633_s9 = scalar_lea.vmem %s4632_s4, 32  ;;  %p4634_p0 = scmp.lt.s32.totalorder %s5467_s10, %s4632_s4 }
 0xd4a   : > { %v3591_v27 = vrot.slane %v3590_v24, 2 }
 0xd4c   : > { %v3592_v30 = vadd.f32 %v3591_v27, %v3590_v24 }
 0xd4e   : > { %v3593_v31 = vrot.slane %v3592_v30, 1 }
 0xd50   : > { %v3594_v28 = vadd.f32 %v3593_v31, %v3592_v30 }
 0xd52   : > { %v3595_v32 = vmul.f32 0.0625, %v3594_v28 }
 0xd54   : > { %v3596_v35 = vsub.f32 %v5409_v51, %v3595_v32  ;;  %v3597_v44 = vsub.f32 %v5411_v13, %v3595_v32  ;;  %v3618_v36 = vpack.c.bf16 %v3595_v32, %v3595_v32 }
 0xd56   : > { %v3598_v38 = vmul.f32 %v3596_v35, %v3596_v35  ;;  %v3599_v39 = vmul.f32 %v3597_v44, %v3597_v44  ;;  %4477 = vmatmul.mubr.msk.bf16.vlgmr.msra.gmra.mrb[72].mxu0 %vm1558_vm7, %v3618_v36 }
 0xd57   : > { %4488 = vmatprep.mubr.msk.bf16.mxu0 %vm4732_vm1, %v4731_v2  ;;  %4487 = vmatpush3.bf16.msra.mxu0 %v4602_v55 }
 0xd58   : > { %v3600_v40 = vsel %vm1558_vm7, %v3598_v38, 0.0  ;;  %v3601_v41 = vsel %vm1558_vm7, %v3599_v39, 0.0 }
 0xd59   : > { %v3602_v42 = vadd.f32 %v3601_v41, %v3600_v40 }
 0xd5b   : > { %v3603_v43 = vrot.slane %v3602_v42, 4 }
 0xd5d   : > { %v3604_v46 = vadd.f32 %v3603_v43, %v3602_v42 }
 0xd5f   : > { %v3605_v47 = vrot.slane %v3604_v46, 2 }
 0xd61   : > { %v3606_v48 = vadd.f32 %v3605_v47, %v3604_v46 }
 0xd63   : > { %v3607_v49 = vrot.slane %v3606_v48, 1 }
 0xd65   : > { %v3608_v50 = vadd.f32 %v3607_v49, %v3606_v48 }
 0xd67   : > { %v3610_v26 = vmul.f32 0.06666667, %v3608_v50 }
 0xd69   : > { %4613 = vrsqrt.f32 %v3610_v26  ;;  %vm3613_vm13 = vcmp.eq.f32.partialorder %v3610_v26, inf  ;;  %v3616_v18 = vand.u32 2147483648, %v3610_v26  ;;  %vm3615_vm14 = vcmp.eq.f32.partialorder %v3610_v26, 0.0 }
 0xd73   : > { %v4614_v52 = vpop.eup %4613 }
 0xd74   : > { %v3612_v53 = vmul.f32 %v4614_v52, %v3610_v26 }
 0xd76   : > { %v3614_v54 = vsel %vm3613_vm13, %v3610_v26, %v3612_v53 }
 0xd77   : > { %v3617_v21 = vsel %vm3615_vm14, %v3616_v18, %v3614_v54 }
 0xd78   : > { %v3674_v29 = vpack.c.bf16 %v3617_v21, %v3617_v21 }
 0xd7a   : > { %4483 = vmatmul.mubr.msk.bf16.vlgmr.msra.gmra.mrb[72].mxu1 %vm1558_vm7, %v3674_v29 }
 0xd7b   : > { %4496 = vmatprep.mubr.msk.bf16.mxu1 %vm4732_vm1, %v4731_v2  ;;  %4493 = vmatpush3.bf16.msra.mxu1 %v4603_v14 }
 0xd7c   : > { %4494 = vmatprep.subr.bf16.mxu1 %v4731_v2 }
 0xd7f   : > { %4495 = vmatpush3.bf16.msra.mxu1 %v4604_v22 }
 0xdb7   : > { %v3798_v23 = vpop.permute.xlu1 %3797 }
 0xdb8   : > { %vm3800_vm2 = vcmp.eq.s32.totalorder %v3798_v23, 1 }
 0xe18   : > { %v3579_v34 = vpop.f32.mrb[68].mxu1 }
 0xe19   : > { %v4472_v60 = vpop.f32.mrb[69].mxu1  ;;  %v3580_v63 = vadd.f32 %v4159_v25, %v3579_v34 }
 0xe1a   : > { %v3582_v61 = vpop.f32.mrb[70].mxu1 }
 0xe1b   : > { %v4473_v62 = vpop.f32.mrb[71].mxu1  ;;  %v3583_v0 = vadd.f32 %v4159_v25, %v3582_v61 }
 0xe29   : > { %v3662_v33 = vpop.f32.mrb[72].mxu0 }
 0xe2a   : > { %v3671_v1 = vrot.slane %v3662_v33, %v5217_v37  ;;  %v4478_v3 = vpop.f32.mrb[73].mxu0 }
 0xe2b   : > { %v3665_v4 = vpop.f32.mrb[74].mxu0 }
 0xe2c   : > { %v3672_v5 = vadd.f32 %v3671_v1, %v3580_v63  ;;  %v3673_v9 = vadd.f32 %v3671_v1, %v3583_v0  ;;  %v4479_v10 = vpop.f32.mrb[75].mxu0 }
 0xe4d   : > { %v3718_v7 = vpop.f32.mrb[72].mxu1 }
 0xe4e   : > { %v3727_v8 = vrot.slane %v3718_v7, %v5217_v37  ;;  %v4484_v15 = vpop.f32.mrb[73].mxu1  ;;  %v3795_v37 = vpop.permute.xlu0 %3794 }
 0xe4f   : > { %v3721_v16 = vpop.f32.mrb[74].mxu1  ;;  %vm3799_vm1 = vcmp.eq.s32.totalorder %v3795_v37, 1 }
 0xe50   : > { %v3728_v11 = vadd.f32 %v3727_v8, %v3672_v5  ;;  %v3729_v12 = vadd.f32 %v3727_v8, %v3673_v9  ;;  %v4485_v19 = vpop.f32.mrb[75].mxu1 }
 0xe52   : > { %4615 = vtanh.f32 %v3728_v11 }
 0xe53   : > { %4617 = vtanh.f32 %v3729_v12 }
 0xe5c   : > { %v4616_v45 = vpop.eup %4615 }
 0xe5d   : > { %v4618_v20 = vpop.eup %4617 }
 0xe5e   : > { %v3732_v6 = vpack.c.bf16 %v4618_v20, %v4616_v45 }
 0xe60   : > { %4489 = vmatmul.mubr.msk.bf16.vlgmr.msra.gmra.mrb[76].mxu0 %vm1558_vm7, %v3732_v6 }
 0xf33   : > { %v3782_v24 = vpop.f32.mrb[76].mxu0 }
 0xf34   : > { %v3783_v27 = vadd.f32 %v4166_v17, %v3782_v24  ;;  %v4490_v30 = vpop.f32.mrb[77].mxu0 }
 0xf35   : > { %v3785_v31 = vpop.f32.mrb[78].mxu0 }
 0xf36   : > { %v3801_v28 = vsel %vm3799_vm1, -1e+09, %v3783_v27  ;;  %v3786_v32 = vadd.f32 %v4166_v17, %v3785_v31  ;;  %v4491_v35 = vpop.f32.mrb[79].mxu0 }
 0xf37   : > { %v3803_v36 = vsel %vm1558_vm7, %v3801_v28, -inf }
 0xf38   : > { %v3802_v44 = vsel %vm3800_vm2, -1e+09, %v3786_v32 }
 0xf39   : > { %v3804_v38 = vsel %vm1558_vm7, %v3802_v44, -inf }
 0xf3a   : > { %v3805_v39 = vmax.f32 %v3803_v36, %v3804_v38 }
 0xf3c   : > { %v3806_v2 = vrot.slane %v3805_v39, 4 }
 0xf3e   : > { %v3807_v40 = vmax.f32 %v3805_v39, %v3806_v2 }
 0xf40   : > { %v3808_v41 = vrot.slane %v3807_v40, 2 }
 0xf42   : > { %v3809_v42 = vmax.f32 %v3807_v40, %v3808_v41 }
 0xf44   : > { %v3810_v43 = vrot.slane %v3809_v42, 1 }
 0xf46   : > { %v3811_v46 = vmax.f32 %v3809_v42, %v3810_v43 }
 0xf48   : > { %v3812_v47 = vsub.f32 %v3801_v28, %v3811_v46  ;;  %v3813_v48 = vsub.f32 %v3802_v44, %v3811_v46  ;;  %v3871_v28 = vld [vmem:[%s4943_s20] sm:$0x1] }
 0xf4a   : > { %v3814_v49 = vmul.f32 1.442695, %v3812_v47  ;;  %v3816_v50 = vmul.f32 1.442695, %v3813_v48 }
 0xf4c   : > { %4619 = vpow2.f32 %v3814_v49 }
 0xf4d   : > { %4621 = vpow2.f32 %v3816_v50 }
 0xf56   : > { %v4620_v26 = vpop.eup %4619 }
 0xf57   : > { %v4622_v52 = vpop.eup %4621  ;;  %v3818_v53 = vsel %vm1558_vm7, %v4620_v26, 0.0 }
 0xf58   : > { %v3819_v18 = vsel %vm1558_vm7, %v4622_v52, 0.0 }
 0xf59   : > { %v3820_v54 = vadd.f32 %v3819_v18, %v3818_v53 }
 0xf5b   : > { %v3821_v21 = vrot.slane %v3820_v54, 4 }
 0xf5d   : > { %v3822_v29 = vadd.f32 %v3821_v21, %v3820_v54 }
 0xf5f   : > { %v3823_v55 = vrot.slane %v3822_v29, 2 }
 0xf61   : > { %v3824_v56 = vadd.f32 %v3823_v55, %v3822_v29 }
 0xf63   : > { %v3825_v57 = vrot.slane %v3824_v56, 1 }
 0xf65   : > { %v3826_v58 = vadd.f32 %v3825_v57, %v3824_v56 }
 0xf67   : > { %4623 = vrcp.f32 %v3826_v58 }
 0xf71   : > { %v4624_v59 = vpop.eup %4623 }
 0xf72   : > { %v3828_v34 = vmul.f32 %v4624_v59, %v4620_v26  ;;  %v3829_v60 = vmul.f32 %v4624_v59, %v4622_v52 }
 0xf74   : > { %v3830_v61 = vmul.f32 %v3828_v34, %v5409_v51  ;;  %v3831_v62 = vmul.f32 %v3829_v60, %v5411_v13 }
 0xf76   : > { %v3832_v25 = vsel %vm1558_vm7, %v3830_v61, 0.0  ;;  %v3833_v33 = vsel %vm1558_vm7, %v3831_v62, 0.0  ;;  %v3841_v63 = vmul.f32 %v3830_v61, %v5409_v51  ;;  %v3842_v0 = vmul.f32 %v3831_v62, %v5411_v13 }
 0xf77   : > { %v3834_v1 = vadd.f32 %v3833_v33, %v3832_v25 }
 0xf78   : > { %v3843_v3 = vsel %vm1558_vm7, %v3841_v63, 0.0  ;;  %v3844_v4 = vsel %vm1558_vm7, %v3842_v0, 0.0 }
 0xf79   : > { %v3835_v5 = vrot.slane %v3834_v1, 4  ;;  %v3845_v9 = vadd.f32 %v3844_v4, %v3843_v3 }
 0xf7b   : > { %v3836_v10 = vadd.f32 %v3835_v5, %v3834_v1  ;;  %v3846_v7 = vrot.slane %v3845_v9, 4 }
 0xf7d   : > { %v3837_v8 = vrot.slane %v3836_v10, 2  ;;  %v3847_v15 = vadd.f32 %v3846_v7, %v3845_v9 }
 0xf7f   : > { %v3838_v16 = vadd.f32 %v3837_v8, %v3836_v10  ;;  %v3848_v11 = vrot.slane %v3847_v15, 2 }
 0xf81   : > { %v3839_v12 = vrot.slane %v3838_v16, 1  ;;  %v3849_v19 = vadd.f32 %v3848_v11, %v3847_v15 }
 0xf83   : > { %v3840_v45 = vadd.f32 %v3839_v12, %v3838_v16  ;;  %v3850_v20 = vrot.slane %v3849_v19, 1 }
 0xf85   : > { %v3851_v51 = vadd.f32 %v3850_v20, %v3849_v19  ;;  %v3852_v6 = vmul.f32 %v3840_v45, %v3840_v45 }
 0xf87   : > { %v3853_v13 = vsub.f32 %v3851_v51, %v3852_v6 }
 0xf89   : > { %v3854_v14 = vmax.f32 %v3853_v13, 1e-08 }
 0xf8b   : > { %4625 = vrsqrt.f32 %v3854_v14  ;;  %vm3857_vm3 = vcmp.eq.f32.partialorder %v3854_v14, inf  ;;  %v3860_v17 = vand.u32 2147483648, %v3854_v14  ;;  %vm3859_vm4 = vcmp.eq.f32.partialorder %v3854_v14, 0.0 }
 0xf95   : > { %v4626_v22 = vpop.eup %4625 }
 0xf96   : > { %v3856_v37 = vmul.f32 %v4626_v22, %v3854_v14 }
 0xf98   : > { %v3858_v23 = vsel %vm3857_vm3, %v3854_v14, %v3856_v37 }
 0xf99   : > { %v3861_v24 = vsel %vm3859_vm4, %v3860_v17, %v3858_v23 }
 0xf9a   : > { %3863 = vrot.lane.b32.xlu1 %v3861_v24, %s4738_s26  ;;  %s4627_s26 = scalar_lea.vmem %s5467_s10, 16 }
 0xf9b   : > { %p4628_p11 = scmp.ne.s32.totalorder %s5467_s10, %s4627_s26  ;;  %p4635_p1 = scmp.lt.s32.totalorder %s4633_s9, %s4627_s26 }
 0xf9d   : > { %p4629_p12 = pnand %p4628_p11, %p4988_p5  ;;  %p4636_p2 = por %p4635_p1, %p4634_p0 }
 0xf9f   : > { %p4630_p13 = pneg %p4629_p12 }
 0xfa1   : > { %p4637_p3 = pnand %p4636_p2, %p4630_p13 }
0x100c   : > { %v3864_v27 = vpop.permute.xlu1 %3863 }
0x100d   : > { %v3866_v30 = vsel %vm1558_vm7, %v3840_v45, %v3864_v27 }
0x100e   : > { %v3872_v31 = vpack.c.bf16 %v3866_v30, %v3866_v30 }
0x1010   : > { %4497 = vmatmul.mubr.msk.bf16.vlgmr.msra.gmra.mrb[76].mxu1 %vm3885_vm5, %v3872_v31 }
0x10e3   : > { %v3923_v32 = vpop.f32.mrb[76].mxu1 }
0x10e4   : > { %v3924_v35 = vadd.f32 %v3923_v32, %v3871_v28  ;;  %v4498_v44 = vpop.f32.mrb[77].mxu1 }
0x10e5   : > { %v3926_v36 = vpop.f32.mrb[78].mxu1 }
0x10e6   : > { %v3929_v38 = vmax.f32 %v3924_v35, 0.0  ;;  %v4499_v39 = vpop.f32.mrb[79].mxu1 }
0x10e8   : > { %3930 = vst [vmem:[%s1217_s12] sm:$0x1] %v3929_v38 }
0x10e9   : > { %4640 = shalt.err (!%p4637_p3)
}
0x10ea   : > { %s4641_s5 = scalar_lea.hbm %s5465_s3, 16  ;;  %s4645_s8 = scalar_lea.hbm %s4948_s27, 32 }
0x10eb   : > { %p4642_p4 = scmp.ne.s32.totalorder %s5465_s3, %s4641_s5  ;;  %p4646_p9 = scmp.lt.u32.totalorder %s5465_s3, %s4948_s27 }
0x10ec   : > { %p4647_p10 = scmp.lt.u32.totalorder %s4645_s8, %s4641_s5  ;;  %p4649_p12 = scmp.lt.u32.totalorder %s4641_s5, %s5465_s3 }
0x10ed   : > { %p4643_p7 = pnand %p4642_p4, %p4988_p5 }
0x10ee   : > { %p4648_p11 = por %p4647_p10, %p4646_p9 }
0x10ef   : > { %p4644_p8 = pneg %p4643_p7 }
0x10f0   : > { %p4650_p0 = por %p4649_p12, %p4648_p11 }
0x10f2   : > { %p4651_p13 = pnand %p4650_p0, %p4644_p8 }
0x10f4   : > { %4654 = shalt.err (!%p4651_p13)
}
0x10f5   : > { %4500 = dma.vmem_to_hbm [thread:$0]  (%p4988_p5), %s5467_s10, 16, %s5465_s3, %s3932_s6  }
0x10f6 PF: > { %p4506_p1 = scmp.ge.s32.totalorder %s4689_s7, 2  ;;  %s3956_s9 = sand.u32 1, %s4677_s28  }
0x10f7   : > { %s3957_s4 = scalar_lea.sflag [#allocation3], %s3956_s9 }
0x10f8   : > { %p4503_p2 = pnand %p4506_p1, %p4992_p6 }
0x10fa   : > { %4672 = dma.done.wait (!%p4503_p2), %s3957_s4, 16  }
0x10fb   : > { %4674 = vsyncadd (!%p4503_p2), %s3957_s4, 4294967280  ;;  %p91_p3 = scmp.ge.s32.totalorder %s4975_s11, 4   ;;  %s5587_s28 = smov %s4681_s1 }
0x10fc   : > { %s5588_s1 = smov %s4685_s2  ;;  %s5589_s2 = smov %s4986_s18 }
0x10fd   : > { %s5590_s7 = smov %s4975_s11  ;;  %93 = sbr.rel (!%p91_p3) target bundleno = 85 (0x55), region = 286 }
0x1104   :  { %3961 = vsyncpa [#allocation3], 1 }
0x1105   :  { %3963 = vsyncpa [#allocation3 + $0x1], 1 }

</bundles_post_ra>
